<compile_context>
chip_gen: v5e
topology: v5e:2x2
jax: 0.10.0
libtpu: 0.0.40
codegen_flags: <defaults>
</compile_context>

<pallas_src>
import functools
import math

import jax
import jax.numpy as jnp
from jax.experimental import pallas as pl
from jax.experimental.pallas import tpu as pltpu


# ----------------------------- fused Pallas kernel ------------------------------


def _inception_b_kernel(
    x_ref, wmask_ref, hmask_ref,
    w111_ref, b111_ref,
    w22_ref, b22_ref, w23_ref, b23_ref,
    w32_ref, b32_ref, w33_ref, b33_ref,
    w34_ref, b34_ref, w35_ref, b35_ref,
    w4_ref, b4_ref,
    o_ref, pad_ref,
    *, H, W, c1, c2r, c3r,
):
    P = H * W
    PAD = 3 * W          # largest halo we ever need (7x1 conv: +/-3 rows = +/-3*W lanes)
    NEG = 1e30

    # Zero the halo scratch once; only its centre columns are ever rewritten below,
    # so the zero padding stays valid for every conv / pool in this grid step.
    pad_ref[...] = jnp.zeros_like(pad_ref)

    x = x_ref[...]                                    # (Cin, P) f32

    # ---- fused 1x1 convs feeding branch1 / branch2 / branch3 (one MXU matmul) ----
    y = jnp.dot(w111_ref[...], x.astype(jnp.bfloat16),
                preferred_element_type=jnp.float32)
    y = jnp.clip(y + b111_ref[...], 0.0, 6.0)         # (c1+c2r+c3r, P)
    out1 = y[0:c1]
    o2 = y[c1:c1 + c2r]
    o3 = y[c1 + c2r:c1 + c2r + c3r]

    def tap_conv(v, w_ref, b_ref, step, mask_ref):
        """7-tap conv along one spatial axis (zero padding 3) + BN shift + ReLU6.

        v: (cin, P) f32 activations.  step=1 -> 1x7 (along W), step=W -> 7x1 (along H).
        w_ref: (7, cout, cin) bf16 per-tap weights (BN scale already folded in).
        mask_ref: (7, 1, P) f32 0/1 validity masks for each tap's shift.
        """
        cin = v.shape[0]
        cout = w_ref.shape[1]
        pad_ref[0:cin, PAD:PAD + P] = v
        acc = jnp.zeros((cout, P), jnp.float32)
        for d in range(7):                            # statically unrolled
            k = (d - 3) * step
            sh = pad_ref[0:cin, PAD + k:PAD + k + P]
            if d != 3:
                sh = sh * mask_ref[d]
            acc = acc + jnp.dot(w_ref[d], sh.astype(jnp.bfloat16),
                                preferred_element_type=jnp.float32)
        return jnp.clip(acc + b_ref[...], 0.0, 6.0)

    # ---- branch 2: 1x1 (above) -> 1x7 -> 7x1 ----
    o2 = tap_conv(o2, w22_ref, b22_ref, 1, wmask_ref)
    out2 = tap_conv(o2, w23_ref, b23_ref, W, hmask_ref)

    # ---- branch 3: 1x1 (above) -> 1x7 -> 7x1 -> 1x7 -> 7x1 ----
    o3 = tap_conv(o3, w32_ref, b32_ref, 1, wmask_ref)
    o3 = tap_conv(o3, w33_ref, b33_ref, W, hmask_ref)
    o3 = tap_conv(o3, w34_ref, b34_ref, 1, wmask_ref)
    out3 = tap_conv(o3, w35_ref, b35_ref, W, hmask_ref)

    # ---- branch 4: separable in-kernel 3x3 maxpool (stride 1, pad 1) -> 1x1 ----
    def pool_pass(v, step, mask_ref):
        cin = v.shape[0]
        pad_ref[0:cin, PAD:PAD + P] = v
        res = v                                       # centre tap is always valid
        for k in (-1, 1):
            m = mask_ref[k + 3]                       # 0/1 validity of the +/-1 shift
            sh = pad_ref[0:cin, PAD + k * step:PAD + k * step + P]
            res = jnp.maximum(res, sh * m - (1.0 - m) * NEG)
        return res

    pooled = pool_pass(pool_pass(x, 1, wmask_ref), W, hmask_ref)
    out4 = jnp.clip(
        jnp.dot(w4_ref[...], pooled.astype(jnp.bfloat16),
                preferred_element_type=jnp.float32) + b4_ref[...], 0.0, 6.0)

    # ---- write channel-offset slices of the single lane-dense output block ----
    c2 = out2.shape[0]
    c3 = out3.shape[0]
    c4 = out4.shape[0]
    o_ref[0:c1, :] = out1.astype(o_ref.dtype)
    o_ref[c1:c1 + c2, :] = out2.astype(o_ref.dtype)
    o_ref[c1 + c2:c1 + c2 + c3, :] = out3.astype(o_ref.dtype)
    o_ref[c1 + c2 + c3:c1 + c2 + c3 + c4, :] = out4.astype(o_ref.dtype)


# ------------------------------ module forward ----------------------------------


def inception_v3_module_b(params, x_nchw):
    N, cin, H, W = x_nchw.shape
    P = H * W
    x = x_nchw.reshape(N, cin, P).astype(jnp.float32)   # flat NCHW == (C, H*W) layout

    c2r = params["w22"].shape[1]
    c3r = params["w32"].shape[1]
    c1 = params["w111"].shape[0] - c2r - c3r
    c2 = params["w23"].shape[1]
    c3 = params["w35"].shape[1]
    c4 = params["w4"].shape[0]
    c_total = c1 + c2 + c3 + c4
    c_max = max(cin, c2r, c3r)

    # 0/1 validity masks for shifts of -3..+3 along W (columns) and H (rows);
    # trace-time constants, tiny broadcast inputs to the kernel.
    ks = jnp.arange(7, dtype=jnp.int32)[:, None] - 3            # (7, 1)
    cols = (jnp.arange(P, dtype=jnp.int32) % W)[None, :]         # (1, P)
    rows = (jnp.arange(P, dtype=jnp.int32) // W)[None, :]
    wmask = ((cols + ks >= 0) & (cols + ks < W)).astype(jnp.float32).reshape(7, 1, P)
    hmask = ((rows + ks >= 0) & (rows + ks < H)).astype(jnp.float32).reshape(7, 1, P)

    inputs = [
        x, wmask, hmask,
        params["w111"], params["b111"],
        params["w22"], params["b22"], params["w23"], params["b23"],
        params["w32"], params["b32"], params["w33"], params["b33"],
        params["w34"], params["b34"], params["w35"], params["b35"],
        params["w4"], params["b4"],
    ]

    def bcast_spec(a):
        nd = a.ndim
        return pl.BlockSpec(a.shape, lambda n, _nd=nd: (0,) * _nd)

    in_specs = [pl.BlockSpec((None, cin, P), lambda n: (n, 0, 0))]
    in_specs += [bcast_spec(a) for a in inputs[1:]]

    kernel = functools.partial(_inception_b_kernel, H=H, W=W,
                               c1=c1, c2r=c2r, c3r=c3r)

    out = pl.pallas_call(
        kernel,
        out_shape=jax.ShapeDtypeStruct((N, c_total, P), jnp.float32),
        grid=(N,),
        in_specs=in_specs,
        out_specs=pl.BlockSpec((None, c_total, P), lambda n: (n, 0, 0)),
        scratch_shapes=[pltpu.VMEM((c_max, P + 6 * W), jnp.float32)],
        compiler_params=pltpu.CompilerParams(
            dimension_semantics=("parallel",),
            vmem_limit_bytes=32 * 1024 * 1024,
        ),
    )(*inputs)
    return out.reshape(N, c_total, H, W)


# ------------------------------ parameters --------------------------------------


def _make_conv_bn_params(key, cin, cout, kh, kw, eps=1e-5):
    """Conv2d(bias=True) + BatchNorm2d(eval) folded to per-tap bf16 weights (BN scale
    folded into the weights) and an f32 shift, in the kernel's (Cout, Cin) @ (Cin, P) form."""
    k1, k2, k3, k4, k5, k6 = jax.random.split(key, 6)
    fan_in = cin * kh * kw
    w = jax.random.normal(k1, (cout, cin, kh, kw), jnp.float32) / math.sqrt(fan_in)
    b = 0.1 * jax.random.normal(k2, (cout,), jnp.float32)
    gamma = 1.0 + 0.1 * jax.random.normal(k3, (cout,), jnp.float32)
    beta = 0.1 * jax.random.normal(k4, (cout,), jnp.float32)
    run_mean = 0.1 * jax.random.normal(k5, (cout,), jnp.float32)
    run_var = 1.0 + jnp.abs(jax.random.normal(k6, (cout,), jnp.float32))
    sc = gamma / jnp.sqrt(run_var + eps)
    w_folded = w * sc[:, None, None, None]            # BN scale folded into the weights
    shift = beta + sc * (b - run_mean)
    taps = jnp.transpose(w_folded, (2, 3, 0, 1)).reshape(kh * kw, cout, cin)
    return taps.astype(jnp.bfloat16), shift.reshape(cout, 1).astype(jnp.float32)


def init_inception_b_params(key, in_ch, out1, out2r, out2, out3r, out3, out4):
    keys = jax.random.split(key, 10)
    w1, s1 = _make_conv_bn_params(keys[0], in_ch, out1, 1, 1)
    w21, s21 = _make_conv_bn_params(keys[1], in_ch, out2r, 1, 1)
    w22, s22 = _make_conv_bn_params(keys[2], out2r, out2r, 1, 7)
    w23, s23 = _make_conv_bn_params(keys[3], out2r, out2, 7, 1)
    w31, s31 = _make_conv_bn_params(keys[4], in_ch, out3r, 1, 1)
    w32, s32 = _make_conv_bn_params(keys[5], out3r, out3r, 1, 7)
    w33, s33 = _make_conv_bn_params(keys[6], out3r, out3r, 7, 1)
    w34, s34 = _make_conv_bn_params(keys[7], out3r, out3r, 1, 7)
    w35, s35 = _make_conv_bn_params(keys[8], out3r, out3, 7, 1)
    w4, s4 = _make_conv_bn_params(keys[9], in_ch, out4, 1, 1)
    return {
        # the three 1x1 convs that consume x are fused into one weight matrix
        "w111": jnp.concatenate([w1[0], w21[0], w31[0]], axis=0),   # (out1+out2r+out3r, in_ch) bf16
        "b111": jnp.concatenate([s1, s21, s31], axis=0),            # (out1+out2r+out3r, 1) f32
        "w22": w22, "b22": s22, "w23": w23, "b23": s23,
        "w32": w32, "b32": s32, "w33": w33, "b33": s33,
        "w34": w34, "b34": s34, "w35": w35, "b35": s35,
        "w4": w4[0], "b4": s4,
    }


# --------------------------- pure-XLA reference (for checking) -------------------


def _ref_conv_bn_relu6(x_nchw, taps, shift, kh, kw):
    khw, cout, cin = taps.shape
    w = jnp.transpose(taps.reshape(kh, kw, cout, cin), (2, 3, 0, 1))   # OIHW, BN-folded
    y = jax.lax.conv_general_dilated(
        x_nchw.astype(jnp.bfloat16), w.astype(jnp.bfloat16),
        window_strides=(1, 1),
        padding=(((kh - 1) // 2, (kh - 1) // 2), ((kw - 1) // 2, (kw - 1) // 2)),
        dimension_numbers=("NCHW", "OIHW", "NCHW"),
        preferred_element_type=jnp.float32)
    return jnp.clip(y + shift.reshape(1, cout, 1, 1), 0.0, 6.0)


def _reference_forward(params, x):
    c2r = params["w22"].shape[1]
    c3r = params["w32"].shape[1]
    c1 = params["w111"].shape[0] - c2r - c3r
    w111, b111 = params["w111"], params["b111"]

    out1 = _ref_conv_bn_relu6(x, w111[0:c1][None], b111[0:c1], 1, 1)
    o2 = _ref_conv_bn_relu6(x, w111[c1:c1 + c2r][None], b111[c1:c1 + c2r], 1, 1)
    o3 = _ref_conv_bn_relu6(x, w111[c1 + c2r:][None], b111[c1 + c2r:], 1, 1)

    o2 = _ref_conv_bn_relu6(o2, params["w22"], params["b22"], 1, 7)
    out2 = _ref_conv_bn_relu6(o2, params["w23"], params["b23"], 7, 1)

    o3 = _ref_conv_bn_relu6(o3, params["w32"], params["b32"], 1, 7)
    o3 = _ref_conv_bn_relu6(o3, params["w33"], params["b33"], 7, 1)
    o3 = _ref_conv_bn_relu6(o3, params["w34"], params["b34"], 1, 7)
    out3 = _ref_conv_bn_relu6(o3, params["w35"], params["b35"], 7, 1)

    pooled = jax.lax.reduce_window(
        x, -jnp.inf, jax.lax.max, (1, 1, 3, 3), (1, 1, 1, 1),
        ((0, 0), (0, 0), (1, 1), (1, 1)))
    out4 = _ref_conv_bn_relu6(pooled, params["w4"][None], params["b4"], 1, 1)

    return jnp.concatenate([out1, out2, out3, out4], axis=1)


# --------------------------------- main ------------------------------------------

if __name__ == "__main__":
    key = jax.random.PRNGKey(0)
    k_param, k_x = jax.random.split(key)

    in_channels = 4
    out1, out2r, out2, out3r, out3, out4 = 4, 4, 4, 4, 4, 4
    params = init_inception_b_params(k_param, in_channels, out1, out2r, out2,
                                     out3r, out3, out4)

    x = jax.random.normal(k_x, (2, in_channels, 16, 16), jnp.float32)

    fwd = jax.jit(functools.partial(inception_v3_module_b, params))
    out = fwd(x)
    jax.block_until_ready(out)

    expected_c = out1 + out2 + out3 + out4
    assert out.shape == (2, expected_c, 16, 16), out.shape
    assert bool(jnp.all(out >= 0.0)) and bool(jnp.all(out <= 6.0))   # ReLU6 range

    # numerical check against a pure-XLA reference of the same (BN-folded, bf16-operand) module
    ref = jax.jit(_reference_forward)(params, x)
    max_err = float(jnp.max(jnp.abs(out - ref)))
    assert max_err < 5e-2, max_err

    print("KERNEL_OK")
</pallas_src>

<mosaic_0001>
module attributes {stable_mosaic.version = 11 : i64} {
  func.func @_inception_b_kernel(%arg0: i32, %arg1: memref<1x4x256xf32, #tpu.memory_space<vmem>>, %arg2: memref<7x1x256xf32, #tpu.memory_space<vmem>>, %arg3: memref<7x1x256xf32, #tpu.memory_space<vmem>>, %arg4: memref<12x4xbf16, #tpu.memory_space<vmem>>, %arg5: memref<12x1xf32, #tpu.memory_space<vmem>>, %arg6: memref<7x4x4xbf16, #tpu.memory_space<vmem>>, %arg7: memref<4x1xf32, #tpu.memory_space<vmem>>, %arg8: memref<7x4x4xbf16, #tpu.memory_space<vmem>>, %arg9: memref<4x1xf32, #tpu.memory_space<vmem>>, %arg10: memref<7x4x4xbf16, #tpu.memory_space<vmem>>, %arg11: memref<4x1xf32, #tpu.memory_space<vmem>>, %arg12: memref<7x4x4xbf16, #tpu.memory_space<vmem>>, %arg13: memref<4x1xf32, #tpu.memory_space<vmem>>, %arg14: memref<7x4x4xbf16, #tpu.memory_space<vmem>>, %arg15: memref<4x1xf32, #tpu.memory_space<vmem>>, %arg16: memref<7x4x4xbf16, #tpu.memory_space<vmem>>, %arg17: memref<4x1xf32, #tpu.memory_space<vmem>>, %arg18: memref<4x4xbf16, #tpu.memory_space<vmem>>, %arg19: memref<4x1xf32, #tpu.memory_space<vmem>>, %arg20: memref<1x16x256xf32, #tpu.memory_space<vmem>>, %arg21: memref<4x352xf32, #tpu.memory_space<vmem>>) attributes {dimension_semantics = [#tpu.dimension_semantics<parallel>], iteration_bounds = array<i64: 2>, scalar_prefetch = 0 : i64, scratch_operands = 1 : i64, tpu.core_type = #tpu.core_type<tc>, window_params = [{transform_indices = @transform_0, window_bounds = array<i64: 1, 4, 256>}, {pipeline_mode = #tpu.pipeline_mode<synchronous>, transform_indices = @transform_1, window_bounds = array<i64: 7, 1, 256>}, {pipeline_mode = #tpu.pipeline_mode<synchronous>, transform_indices = @transform_2, window_bounds = array<i64: 7, 1, 256>}, {pipeline_mode = #tpu.pipeline_mode<synchronous>, transform_indices = @transform_3, window_bounds = array<i64: 12, 4>}, {pipeline_mode = #tpu.pipeline_mode<synchronous>, transform_indices = @transform_4, window_bounds = array<i64: 12, 1>}, {pipeline_mode = #tpu.pipeline_mode<synchronous>, transform_indices = @transform_5, window_bounds = array<i64: 7, 4, 4>}, {pipeline_mode = #tpu.pipeline_mode<synchronous>, transform_indices = @transform_6, window_bounds = array<i64: 4, 1>}, {pipeline_mode = #tpu.pipeline_mode<synchronous>, transform_indices = @transform_7, window_bounds = array<i64: 7, 4, 4>}, {pipeline_mode = #tpu.pipeline_mode<synchronous>, transform_indices = @transform_8, window_bounds = array<i64: 4, 1>}, {pipeline_mode = #tpu.pipeline_mode<synchronous>, transform_indices = @transform_9, window_bounds = array<i64: 7, 4, 4>}, {pipeline_mode = #tpu.pipeline_mode<synchronous>, transform_indices = @transform_10, window_bounds = array<i64: 4, 1>}, {pipeline_mode = #tpu.pipeline_mode<synchronous>, transform_indices = @transform_11, window_bounds = array<i64: 7, 4, 4>}, {pipeline_mode = #tpu.pipeline_mode<synchronous>, transform_indices = @transform_12, window_bounds = array<i64: 4, 1>}, {pipeline_mode = #tpu.pipeline_mode<synchronous>, transform_indices = @transform_13, window_bounds = array<i64: 7, 4, 4>}, {pipeline_mode = #tpu.pipeline_mode<synchronous>, transform_indices = @transform_14, window_bounds = array<i64: 4, 1>}, {pipeline_mode = #tpu.pipeline_mode<synchronous>, transform_indices = @transform_15, window_bounds = array<i64: 7, 4, 4>}, {pipeline_mode = #tpu.pipeline_mode<synchronous>, transform_indices = @transform_16, window_bounds = array<i64: 4, 1>}, {pipeline_mode = #tpu.pipeline_mode<synchronous>, transform_indices = @transform_17, window_bounds = array<i64: 4, 4>}, {pipeline_mode = #tpu.pipeline_mode<synchronous>, transform_indices = @transform_18, window_bounds = array<i64: 4, 1>}, {transform_indices = @transform_19, window_bounds = array<i64: 1, 16, 256>}]} {
    %cst = arith.constant 0.000000e+00 : f32
    %0 = vector.broadcast %cst : f32 to vector<4x352xf32>
    %c0 = arith.constant 0 : index
    %c0_0 = arith.constant 0 : index
    %1 = vector.load %arg21[%c0, %c0_0] : memref<4x352xf32, #tpu.memory_space<vmem>>, vector<4x352xf32>
    tpu.vector_store %arg21[%c0, %c0_0], %0 {strides = array<i32>} : memref<4x352xf32, #tpu.memory_space<vmem>>, vector<4x352xf32>,
    %c0_1 = arith.constant 0 : index
    %c0_2 = arith.constant 0 : index
    %c0_3 = arith.constant 0 : index
    %2 = vector.load %arg1[%c0_1, %c0_2, %c0_3] : memref<1x4x256xf32, #tpu.memory_space<vmem>>, vector<1x4x256xf32>
    %3 = vector.shape_cast %2 : vector<1x4x256xf32> to vector<4x256xf32>
    %c0_4 = arith.constant 0 : index
    %c0_5 = arith.constant 0 : index
    %4 = vector.load %arg4[%c0_4, %c0_5] : memref<12x4xbf16, #tpu.memory_space<vmem>>, vector<12x4xbf16>
    %5 = arith.truncf %3 : vector<4x256xf32> to vector<4x256xbf16>
    %cst_6 = arith.constant dense<0.000000e+00> : vector<12x256xf32>
    %6 = tpu.matmul %4, %5, %cst_6 {dimension_numbers = #tpu.dot_dimension_numbers<[1], [0], [0], [1], [0, 0, 1, 1], [], []>} : vector<12x4xbf16>, vector<4x256xbf16>, vector<12x256xf32> -> vector<12x256xf32>
    %c0_7 = arith.constant 0 : index
    %c0_8 = arith.constant 0 : index
    %7 = vector.load %arg5[%c0_7, %c0_8] : memref<12x1xf32, #tpu.memory_space<vmem>>, vector<12x1xf32>
    %8 = vector.broadcast %7 : vector<12x1xf32> to vector<12x256xf32>
    %9 = arith.addf %6, %8 : vector<12x256xf32>
    %cst_9 = arith.constant 0.000000e+00 : f32
    %cst_10 = arith.constant 6.000000e+00 : f32
    %10 = vector.broadcast %cst_9 : f32 to vector<12x256xf32>
    %11 = arith.maximumf %10, %9 : vector<12x256xf32>
    %12 = vector.broadcast %cst_10 : f32 to vector<12x256xf32>
    %13 = arith.minimumf %12, %11 : vector<12x256xf32>
    %14 = vector.extract_strided_slice %13 {offsets = [0, 0], sizes = [4, 256], strides = [1, 1]} : vector<12x256xf32> to vector<4x256xf32>
    %15 = vector.extract_strided_slice %13 {offsets = [4, 0], sizes = [4, 256], strides = [1, 1]} : vector<12x256xf32> to vector<4x256xf32>
    %16 = vector.extract_strided_slice %13 {offsets = [8, 0], sizes = [4, 256], strides = [1, 1]} : vector<12x256xf32> to vector<4x256xf32>
    %c0_11 = arith.constant 0 : index
    %c48 = arith.constant 48 : index
    %17 = vector.load %arg21[%c0_11, %c48] : memref<4x352xf32, #tpu.memory_space<vmem>>, vector<4x256xf32>
    tpu.vector_store %arg21[%c0_11, %c48], %15 {strides = array<i32>} : memref<4x352xf32, #tpu.memory_space<vmem>>, vector<4x256xf32>,
    %cst_12 = arith.constant 0.000000e+00 : f32
    %18 = vector.broadcast %cst_12 : f32 to vector<4x256xf32>
    %c0_13 = arith.constant 0 : index
    %c45 = arith.constant 45 : index
    %19 = vector.load %arg21[%c0_13, %c45] : memref<4x352xf32, #tpu.memory_space<vmem>>, vector<4x256xf32>
    %c0_14 = arith.constant 0 : index
    %c0_15 = arith.constant 0 : index
    %c0_16 = arith.constant 0 : index
    %20 = vector.load %arg2[%c0_14, %c0_15, %c0_16] : memref<7x1x256xf32, #tpu.memory_space<vmem>>, vector<1x1x256xf32>
    %21 = vector.shape_cast %20 : vector<1x1x256xf32> to vector<1x256xf32>
    %22 = vector.broadcast %21 : vector<1x256xf32> to vector<4x256xf32>
    %23 = arith.mulf %19, %22 : vector<4x256xf32>
    %c0_17 = arith.constant 0 : index
    %c0_18 = arith.constant 0 : index
    %c0_19 = arith.constant 0 : index
    %24 = vector.load %arg6[%c0_17, %c0_18, %c0_19] : memref<7x4x4xbf16, #tpu.memory_space<vmem>>, vector<1x4x4xbf16>
    %25 = vector.shape_cast %24 : vector<1x4x4xbf16> to vector<4x4xbf16>
    %26 = arith.truncf %23 : vector<4x256xf32> to vector<4x256xbf16>
    %cst_20 = arith.constant dense<0.000000e+00> : vector<4x256xf32>
    %27 = tpu.matmul %25, %26, %cst_20 {dimension_numbers = #tpu.dot_dimension_numbers<[1], [0], [0], [1], [0, 0, 1, 1], [], []>} : vector<4x4xbf16>, vector<4x256xbf16>, vector<4x256xf32> -> vector<4x256xf32>
    %28 = arith.addf %18, %27 : vector<4x256xf32>
    %c0_21 = arith.constant 0 : index
    %c46 = arith.constant 46 : index
    %29 = vector.load %arg21[%c0_21, %c46] : memref<4x352xf32, #tpu.memory_space<vmem>>, vector<4x256xf32>
    %c1 = arith.constant 1 : index
    %c0_22 = arith.constant 0 : index
    %c0_23 = arith.constant 0 : index
    %30 = vector.load %arg2[%c1, %c0_22, %c0_23] : memref<7x1x256xf32, #tpu.memory_space<vmem>>, vector<1x1x256xf32>
    %31 = vector.shape_cast %30 : vector<1x1x256xf32> to vector<1x256xf32>
    %32 = vector.broadcast %31 : vector<1x256xf32> to vector<4x256xf32>
    %33 = arith.mulf %29, %32 : vector<4x256xf32>
    %c1_24 = arith.constant 1 : index
    %c0_25 = arith.constant 0 : index
    %c0_26 = arith.constant 0 : index
    %34 = vector.load %arg6[%c1_24, %c0_25, %c0_26] : memref<7x4x4xbf16, #tpu.memory_space<vmem>>, vector<1x4x4xbf16>
    %35 = vector.shape_cast %34 : vector<1x4x4xbf16> to vector<4x4xbf16>
    %36 = arith.truncf %33 : vector<4x256xf32> to vector<4x256xbf16>
    %cst_27 = arith.constant dense<0.000000e+00> : vector<4x256xf32>
    %37 = tpu.matmul %35, %36, %cst_27 {dimension_numbers = #tpu.dot_dimension_numbers<[1], [0], [0], [1], [0, 0, 1, 1], [], []>} : vector<4x4xbf16>, vector<4x256xbf16>, vector<4x256xf32> -> vector<4x256xf32>
    %38 = arith.addf %28, %37 : vector<4x256xf32>
    %c0_28 = arith.constant 0 : index
    %c47 = arith.constant 47 : index
    %39 = vector.load %arg21[%c0_28, %c47] : memref<4x352xf32, #tpu.memory_space<vmem>>, vector<4x256xf32>
    %c2 = arith.constant 2 : index
    %c0_29 = arith.constant 0 : index
    %c0_30 = arith.constant 0 : index
    %40 = vector.load %arg2[%c2, %c0_29, %c0_30] : memref<7x1x256xf32, #tpu.memory_space<vmem>>, vector<1x1x256xf32>
    %41 = vector.shape_cast %40 : vector<1x1x256xf32> to vector<1x256xf32>
    %42 = vector.broadcast %41 : vector<1x256xf32> to vector<4x256xf32>
    %43 = arith.mulf %39, %42 : vector<4x256xf32>
    %c2_31 = arith.constant 2 : index
    %c0_32 = arith.constant 0 : index
    %c0_33 = arith.constant 0 : index
    %44 = vector.load %arg6[%c2_31, %c0_32, %c0_33] : memref<7x4x4xbf16, #tpu.memory_space<vmem>>, vector<1x4x4xbf16>
    %45 = vector.shape_cast %44 : vector<1x4x4xbf16> to vector<4x4xbf16>
    %46 = arith.truncf %43 : vector<4x256xf32> to vector<4x256xbf16>
    %cst_34 = arith.constant dense<0.000000e+00> : vector<4x256xf32>
    %47 = tpu.matmul %45, %46, %cst_34 {dimension_numbers = #tpu.dot_dimension_numbers<[1], [0], [0], [1], [0, 0, 1, 1], [], []>} : vector<4x4xbf16>, vector<4x256xbf16>, vector<4x256xf32> -> vector<4x256xf32>
    %48 = arith.addf %38, %47 : vector<4x256xf32>
    %c0_35 = arith.constant 0 : index
    %c48_36 = arith.constant 48 : index
    %49 = vector.load %arg21[%c0_35, %c48_36] : memref<4x352xf32, #tpu.memory_space<vmem>>, vector<4x256xf32>
    %c3 = arith.constant 3 : index
    %c0_37 = arith.constant 0 : index
    %c0_38 = arith.constant 0 : index
    %50 = vector.load %arg6[%c3, %c0_37, %c0_38] : memref<7x4x4xbf16, #tpu.memory_space<vmem>>, vector<1x4x4xbf16>
    %51 = vector.shape_cast %50 : vector<1x4x4xbf16> to vector<4x4xbf16>
    %52 = arith.truncf %49 : vector<4x256xf32> to vector<4x256xbf16>
    %cst_39 = arith.constant dense<0.000000e+00> : vector<4x256xf32>
    %53 = tpu.matmul %51, %52, %cst_39 {dimension_numbers = #tpu.dot_dimension_numbers<[1], [0], [0], [1], [0, 0, 1, 1], [], []>} : vector<4x4xbf16>, vector<4x256xbf16>, vector<4x256xf32> -> vector<4x256xf32>
    %54 = arith.addf %48, %53 : vector<4x256xf32>
    %c0_40 = arith.constant 0 : index
    %c49 = arith.constant 49 : index
    %55 = vector.load %arg21[%c0_40, %c49] : memref<4x352xf32, #tpu.memory_space<vmem>>, vector<4x256xf32>
    %c4 = arith.constant 4 : index
    %c0_41 = arith.constant 0 : index
    %c0_42 = arith.constant 0 : index
    %56 = vector.load %arg2[%c4, %c0_41, %c0_42] : memref<7x1x256xf32, #tpu.memory_space<vmem>>, vector<1x1x256xf32>
    %57 = vector.shape_cast %56 : vector<1x1x256xf32> to vector<1x256xf32>
    %58 = vector.broadcast %57 : vector<1x256xf32> to vector<4x256xf32>
    %59 = arith.mulf %55, %58 : vector<4x256xf32>
    %c4_43 = arith.constant 4 : index
    %c0_44 = arith.constant 0 : index
    %c0_45 = arith.constant 0 : index
    %60 = vector.load %arg6[%c4_43, %c0_44, %c0_45] : memref<7x4x4xbf16, #tpu.memory_space<vmem>>, vector<1x4x4xbf16>
    %61 = vector.shape_cast %60 : vector<1x4x4xbf16> to vector<4x4xbf16>
    %62 = arith.truncf %59 : vector<4x256xf32> to vector<4x256xbf16>
    %cst_46 = arith.constant dense<0.000000e+00> : vector<4x256xf32>
    %63 = tpu.matmul %61, %62, %cst_46 {dimension_numbers = #tpu.dot_dimension_numbers<[1], [0], [0], [1], [0, 0, 1, 1], [], []>} : vector<4x4xbf16>, vector<4x256xbf16>, vector<4x256xf32> -> vector<4x256xf32>
    %64 = arith.addf %54, %63 : vector<4x256xf32>
    %c0_47 = arith.constant 0 : index
    %c50 = arith.constant 50 : index
    %65 = vector.load %arg21[%c0_47, %c50] : memref<4x352xf32, #tpu.memory_space<vmem>>, vector<4x256xf32>
    %c5 = arith.constant 5 : index
    %c0_48 = arith.constant 0 : index
    %c0_49 = arith.constant 0 : index
    %66 = vector.load %arg2[%c5, %c0_48, %c0_49] : memref<7x1x256xf32, #tpu.memory_space<vmem>>, vector<1x1x256xf32>
    %67 = vector.shape_cast %66 : vector<1x1x256xf32> to vector<1x256xf32>
    %68 = vector.broadcast %67 : vector<1x256xf32> to vector<4x256xf32>
    %69 = arith.mulf %65, %68 : vector<4x256xf32>
    %c5_50 = arith.constant 5 : index
    %c0_51 = arith.constant 0 : index
    %c0_52 = arith.constant 0 : index
    %70 = vector.load %arg6[%c5_50, %c0_51, %c0_52] : memref<7x4x4xbf16, #tpu.memory_space<vmem>>, vector<1x4x4xbf16>
    %71 = vector.shape_cast %70 : vector<1x4x4xbf16> to vector<4x4xbf16>
    %72 = arith.truncf %69 : vector<4x256xf32> to vector<4x256xbf16>
    %cst_53 = arith.constant dense<0.000000e+00> : vector<4x256xf32>
    %73 = tpu.matmul %71, %72, %cst_53 {dimension_numbers = #tpu.dot_dimension_numbers<[1], [0], [0], [1], [0, 0, 1, 1], [], []>} : vector<4x4xbf16>, vector<4x256xbf16>, vector<4x256xf32> -> vector<4x256xf32>
    %74 = arith.addf %64, %73 : vector<4x256xf32>
    %c0_54 = arith.constant 0 : index
    %c51 = arith.constant 51 : index
    %75 = vector.load %arg21[%c0_54, %c51] : memref<4x352xf32, #tpu.memory_space<vmem>>, vector<4x256xf32>
    %c6 = arith.constant 6 : index
    %c0_55 = arith.constant 0 : index
    %c0_56 = arith.constant 0 : index
    %76 = vector.load %arg2[%c6, %c0_55, %c0_56] : memref<7x1x256xf32, #tpu.memory_space<vmem>>, vector<1x1x256xf32>
    %77 = vector.shape_cast %76 : vector<1x1x256xf32> to vector<1x256xf32>
    %78 = vector.broadcast %77 : vector<1x256xf32> to vector<4x256xf32>
    %79 = arith.mulf %75, %78 : vector<4x256xf32>
    %c6_57 = arith.constant 6 : index
    %c0_58 = arith.constant 0 : index
    %c0_59 = arith.constant 0 : index
    %80 = vector.load %arg6[%c6_57, %c0_58, %c0_59] : memref<7x4x4xbf16, #tpu.memory_space<vmem>>, vector<1x4x4xbf16>
    %81 = vector.shape_cast %80 : vector<1x4x4xbf16> to vector<4x4xbf16>
    %82 = arith.truncf %79 : vector<4x256xf32> to vector<4x256xbf16>
    %cst_60 = arith.constant dense<0.000000e+00> : vector<4x256xf32>
    %83 = tpu.matmul %81, %82, %cst_60 {dimension_numbers = #tpu.dot_dimension_numbers<[1], [0], [0], [1], [0, 0, 1, 1], [], []>} : vector<4x4xbf16>, vector<4x256xbf16>, vector<4x256xf32> -> vector<4x256xf32>
    %84 = arith.addf %74, %83 : vector<4x256xf32>
    %c0_61 = arith.constant 0 : index
    %c0_62 = arith.constant 0 : index
    %85 = vector.load %arg7[%c0_61, %c0_62] : memref<4x1xf32, #tpu.memory_space<vmem>>, vector<4x1xf32>
    %86 = vector.broadcast %85 : vector<4x1xf32> to vector<4x256xf32>
    %87 = arith.addf %84, %86 : vector<4x256xf32>
    %cst_63 = arith.constant 0.000000e+00 : f32
    %cst_64 = arith.constant 6.000000e+00 : f32
    %88 = vector.broadcast %cst_63 : f32 to vector<4x256xf32>
    %89 = arith.maximumf %88, %87 : vector<4x256xf32>
    %90 = vector.broadcast %cst_64 : f32 to vector<4x256xf32>
    %91 = arith.minimumf %90, %89 : vector<4x256xf32>
    %c0_65 = arith.constant 0 : index
    %c48_66 = arith.constant 48 : index
    %92 = vector.load %arg21[%c0_65, %c48_66] : memref<4x352xf32, #tpu.memory_space<vmem>>, vector<4x256xf32>
    tpu.vector_store %arg21[%c0_65, %c48_66], %91 {strides = array<i32>} : memref<4x352xf32, #tpu.memory_space<vmem>>, vector<4x256xf32>,
    %cst_67 = arith.constant 0.000000e+00 : f32
    %93 = vector.broadcast %cst_67 : f32 to vector<4x256xf32>
    %c0_68 = arith.constant 0 : index
    %c0_69 = arith.constant 0 : index
    %94 = vector.load %arg21[%c0_68, %c0_69] : memref<4x352xf32, #tpu.memory_space<vmem>>, vector<4x256xf32>
    %c0_70 = arith.constant 0 : index
    %c0_71 = arith.constant 0 : index
    %c0_72 = arith.constant 0 : index
    %95 = vector.load %arg3[%c0_70, %c0_71, %c0_72] : memref<7x1x256xf32, #tpu.memory_space<vmem>>, vector<1x1x256xf32>
    %96 = vector.shape_cast %95 : vector<1x1x256xf32> to vector<1x256xf32>
    %97 = vector.broadcast %96 : vector<1x256xf32> to vector<4x256xf32>
    %98 = arith.mulf %94, %97 : vector<4x256xf32>
    %c0_73 = arith.constant 0 : index
    %c0_74 = arith.constant 0 : index
    %c0_75 = arith.constant 0 : index
    %99 = vector.load %arg8[%c0_73, %c0_74, %c0_75] : memref<7x4x4xbf16, #tpu.memory_space<vmem>>, vector<1x4x4xbf16>
    %100 = vector.shape_cast %99 : vector<1x4x4xbf16> to vector<4x4xbf16>
    %101 = arith.truncf %98 : vector<4x256xf32> to vector<4x256xbf16>
    %cst_76 = arith.constant dense<0.000000e+00> : vector<4x256xf32>
    %102 = tpu.matmul %100, %101, %cst_76 {dimension_numbers = #tpu.dot_dimension_numbers<[1], [0], [0], [1], [0, 0, 1, 1], [], []>} : vector<4x4xbf16>, vector<4x256xbf16>, vector<4x256xf32> -> vector<4x256xf32>
    %103 = arith.addf %93, %102 : vector<4x256xf32>
    %c0_77 = arith.constant 0 : index
    %c16 = arith.constant 16 : index
    %104 = vector.load %arg21[%c0_77, %c16] : memref<4x352xf32, #tpu.memory_space<vmem>>, vector<4x256xf32>
    %c1_78 = arith.constant 1 : index
    %c0_79 = arith.constant 0 : index
    %c0_80 = arith.constant 0 : index
    %105 = vector.load %arg3[%c1_78, %c0_79, %c0_80] : memref<7x1x256xf32, #tpu.memory_space<vmem>>, vector<1x1x256xf32>
    %106 = vector.shape_cast %105 : vector<1x1x256xf32> to vector<1x256xf32>
    %107 = vector.broadcast %106 : vector<1x256xf32> to vector<4x256xf32>
    %108 = arith.mulf %104, %107 : vector<4x256xf32>
    %c1_81 = arith.constant 1 : index
    %c0_82 = arith.constant 0 : index
    %c0_83 = arith.constant 0 : index
    %109 = vector.load %arg8[%c1_81, %c0_82, %c0_83] : memref<7x4x4xbf16, #tpu.memory_space<vmem>>, vector<1x4x4xbf16>
    %110 = vector.shape_cast %109 : vector<1x4x4xbf16> to vector<4x4xbf16>
    %111 = arith.truncf %108 : vector<4x256xf32> to vector<4x256xbf16>
    %cst_84 = arith.constant dense<0.000000e+00> : vector<4x256xf32>
    %112 = tpu.matmul %110, %111, %cst_84 {dimension_numbers = #tpu.dot_dimension_numbers<[1], [0], [0], [1], [0, 0, 1, 1], [], []>} : vector<4x4xbf16>, vector<4x256xbf16>, vector<4x256xf32> -> vector<4x256xf32>
    %113 = arith.addf %103, %112 : vector<4x256xf32>
    %c0_85 = arith.constant 0 : index
    %c32 = arith.constant 32 : index
    %114 = vector.load %arg21[%c0_85, %c32] : memref<4x352xf32, #tpu.memory_space<vmem>>, vector<4x256xf32>
    %c2_86 = arith.constant 2 : index
    %c0_87 = arith.constant 0 : index
    %c0_88 = arith.constant 0 : index
    %115 = vector.load %arg3[%c2_86, %c0_87, %c0_88] : memref<7x1x256xf32, #tpu.memory_space<vmem>>, vector<1x1x256xf32>
    %116 = vector.shape_cast %115 : vector<1x1x256xf32> to vector<1x256xf32>
    %117 = vector.broadcast %116 : vector<1x256xf32> to vector<4x256xf32>
    %118 = arith.mulf %114, %117 : vector<4x256xf32>
    %c2_89 = arith.constant 2 : index
    %c0_90 = arith.constant 0 : index
    %c0_91 = arith.constant 0 : index
    %119 = vector.load %arg8[%c2_89, %c0_90, %c0_91] : memref<7x4x4xbf16, #tpu.memory_space<vmem>>, vector<1x4x4xbf16>
    %120 = vector.shape_cast %119 : vector<1x4x4xbf16> to vector<4x4xbf16>
    %121 = arith.truncf %118 : vector<4x256xf32> to vector<4x256xbf16>
    %cst_92 = arith.constant dense<0.000000e+00> : vector<4x256xf32>
    %122 = tpu.matmul %120, %121, %cst_92 {dimension_numbers = #tpu.dot_dimension_numbers<[1], [0], [0], [1], [0, 0, 1, 1], [], []>} : vector<4x4xbf16>, vector<4x256xbf16>, vector<4x256xf32> -> vector<4x256xf32>
    %123 = arith.addf %113, %122 : vector<4x256xf32>
    %c0_93 = arith.constant 0 : index
    %c48_94 = arith.constant 48 : index
    %124 = vector.load %arg21[%c0_93, %c48_94] : memref<4x352xf32, #tpu.memory_space<vmem>>, vector<4x256xf32>
    %c3_95 = arith.constant 3 : index
    %c0_96 = arith.constant 0 : index
    %c0_97 = arith.constant 0 : index
    %125 = vector.load %arg8[%c3_95, %c0_96, %c0_97] : memref<7x4x4xbf16, #tpu.memory_space<vmem>>, vector<1x4x4xbf16>
    %126 = vector.shape_cast %125 : vector<1x4x4xbf16> to vector<4x4xbf16>
    %127 = arith.truncf %124 : vector<4x256xf32> to vector<4x256xbf16>
    %cst_98 = arith.constant dense<0.000000e+00> : vector<4x256xf32>
    %128 = tpu.matmul %126, %127, %cst_98 {dimension_numbers = #tpu.dot_dimension_numbers<[1], [0], [0], [1], [0, 0, 1, 1], [], []>} : vector<4x4xbf16>, vector<4x256xbf16>, vector<4x256xf32> -> vector<4x256xf32>
    %129 = arith.addf %123, %128 : vector<4x256xf32>
    %c0_99 = arith.constant 0 : index
    %c64 = arith.constant 64 : index
    %130 = vector.load %arg21[%c0_99, %c64] : memref<4x352xf32, #tpu.memory_space<vmem>>, vector<4x256xf32>
    %c4_100 = arith.constant 4 : index
    %c0_101 = arith.constant 0 : index
    %c0_102 = arith.constant 0 : index
    %131 = vector.load %arg3[%c4_100, %c0_101, %c0_102] : memref<7x1x256xf32, #tpu.memory_space<vmem>>, vector<1x1x256xf32>
    %132 = vector.shape_cast %131 : vector<1x1x256xf32> to vector<1x256xf32>
    %133 = vector.broadcast %132 : vector<1x256xf32> to vector<4x256xf32>
    %134 = arith.mulf %130, %133 : vector<4x256xf32>
    %c4_103 = arith.constant 4 : index
    %c0_104 = arith.constant 0 : index
    %c0_105 = arith.constant 0 : index
    %135 = vector.load %arg8[%c4_103, %c0_104, %c0_105] : memref<7x4x4xbf16, #tpu.memory_space<vmem>>, vector<1x4x4xbf16>
    %136 = vector.shape_cast %135 : vector<1x4x4xbf16> to vector<4x4xbf16>
    %137 = arith.truncf %134 : vector<4x256xf32> to vector<4x256xbf16>
    %cst_106 = arith.constant dense<0.000000e+00> : vector<4x256xf32>
    %138 = tpu.matmul %136, %137, %cst_106 {dimension_numbers = #tpu.dot_dimension_numbers<[1], [0], [0], [1], [0, 0, 1, 1], [], []>} : vector<4x4xbf16>, vector<4x256xbf16>, vector<4x256xf32> -> vector<4x256xf32>
    %139 = arith.addf %129, %138 : vector<4x256xf32>
    %c0_107 = arith.constant 0 : index
    %c80 = arith.constant 80 : index
    %140 = vector.load %arg21[%c0_107, %c80] : memref<4x352xf32, #tpu.memory_space<vmem>>, vector<4x256xf32>
    %c5_108 = arith.constant 5 : index
    %c0_109 = arith.constant 0 : index
    %c0_110 = arith.constant 0 : index
    %141 = vector.load %arg3[%c5_108, %c0_109, %c0_110] : memref<7x1x256xf32, #tpu.memory_space<vmem>>, vector<1x1x256xf32>
    %142 = vector.shape_cast %141 : vector<1x1x256xf32> to vector<1x256xf32>
    %143 = vector.broadcast %142 : vector<1x256xf32> to vector<4x256xf32>
    %144 = arith.mulf %140, %143 : vector<4x256xf32>
    %c5_111 = arith.constant 5 : index
    %c0_112 = arith.constant 0 : index
    %c0_113 = arith.constant 0 : index
    %145 = vector.load %arg8[%c5_111, %c0_112, %c0_113] : memref<7x4x4xbf16, #tpu.memory_space<vmem>>, vector<1x4x4xbf16>
    %146 = vector.shape_cast %145 : vector<1x4x4xbf16> to vector<4x4xbf16>
    %147 = arith.truncf %144 : vector<4x256xf32> to vector<4x256xbf16>
    %cst_114 = arith.constant dense<0.000000e+00> : vector<4x256xf32>
    %148 = tpu.matmul %146, %147, %cst_114 {dimension_numbers = #tpu.dot_dimension_numbers<[1], [0], [0], [1], [0, 0, 1, 1], [], []>} : vector<4x4xbf16>, vector<4x256xbf16>, vector<4x256xf32> -> vector<4x256xf32>
    %149 = arith.addf %139, %148 : vector<4x256xf32>
    %c0_115 = arith.constant 0 : index
    %c96 = arith.constant 96 : index
    %150 = vector.load %arg21[%c0_115, %c96] : memref<4x352xf32, #tpu.memory_space<vmem>>, vector<4x256xf32>
    %c6_116 = arith.constant 6 : index
    %c0_117 = arith.constant 0 : index
    %c0_118 = arith.constant 0 : index
    %151 = vector.load %arg3[%c6_116, %c0_117, %c0_118] : memref<7x1x256xf32, #tpu.memory_space<vmem>>, vector<1x1x256xf32>
    %152 = vector.shape_cast %151 : vector<1x1x256xf32> to vector<1x256xf32>
    %153 = vector.broadcast %152 : vector<1x256xf32> to vector<4x256xf32>
    %154 = arith.mulf %150, %153 : vector<4x256xf32>
    %c6_119 = arith.constant 6 : index
    %c0_120 = arith.constant 0 : index
    %c0_121 = arith.constant 0 : index
    %155 = vector.load %arg8[%c6_119, %c0_120, %c0_121] : memref<7x4x4xbf16, #tpu.memory_space<vmem>>, vector<1x4x4xbf16>
    %156 = vector.shape_cast %155 : vector<1x4x4xbf16> to vector<4x4xbf16>
    %157 = arith.truncf %154 : vector<4x256xf32> to vector<4x256xbf16>
    %cst_122 = arith.constant dense<0.000000e+00> : vector<4x256xf32>
    %158 = tpu.matmul %156, %157, %cst_122 {dimension_numbers = #tpu.dot_dimension_numbers<[1], [0], [0], [1], [0, 0, 1, 1], [], []>} : vector<4x4xbf16>, vector<4x256xbf16>, vector<4x256xf32> -> vector<4x256xf32>
    %159 = arith.addf %149, %158 : vector<4x256xf32>
    %c0_123 = arith.constant 0 : index
    %c0_124 = arith.constant 0 : index
    %160 = vector.load %arg9[%c0_123, %c0_124] : memref<4x1xf32, #tpu.memory_space<vmem>>, vector<4x1xf32>
    %161 = vector.broadcast %160 : vector<4x1xf32> to vector<4x256xf32>
    %162 = arith.addf %159, %161 : vector<4x256xf32>
    %cst_125 = arith.constant 0.000000e+00 : f32
    %cst_126 = arith.constant 6.000000e+00 : f32
    %163 = vector.broadcast %cst_125 : f32 to vector<4x256xf32>
    %164 = arith.maximumf %163, %162 : vector<4x256xf32>
    %165 = vector.broadcast %cst_126 : f32 to vector<4x256xf32>
    %166 = arith.minimumf %165, %164 : vector<4x256xf32>
    %c0_127 = arith.constant 0 : index
    %c48_128 = arith.constant 48 : index
    %167 = vector.load %arg21[%c0_127, %c48_128] : memref<4x352xf32, #tpu.memory_space<vmem>>, vector<4x256xf32>
    tpu.vector_store %arg21[%c0_127, %c48_128], %16 {strides = array<i32>} : memref<4x352xf32, #tpu.memory_space<vmem>>, vector<4x256xf32>,
    %cst_129 = arith.constant 0.000000e+00 : f32
    %168 = vector.broadcast %cst_129 : f32 to vector<4x256xf32>
    %c0_130 = arith.constant 0 : index
    %c45_131 = arith.constant 45 : index
    %169 = vector.load %arg21[%c0_130, %c45_131] : memref<4x352xf32, #tpu.memory_space<vmem>>, vector<4x256xf32>
    %c0_132 = arith.constant 0 : index
    %c0_133 = arith.constant 0 : index
    %c0_134 = arith.constant 0 : index
    %170 = vector.load %arg2[%c0_132, %c0_133, %c0_134] : memref<7x1x256xf32, #tpu.memory_space<vmem>>, vector<1x1x256xf32>
    %171 = vector.shape_cast %170 : vector<1x1x256xf32> to vector<1x256xf32>
    %172 = vector.broadcast %171 : vector<1x256xf32> to vector<4x256xf32>
    %173 = arith.mulf %169, %172 : vector<4x256xf32>
    %c0_135 = arith.constant 0 : index
    %c0_136 = arith.constant 0 : index
    %c0_137 = arith.constant 0 : index
    %174 = vector.load %arg10[%c0_135, %c0_136, %c0_137] : memref<7x4x4xbf16, #tpu.memory_space<vmem>>, vector<1x4x4xbf16>
    %175 = vector.shape_cast %174 : vector<1x4x4xbf16> to vector<4x4xbf16>
    %176 = arith.truncf %173 : vector<4x256xf32> to vector<4x256xbf16>
    %cst_138 = arith.constant dense<0.000000e+00> : vector<4x256xf32>
    %177 = tpu.matmul %175, %176, %cst_138 {dimension_numbers = #tpu.dot_dimension_numbers<[1], [0], [0], [1], [0, 0, 1, 1], [], []>} : vector<4x4xbf16>, vector<4x256xbf16>, vector<4x256xf32> -> vector<4x256xf32>
    %178 = arith.addf %168, %177 : vector<4x256xf32>
    %c0_139 = arith.constant 0 : index
    %c46_140 = arith.constant 46 : index
    %179 = vector.load %arg21[%c0_139, %c46_140] : memref<4x352xf32, #tpu.memory_space<vmem>>, vector<4x256xf32>
    %c1_141 = arith.constant 1 : index
    %c0_142 = arith.constant 0 : index
    %c0_143 = arith.constant 0 : index
    %180 = vector.load %arg2[%c1_141, %c0_142, %c0_143] : memref<7x1x256xf32, #tpu.memory_space<vmem>>, vector<1x1x256xf32>
    %181 = vector.shape_cast %180 : vector<1x1x256xf32> to vector<1x256xf32>
    %182 = vector.broadcast %181 : vector<1x256xf32> to vector<4x256xf32>
    %183 = arith.mulf %179, %182 : vector<4x256xf32>
    %c1_144 = arith.constant 1 : index
    %c0_145 = arith.constant 0 : index
    %c0_146 = arith.constant 0 : index
    %184 = vector.load %arg10[%c1_144, %c0_145, %c0_146] : memref<7x4x4xbf16, #tpu.memory_space<vmem>>, vector<1x4x4xbf16>
    %185 = vector.shape_cast %184 : vector<1x4x4xbf16> to vector<4x4xbf16>
    %186 = arith.truncf %183 : vector<4x256xf32> to vector<4x256xbf16>
    %cst_147 = arith.constant dense<0.000000e+00> : vector<4x256xf32>
    %187 = tpu.matmul %185, %186, %cst_147 {dimension_numbers = #tpu.dot_dimension_numbers<[1], [0], [0], [1], [0, 0, 1, 1], [], []>} : vector<4x4xbf16>, vector<4x256xbf16>, vector<4x256xf32> -> vector<4x256xf32>
    %188 = arith.addf %178, %187 : vector<4x256xf32>
    %c0_148 = arith.constant 0 : index
    %c47_149 = arith.constant 47 : index
    %189 = vector.load %arg21[%c0_148, %c47_149] : memref<4x352xf32, #tpu.memory_space<vmem>>, vector<4x256xf32>
    %c2_150 = arith.constant 2 : index
    %c0_151 = arith.constant 0 : index
    %c0_152 = arith.constant 0 : index
    %190 = vector.load %arg2[%c2_150, %c0_151, %c0_152] : memref<7x1x256xf32, #tpu.memory_space<vmem>>, vector<1x1x256xf32>
    %191 = vector.shape_cast %190 : vector<1x1x256xf32> to vector<1x256xf32>
    %192 = vector.broadcast %191 : vector<1x256xf32> to vector<4x256xf32>
    %193 = arith.mulf %189, %192 : vector<4x256xf32>
    %c2_153 = arith.constant 2 : index
    %c0_154 = arith.constant 0 : index
    %c0_155 = arith.constant 0 : index
    %194 = vector.load %arg10[%c2_153, %c0_154, %c0_155] : memref<7x4x4xbf16, #tpu.memory_space<vmem>>, vector<1x4x4xbf16>
    %195 = vector.shape_cast %194 : vector<1x4x4xbf16> to vector<4x4xbf16>
    %196 = arith.truncf %193 : vector<4x256xf32> to vector<4x256xbf16>
    %cst_156 = arith.constant dense<0.000000e+00> : vector<4x256xf32>
    %197 = tpu.matmul %195, %196, %cst_156 {dimension_numbers = #tpu.dot_dimension_numbers<[1], [0], [0], [1], [0, 0, 1, 1], [], []>} : vector<4x4xbf16>, vector<4x256xbf16>, vector<4x256xf32> -> vector<4x256xf32>
    %198 = arith.addf %188, %197 : vector<4x256xf32>
    %c0_157 = arith.constant 0 : index
    %c48_158 = arith.constant 48 : index
    %199 = vector.load %arg21[%c0_157, %c48_158] : memref<4x352xf32, #tpu.memory_space<vmem>>, vector<4x256xf32>
    %c3_159 = arith.constant 3 : index
    %c0_160 = arith.constant 0 : index
    %c0_161 = arith.constant 0 : index
    %200 = vector.load %arg10[%c3_159, %c0_160, %c0_161] : memref<7x4x4xbf16, #tpu.memory_space<vmem>>, vector<1x4x4xbf16>
    %201 = vector.shape_cast %200 : vector<1x4x4xbf16> to vector<4x4xbf16>
    %202 = arith.truncf %199 : vector<4x256xf32> to vector<4x256xbf16>
    %cst_162 = arith.constant dense<0.000000e+00> : vector<4x256xf32>
    %203 = tpu.matmul %201, %202, %cst_162 {dimension_numbers = #tpu.dot_dimension_numbers<[1], [0], [0], [1], [0, 0, 1, 1], [], []>} : vector<4x4xbf16>, vector<4x256xbf16>, vector<4x256xf32> -> vector<4x256xf32>
    %204 = arith.addf %198, %203 : vector<4x256xf32>
    %c0_163 = arith.constant 0 : index
    %c49_164 = arith.constant 49 : index
    %205 = vector.load %arg21[%c0_163, %c49_164] : memref<4x352xf32, #tpu.memory_space<vmem>>, vector<4x256xf32>
    %c4_165 = arith.constant 4 : index
    %c0_166 = arith.constant 0 : index
    %c0_167 = arith.constant 0 : index
    %206 = vector.load %arg2[%c4_165, %c0_166, %c0_167] : memref<7x1x256xf32, #tpu.memory_space<vmem>>, vector<1x1x256xf32>
    %207 = vector.shape_cast %206 : vector<1x1x256xf32> to vector<1x256xf32>
    %208 = vector.broadcast %207 : vector<1x256xf32> to vector<4x256xf32>
    %209 = arith.mulf %205, %208 : vector<4x256xf32>
    %c4_168 = arith.constant 4 : index
    %c0_169 = arith.constant 0 : index
    %c0_170 = arith.constant 0 : index
    %210 = vector.load %arg10[%c4_168, %c0_169, %c0_170] : memref<7x4x4xbf16, #tpu.memory_space<vmem>>, vector<1x4x4xbf16>
    %211 = vector.shape_cast %210 : vector<1x4x4xbf16> to vector<4x4xbf16>
    %212 = arith.truncf %209 : vector<4x256xf32> to vector<4x256xbf16>
    %cst_171 = arith.constant dense<0.000000e+00> : vector<4x256xf32>
    %213 = tpu.matmul %211, %212, %cst_171 {dimension_numbers = #tpu.dot_dimension_numbers<[1], [0], [0], [1], [0, 0, 1, 1], [], []>} : vector<4x4xbf16>, vector<4x256xbf16>, vector<4x256xf32> -> vector<4x256xf32>
    %214 = arith.addf %204, %213 : vector<4x256xf32>
    %c0_172 = arith.constant 0 : index
    %c50_173 = arith.constant 50 : index
    %215 = vector.load %arg21[%c0_172, %c50_173] : memref<4x352xf32, #tpu.memory_space<vmem>>, vector<4x256xf32>
    %c5_174 = arith.constant 5 : index
    %c0_175 = arith.constant 0 : index
    %c0_176 = arith.constant 0 : index
    %216 = vector.load %arg2[%c5_174, %c0_175, %c0_176] : memref<7x1x256xf32, #tpu.memory_space<vmem>>, vector<1x1x256xf32>
    %217 = vector.shape_cast %216 : vector<1x1x256xf32> to vector<1x256xf32>
    %218 = vector.broadcast %217 : vector<1x256xf32> to vector<4x256xf32>
    %219 = arith.mulf %215, %218 : vector<4x256xf32>
    %c5_177 = arith.constant 5 : index
    %c0_178 = arith.constant 0 : index
    %c0_179 = arith.constant 0 : index
    %220 = vector.load %arg10[%c5_177, %c0_178, %c0_179] : memref<7x4x4xbf16, #tpu.memory_space<vmem>>, vector<1x4x4xbf16>
    %221 = vector.shape_cast %220 : vector<1x4x4xbf16> to vector<4x4xbf16>
    %222 = arith.truncf %219 : vector<4x256xf32> to vector<4x256xbf16>
    %cst_180 = arith.constant dense<0.000000e+00> : vector<4x256xf32>
    %223 = tpu.matmul %221, %222, %cst_180 {dimension_numbers = #tpu.dot_dimension_numbers<[1], [0], [0], [1], [0, 0, 1, 1], [], []>} : vector<4x4xbf16>, vector<4x256xbf16>, vector<4x256xf32> -> vector<4x256xf32>
    %224 = arith.addf %214, %223 : vector<4x256xf32>
    %c0_181 = arith.constant 0 : index
    %c51_182 = arith.constant 51 : index
    %225 = vector.load %arg21[%c0_181, %c51_182] : memref<4x352xf32, #tpu.memory_space<vmem>>, vector<4x256xf32>
    %c6_183 = arith.constant 6 : index
    %c0_184 = arith.constant 0 : index
    %c0_185 = arith.constant 0 : index
    %226 = vector.load %arg2[%c6_183, %c0_184, %c0_185] : memref<7x1x256xf32, #tpu.memory_space<vmem>>, vector<1x1x256xf32>
    %227 = vector.shape_cast %226 : vector<1x1x256xf32> to vector<1x256xf32>
    %228 = vector.broadcast %227 : vector<1x256xf32> to vector<4x256xf32>
    %229 = arith.mulf %225, %228 : vector<4x256xf32>
    %c6_186 = arith.constant 6 : index
    %c0_187 = arith.constant 0 : index
    %c0_188 = arith.constant 0 : index
    %230 = vector.load %arg10[%c6_186, %c0_187, %c0_188] : memref<7x4x4xbf16, #tpu.memory_space<vmem>>, vector<1x4x4xbf16>
    %231 = vector.shape_cast %230 : vector<1x4x4xbf16> to vector<4x4xbf16>
    %232 = arith.truncf %229 : vector<4x256xf32> to vector<4x256xbf16>
    %cst_189 = arith.constant dense<0.000000e+00> : vector<4x256xf32>
    %233 = tpu.matmul %231, %232, %cst_189 {dimension_numbers = #tpu.dot_dimension_numbers<[1], [0], [0], [1], [0, 0, 1, 1], [], []>} : vector<4x4xbf16>, vector<4x256xbf16>, vector<4x256xf32> -> vector<4x256xf32>
    %234 = arith.addf %224, %233 : vector<4x256xf32>
    %c0_190 = arith.constant 0 : index
    %c0_191 = arith.constant 0 : index
    %235 = vector.load %arg11[%c0_190, %c0_191] : memref<4x1xf32, #tpu.memory_space<vmem>>, vector<4x1xf32>
    %236 = vector.broadcast %235 : vector<4x1xf32> to vector<4x256xf32>
    %237 = arith.addf %234, %236 : vector<4x256xf32>
    %cst_192 = arith.constant 0.000000e+00 : f32
    %cst_193 = arith.constant 6.000000e+00 : f32
    %238 = vector.broadcast %cst_192 : f32 to vector<4x256xf32>
    %239 = arith.maximumf %238, %237 : vector<4x256xf32>
    %240 = vector.broadcast %cst_193 : f32 to vector<4x256xf32>
    %241 = arith.minimumf %240, %239 : vector<4x256xf32>
    %c0_194 = arith.constant 0 : index
    %c48_195 = arith.constant 48 : index
    %242 = vector.load %arg21[%c0_194, %c48_195] : memref<4x352xf32, #tpu.memory_space<vmem>>, vector<4x256xf32>
    tpu.vector_store %arg21[%c0_194, %c48_195], %241 {strides = array<i32>} : memref<4x352xf32, #tpu.memory_space<vmem>>, vector<4x256xf32>,
    %cst_196 = arith.constant 0.000000e+00 : f32
    %243 = vector.broadcast %cst_196 : f32 to vector<4x256xf32>
    %c0_197 = arith.constant 0 : index
    %c0_198 = arith.constant 0 : index
    %244 = vector.load %arg21[%c0_197, %c0_198] : memref<4x352xf32, #tpu.memory_space<vmem>>, vector<4x256xf32>
    %c0_199 = arith.constant 0 : index
    %c0_200 = arith.constant 0 : index
    %c0_201 = arith.constant 0 : index
    %245 = vector.load %arg3[%c0_199, %c0_200, %c0_201] : memref<7x1x256xf32, #tpu.memory_space<vmem>>, vector<1x1x256xf32>
    %246 = vector.shape_cast %245 : vector<1x1x256xf32> to vector<1x256xf32>
    %247 = vector.broadcast %246 : vector<1x256xf32> to vector<4x256xf32>
    %248 = arith.mulf %244, %247 : vector<4x256xf32>
    %c0_202 = arith.constant 0 : index
    %c0_203 = arith.constant 0 : index
    %c0_204 = arith.constant 0 : index
    %249 = vector.load %arg12[%c0_202, %c0_203, %c0_204] : memref<7x4x4xbf16, #tpu.memory_space<vmem>>, vector<1x4x4xbf16>
    %250 = vector.shape_cast %249 : vector<1x4x4xbf16> to vector<4x4xbf16>
    %251 = arith.truncf %248 : vector<4x256xf32> to vector<4x256xbf16>
    %cst_205 = arith.constant dense<0.000000e+00> : vector<4x256xf32>
    %252 = tpu.matmul %250, %251, %cst_205 {dimension_numbers = #tpu.dot_dimension_numbers<[1], [0], [0], [1], [0, 0, 1, 1], [], []>} : vector<4x4xbf16>, vector<4x256xbf16>, vector<4x256xf32> -> vector<4x256xf32>
    %253 = arith.addf %243, %252 : vector<4x256xf32>
    %c0_206 = arith.constant 0 : index
    %c16_207 = arith.constant 16 : index
    %254 = vector.load %arg21[%c0_206, %c16_207] : memref<4x352xf32, #tpu.memory_space<vmem>>, vector<4x256xf32>
    %c1_208 = arith.constant 1 : index
    %c0_209 = arith.constant 0 : index
    %c0_210 = arith.constant 0 : index
    %255 = vector.load %arg3[%c1_208, %c0_209, %c0_210] : memref<7x1x256xf32, #tpu.memory_space<vmem>>, vector<1x1x256xf32>
    %256 = vector.shape_cast %255 : vector<1x1x256xf32> to vector<1x256xf32>
    %257 = vector.broadcast %256 : vector<1x256xf32> to vector<4x256xf32>
    %258 = arith.mulf %254, %257 : vector<4x256xf32>
    %c1_211 = arith.constant 1 : index
    %c0_212 = arith.constant 0 : index
    %c0_213 = arith.constant 0 : index
    %259 = vector.load %arg12[%c1_211, %c0_212, %c0_213] : memref<7x4x4xbf16, #tpu.memory_space<vmem>>, vector<1x4x4xbf16>
    %260 = vector.shape_cast %259 : vector<1x4x4xbf16> to vector<4x4xbf16>
    %261 = arith.truncf %258 : vector<4x256xf32> to vector<4x256xbf16>
    %cst_214 = arith.constant dense<0.000000e+00> : vector<4x256xf32>
    %262 = tpu.matmul %260, %261, %cst_214 {dimension_numbers = #tpu.dot_dimension_numbers<[1], [0], [0], [1], [0, 0, 1, 1], [], []>} : vector<4x4xbf16>, vector<4x256xbf16>, vector<4x256xf32> -> vector<4x256xf32>
    %263 = arith.addf %253, %262 : vector<4x256xf32>
    %c0_215 = arith.constant 0 : index
    %c32_216 = arith.constant 32 : index
    %264 = vector.load %arg21[%c0_215, %c32_216] : memref<4x352xf32, #tpu.memory_space<vmem>>, vector<4x256xf32>
    %c2_217 = arith.constant 2 : index
    %c0_218 = arith.constant 0 : index
    %c0_219 = arith.constant 0 : index
    %265 = vector.load %arg3[%c2_217, %c0_218, %c0_219] : memref<7x1x256xf32, #tpu.memory_space<vmem>>, vector<1x1x256xf32>
    %266 = vector.shape_cast %265 : vector<1x1x256xf32> to vector<1x256xf32>
    %267 = vector.broadcast %266 : vector<1x256xf32> to vector<4x256xf32>
    %268 = arith.mulf %264, %267 : vector<4x256xf32>
    %c2_220 = arith.constant 2 : index
    %c0_221 = arith.constant 0 : index
    %c0_222 = arith.constant 0 : index
    %269 = vector.load %arg12[%c2_220, %c0_221, %c0_222] : memref<7x4x4xbf16, #tpu.memory_space<vmem>>, vector<1x4x4xbf16>
    %270 = vector.shape_cast %269 : vector<1x4x4xbf16> to vector<4x4xbf16>
    %271 = arith.truncf %268 : vector<4x256xf32> to vector<4x256xbf16>
    %cst_223 = arith.constant dense<0.000000e+00> : vector<4x256xf32>
    %272 = tpu.matmul %270, %271, %cst_223 {dimension_numbers = #tpu.dot_dimension_numbers<[1], [0], [0], [1], [0, 0, 1, 1], [], []>} : vector<4x4xbf16>, vector<4x256xbf16>, vector<4x256xf32> -> vector<4x256xf32>
    %273 = arith.addf %263, %272 : vector<4x256xf32>
    %c0_224 = arith.constant 0 : index
    %c48_225 = arith.constant 48 : index
    %274 = vector.load %arg21[%c0_224, %c48_225] : memref<4x352xf32, #tpu.memory_space<vmem>>, vector<4x256xf32>
    %c3_226 = arith.constant 3 : index
    %c0_227 = arith.constant 0 : index
    %c0_228 = arith.constant 0 : index
    %275 = vector.load %arg12[%c3_226, %c0_227, %c0_228] : memref<7x4x4xbf16, #tpu.memory_space<vmem>>, vector<1x4x4xbf16>
    %276 = vector.shape_cast %275 : vector<1x4x4xbf16> to vector<4x4xbf16>
    %277 = arith.truncf %274 : vector<4x256xf32> to vector<4x256xbf16>
    %cst_229 = arith.constant dense<0.000000e+00> : vector<4x256xf32>
    %278 = tpu.matmul %276, %277, %cst_229 {dimension_numbers = #tpu.dot_dimension_numbers<[1], [0], [0], [1], [0, 0, 1, 1], [], []>} : vector<4x4xbf16>, vector<4x256xbf16>, vector<4x256xf32> -> vector<4x256xf32>
    %279 = arith.addf %273, %278 : vector<4x256xf32>
    %c0_230 = arith.constant 0 : index
    %c64_231 = arith.constant 64 : index
    %280 = vector.load %arg21[%c0_230, %c64_231] : memref<4x352xf32, #tpu.memory_space<vmem>>, vector<4x256xf32>
    %c4_232 = arith.constant 4 : index
    %c0_233 = arith.constant 0 : index
    %c0_234 = arith.constant 0 : index
    %281 = vector.load %arg3[%c4_232, %c0_233, %c0_234] : memref<7x1x256xf32, #tpu.memory_space<vmem>>, vector<1x1x256xf32>
    %282 = vector.shape_cast %281 : vector<1x1x256xf32> to vector<1x256xf32>
    %283 = vector.broadcast %282 : vector<1x256xf32> to vector<4x256xf32>
    %284 = arith.mulf %280, %283 : vector<4x256xf32>
    %c4_235 = arith.constant 4 : index
    %c0_236 = arith.constant 0 : index
    %c0_237 = arith.constant 0 : index
    %285 = vector.load %arg12[%c4_235, %c0_236, %c0_237] : memref<7x4x4xbf16, #tpu.memory_space<vmem>>, vector<1x4x4xbf16>
    %286 = vector.shape_cast %285 : vector<1x4x4xbf16> to vector<4x4xbf16>
    %287 = arith.truncf %284 : vector<4x256xf32> to vector<4x256xbf16>
    %cst_238 = arith.constant dense<0.000000e+00> : vector<4x256xf32>
    %288 = tpu.matmul %286, %287, %cst_238 {dimension_numbers = #tpu.dot_dimension_numbers<[1], [0], [0], [1], [0, 0, 1, 1], [], []>} : vector<4x4xbf16>, vector<4x256xbf16>, vector<4x256xf32> -> vector<4x256xf32>
    %289 = arith.addf %279, %288 : vector<4x256xf32>
    %c0_239 = arith.constant 0 : index
    %c80_240 = arith.constant 80 : index
    %290 = vector.load %arg21[%c0_239, %c80_240] : memref<4x352xf32, #tpu.memory_space<vmem>>, vector<4x256xf32>
    %c5_241 = arith.constant 5 : index
    %c0_242 = arith.constant 0 : index
    %c0_243 = arith.constant 0 : index
    %291 = vector.load %arg3[%c5_241, %c0_242, %c0_243] : memref<7x1x256xf32, #tpu.memory_space<vmem>>, vector<1x1x256xf32>
    %292 = vector.shape_cast %291 : vector<1x1x256xf32> to vector<1x256xf32>
    %293 = vector.broadcast %292 : vector<1x256xf32> to vector<4x256xf32>
    %294 = arith.mulf %290, %293 : vector<4x256xf32>
    %c5_244 = arith.constant 5 : index
    %c0_245 = arith.constant 0 : index
    %c0_246 = arith.constant 0 : index
    %295 = vector.load %arg12[%c5_244, %c0_245, %c0_246] : memref<7x4x4xbf16, #tpu.memory_space<vmem>>, vector<1x4x4xbf16>
    %296 = vector.shape_cast %295 : vector<1x4x4xbf16> to vector<4x4xbf16>
    %297 = arith.truncf %294 : vector<4x256xf32> to vector<4x256xbf16>
    %cst_247 = arith.constant dense<0.000000e+00> : vector<4x256xf32>
    %298 = tpu.matmul %296, %297, %cst_247 {dimension_numbers = #tpu.dot_dimension_numbers<[1], [0], [0], [1], [0, 0, 1, 1], [], []>} : vector<4x4xbf16>, vector<4x256xbf16>, vector<4x256xf32> -> vector<4x256xf32>
    %299 = arith.addf %289, %298 : vector<4x256xf32>
    %c0_248 = arith.constant 0 : index
    %c96_249 = arith.constant 96 : index
    %300 = vector.load %arg21[%c0_248, %c96_249] : memref<4x352xf32, #tpu.memory_space<vmem>>, vector<4x256xf32>
    %c6_250 = arith.constant 6 : index
    %c0_251 = arith.constant 0 : index
    %c0_252 = arith.constant 0 : index
    %301 = vector.load %arg3[%c6_250, %c0_251, %c0_252] : memref<7x1x256xf32, #tpu.memory_space<vmem>>, vector<1x1x256xf32>
    %302 = vector.shape_cast %301 : vector<1x1x256xf32> to vector<1x256xf32>
    %303 = vector.broadcast %302 : vector<1x256xf32> to vector<4x256xf32>
    %304 = arith.mulf %300, %303 : vector<4x256xf32>
    %c6_253 = arith.constant 6 : index
    %c0_254 = arith.constant 0 : index
    %c0_255 = arith.constant 0 : index
    %305 = vector.load %arg12[%c6_253, %c0_254, %c0_255] : memref<7x4x4xbf16, #tpu.memory_space<vmem>>, vector<1x4x4xbf16>
    %306 = vector.shape_cast %305 : vector<1x4x4xbf16> to vector<4x4xbf16>
    %307 = arith.truncf %304 : vector<4x256xf32> to vector<4x256xbf16>
    %cst_256 = arith.constant dense<0.000000e+00> : vector<4x256xf32>
    %308 = tpu.matmul %306, %307, %cst_256 {dimension_numbers = #tpu.dot_dimension_numbers<[1], [0], [0], [1], [0, 0, 1, 1], [], []>} : vector<4x4xbf16>, vector<4x256xbf16>, vector<4x256xf32> -> vector<4x256xf32>
    %309 = arith.addf %299, %308 : vector<4x256xf32>
    %c0_257 = arith.constant 0 : index
    %c0_258 = arith.constant 0 : index
    %310 = vector.load %arg13[%c0_257, %c0_258] : memref<4x1xf32, #tpu.memory_space<vmem>>, vector<4x1xf32>
    %311 = vector.broadcast %310 : vector<4x1xf32> to vector<4x256xf32>
    %312 = arith.addf %309, %311 : vector<4x256xf32>
    %cst_259 = arith.constant 0.000000e+00 : f32
    %cst_260 = arith.constant 6.000000e+00 : f32
    %313 = vector.broadcast %cst_259 : f32 to vector<4x256xf32>
    %314 = arith.maximumf %313, %312 : vector<4x256xf32>
    %315 = vector.broadcast %cst_260 : f32 to vector<4x256xf32>
    %316 = arith.minimumf %315, %314 : vector<4x256xf32>
    %c0_261 = arith.constant 0 : index
    %c48_262 = arith.constant 48 : index
    %317 = vector.load %arg21[%c0_261, %c48_262] : memref<4x352xf32, #tpu.memory_space<vmem>>, vector<4x256xf32>
    tpu.vector_store %arg21[%c0_261, %c48_262], %316 {strides = array<i32>} : memref<4x352xf32, #tpu.memory_space<vmem>>, vector<4x256xf32>,
    %cst_263 = arith.constant 0.000000e+00 : f32
    %318 = vector.broadcast %cst_263 : f32 to vector<4x256xf32>
    %c0_264 = arith.constant 0 : index
    %c45_265 = arith.constant 45 : index
    %319 = vector.load %arg21[%c0_264, %c45_265] : memref<4x352xf32, #tpu.memory_space<vmem>>, vector<4x256xf32>
    %c0_266 = arith.constant 0 : index
    %c0_267 = arith.constant 0 : index
    %c0_268 = arith.constant 0 : index
    %320 = vector.load %arg2[%c0_266, %c0_267, %c0_268] : memref<7x1x256xf32, #tpu.memory_space<vmem>>, vector<1x1x256xf32>
    %321 = vector.shape_cast %320 : vector<1x1x256xf32> to vector<1x256xf32>
    %322 = vector.broadcast %321 : vector<1x256xf32> to vector<4x256xf32>
    %323 = arith.mulf %319, %322 : vector<4x256xf32>
    %c0_269 = arith.constant 0 : index
    %c0_270 = arith.constant 0 : index
    %c0_271 = arith.constant 0 : index
    %324 = vector.load %arg14[%c0_269, %c0_270, %c0_271] : memref<7x4x4xbf16, #tpu.memory_space<vmem>>, vector<1x4x4xbf16>
    %325 = vector.shape_cast %324 : vector<1x4x4xbf16> to vector<4x4xbf16>
    %326 = arith.truncf %323 : vector<4x256xf32> to vector<4x256xbf16>
    %cst_272 = arith.constant dense<0.000000e+00> : vector<4x256xf32>
    %327 = tpu.matmul %325, %326, %cst_272 {dimension_numbers = #tpu.dot_dimension_numbers<[1], [0], [0], [1], [0, 0, 1, 1], [], []>} : vector<4x4xbf16>, vector<4x256xbf16>, vector<4x256xf32> -> vector<4x256xf32>
    %328 = arith.addf %318, %327 : vector<4x256xf32>
    %c0_273 = arith.constant 0 : index
    %c46_274 = arith.constant 46 : index
    %329 = vector.load %arg21[%c0_273, %c46_274] : memref<4x352xf32, #tpu.memory_space<vmem>>, vector<4x256xf32>
    %c1_275 = arith.constant 1 : index
    %c0_276 = arith.constant 0 : index
    %c0_277 = arith.constant 0 : index
    %330 = vector.load %arg2[%c1_275, %c0_276, %c0_277] : memref<7x1x256xf32, #tpu.memory_space<vmem>>, vector<1x1x256xf32>
    %331 = vector.shape_cast %330 : vector<1x1x256xf32> to vector<1x256xf32>
    %332 = vector.broadcast %331 : vector<1x256xf32> to vector<4x256xf32>
    %333 = arith.mulf %329, %332 : vector<4x256xf32>
    %c1_278 = arith.constant 1 : index
    %c0_279 = arith.constant 0 : index
    %c0_280 = arith.constant 0 : index
    %334 = vector.load %arg14[%c1_278, %c0_279, %c0_280] : memref<7x4x4xbf16, #tpu.memory_space<vmem>>, vector<1x4x4xbf16>
    %335 = vector.shape_cast %334 : vector<1x4x4xbf16> to vector<4x4xbf16>
    %336 = arith.truncf %333 : vector<4x256xf32> to vector<4x256xbf16>
    %cst_281 = arith.constant dense<0.000000e+00> : vector<4x256xf32>
    %337 = tpu.matmul %335, %336, %cst_281 {dimension_numbers = #tpu.dot_dimension_numbers<[1], [0], [0], [1], [0, 0, 1, 1], [], []>} : vector<4x4xbf16>, vector<4x256xbf16>, vector<4x256xf32> -> vector<4x256xf32>
    %338 = arith.addf %328, %337 : vector<4x256xf32>
    %c0_282 = arith.constant 0 : index
    %c47_283 = arith.constant 47 : index
    %339 = vector.load %arg21[%c0_282, %c47_283] : memref<4x352xf32, #tpu.memory_space<vmem>>, vector<4x256xf32>
    %c2_284 = arith.constant 2 : index
    %c0_285 = arith.constant 0 : index
    %c0_286 = arith.constant 0 : index
    %340 = vector.load %arg2[%c2_284, %c0_285, %c0_286] : memref<7x1x256xf32, #tpu.memory_space<vmem>>, vector<1x1x256xf32>
    %341 = vector.shape_cast %340 : vector<1x1x256xf32> to vector<1x256xf32>
    %342 = vector.broadcast %341 : vector<1x256xf32> to vector<4x256xf32>
    %343 = arith.mulf %339, %342 : vector<4x256xf32>
    %c2_287 = arith.constant 2 : index
    %c0_288 = arith.constant 0 : index
    %c0_289 = arith.constant 0 : index
    %344 = vector.load %arg14[%c2_287, %c0_288, %c0_289] : memref<7x4x4xbf16, #tpu.memory_space<vmem>>, vector<1x4x4xbf16>
    %345 = vector.shape_cast %344 : vector<1x4x4xbf16> to vector<4x4xbf16>
    %346 = arith.truncf %343 : vector<4x256xf32> to vector<4x256xbf16>
    %cst_290 = arith.constant dense<0.000000e+00> : vector<4x256xf32>
    %347 = tpu.matmul %345, %346, %cst_290 {dimension_numbers = #tpu.dot_dimension_numbers<[1], [0], [0], [1], [0, 0, 1, 1], [], []>} : vector<4x4xbf16>, vector<4x256xbf16>, vector<4x256xf32> -> vector<4x256xf32>
    %348 = arith.addf %338, %347 : vector<4x256xf32>
    %c0_291 = arith.constant 0 : index
    %c48_292 = arith.constant 48 : index
    %349 = vector.load %arg21[%c0_291, %c48_292] : memref<4x352xf32, #tpu.memory_space<vmem>>, vector<4x256xf32>
    %c3_293 = arith.constant 3 : index
    %c0_294 = arith.constant 0 : index
    %c0_295 = arith.constant 0 : index
    %350 = vector.load %arg14[%c3_293, %c0_294, %c0_295] : memref<7x4x4xbf16, #tpu.memory_space<vmem>>, vector<1x4x4xbf16>
    %351 = vector.shape_cast %350 : vector<1x4x4xbf16> to vector<4x4xbf16>
    %352 = arith.truncf %349 : vector<4x256xf32> to vector<4x256xbf16>
    %cst_296 = arith.constant dense<0.000000e+00> : vector<4x256xf32>
    %353 = tpu.matmul %351, %352, %cst_296 {dimension_numbers = #tpu.dot_dimension_numbers<[1], [0], [0], [1], [0, 0, 1, 1], [], []>} : vector<4x4xbf16>, vector<4x256xbf16>, vector<4x256xf32> -> vector<4x256xf32>
    %354 = arith.addf %348, %353 : vector<4x256xf32>
    %c0_297 = arith.constant 0 : index
    %c49_298 = arith.constant 49 : index
    %355 = vector.load %arg21[%c0_297, %c49_298] : memref<4x352xf32, #tpu.memory_space<vmem>>, vector<4x256xf32>
    %c4_299 = arith.constant 4 : index
    %c0_300 = arith.constant 0 : index
    %c0_301 = arith.constant 0 : index
    %356 = vector.load %arg2[%c4_299, %c0_300, %c0_301] : memref<7x1x256xf32, #tpu.memory_space<vmem>>, vector<1x1x256xf32>
    %357 = vector.shape_cast %356 : vector<1x1x256xf32> to vector<1x256xf32>
    %358 = vector.broadcast %357 : vector<1x256xf32> to vector<4x256xf32>
    %359 = arith.mulf %355, %358 : vector<4x256xf32>
    %c4_302 = arith.constant 4 : index
    %c0_303 = arith.constant 0 : index
    %c0_304 = arith.constant 0 : index
    %360 = vector.load %arg14[%c4_302, %c0_303, %c0_304] : memref<7x4x4xbf16, #tpu.memory_space<vmem>>, vector<1x4x4xbf16>
    %361 = vector.shape_cast %360 : vector<1x4x4xbf16> to vector<4x4xbf16>
    %362 = arith.truncf %359 : vector<4x256xf32> to vector<4x256xbf16>
    %cst_305 = arith.constant dense<0.000000e+00> : vector<4x256xf32>
    %363 = tpu.matmul %361, %362, %cst_305 {dimension_numbers = #tpu.dot_dimension_numbers<[1], [0], [0], [1], [0, 0, 1, 1], [], []>} : vector<4x4xbf16>, vector<4x256xbf16>, vector<4x256xf32> -> vector<4x256xf32>
    %364 = arith.addf %354, %363 : vector<4x256xf32>
    %c0_306 = arith.constant 0 : index
    %c50_307 = arith.constant 50 : index
    %365 = vector.load %arg21[%c0_306, %c50_307] : memref<4x352xf32, #tpu.memory_space<vmem>>, vector<4x256xf32>
    %c5_308 = arith.constant 5 : index
    %c0_309 = arith.constant 0 : index
    %c0_310 = arith.constant 0 : index
    %366 = vector.load %arg2[%c5_308, %c0_309, %c0_310] : memref<7x1x256xf32, #tpu.memory_space<vmem>>, vector<1x1x256xf32>
    %367 = vector.shape_cast %366 : vector<1x1x256xf32> to vector<1x256xf32>
    %368 = vector.broadcast %367 : vector<1x256xf32> to vector<4x256xf32>
    %369 = arith.mulf %365, %368 : vector<4x256xf32>
    %c5_311 = arith.constant 5 : index
    %c0_312 = arith.constant 0 : index
    %c0_313 = arith.constant 0 : index
    %370 = vector.load %arg14[%c5_311, %c0_312, %c0_313] : memref<7x4x4xbf16, #tpu.memory_space<vmem>>, vector<1x4x4xbf16>
    %371 = vector.shape_cast %370 : vector<1x4x4xbf16> to vector<4x4xbf16>
    %372 = arith.truncf %369 : vector<4x256xf32> to vector<4x256xbf16>
    %cst_314 = arith.constant dense<0.000000e+00> : vector<4x256xf32>
    %373 = tpu.matmul %371, %372, %cst_314 {dimension_numbers = #tpu.dot_dimension_numbers<[1], [0], [0], [1], [0, 0, 1, 1], [], []>} : vector<4x4xbf16>, vector<4x256xbf16>, vector<4x256xf32> -> vector<4x256xf32>
    %374 = arith.addf %364, %373 : vector<4x256xf32>
    %c0_315 = arith.constant 0 : index
    %c51_316 = arith.constant 51 : index
    %375 = vector.load %arg21[%c0_315, %c51_316] : memref<4x352xf32, #tpu.memory_space<vmem>>, vector<4x256xf32>
    %c6_317 = arith.constant 6 : index
    %c0_318 = arith.constant 0 : index
    %c0_319 = arith.constant 0 : index
    %376 = vector.load %arg2[%c6_317, %c0_318, %c0_319] : memref<7x1x256xf32, #tpu.memory_space<vmem>>, vector<1x1x256xf32>
    %377 = vector.shape_cast %376 : vector<1x1x256xf32> to vector<1x256xf32>
    %378 = vector.broadcast %377 : vector<1x256xf32> to vector<4x256xf32>
    %379 = arith.mulf %375, %378 : vector<4x256xf32>
    %c6_320 = arith.constant 6 : index
    %c0_321 = arith.constant 0 : index
    %c0_322 = arith.constant 0 : index
    %380 = vector.load %arg14[%c6_320, %c0_321, %c0_322] : memref<7x4x4xbf16, #tpu.memory_space<vmem>>, vector<1x4x4xbf16>
    %381 = vector.shape_cast %380 : vector<1x4x4xbf16> to vector<4x4xbf16>
    %382 = arith.truncf %379 : vector<4x256xf32> to vector<4x256xbf16>
    %cst_323 = arith.constant dense<0.000000e+00> : vector<4x256xf32>
    %383 = tpu.matmul %381, %382, %cst_323 {dimension_numbers = #tpu.dot_dimension_numbers<[1], [0], [0], [1], [0, 0, 1, 1], [], []>} : vector<4x4xbf16>, vector<4x256xbf16>, vector<4x256xf32> -> vector<4x256xf32>
    %384 = arith.addf %374, %383 : vector<4x256xf32>
    %c0_324 = arith.constant 0 : index
    %c0_325 = arith.constant 0 : index
    %385 = vector.load %arg15[%c0_324, %c0_325] : memref<4x1xf32, #tpu.memory_space<vmem>>, vector<4x1xf32>
    %386 = vector.broadcast %385 : vector<4x1xf32> to vector<4x256xf32>
    %387 = arith.addf %384, %386 : vector<4x256xf32>
    %cst_326 = arith.constant 0.000000e+00 : f32
    %cst_327 = arith.constant 6.000000e+00 : f32
    %388 = vector.broadcast %cst_326 : f32 to vector<4x256xf32>
    %389 = arith.maximumf %388, %387 : vector<4x256xf32>
    %390 = vector.broadcast %cst_327 : f32 to vector<4x256xf32>
    %391 = arith.minimumf %390, %389 : vector<4x256xf32>
    %c0_328 = arith.constant 0 : index
    %c48_329 = arith.constant 48 : index
    %392 = vector.load %arg21[%c0_328, %c48_329] : memref<4x352xf32, #tpu.memory_space<vmem>>, vector<4x256xf32>
    tpu.vector_store %arg21[%c0_328, %c48_329], %391 {strides = array<i32>} : memref<4x352xf32, #tpu.memory_space<vmem>>, vector<4x256xf32>,
    %cst_330 = arith.constant 0.000000e+00 : f32
    %393 = vector.broadcast %cst_330 : f32 to vector<4x256xf32>
    %c0_331 = arith.constant 0 : index
    %c0_332 = arith.constant 0 : index
    %394 = vector.load %arg21[%c0_331, %c0_332] : memref<4x352xf32, #tpu.memory_space<vmem>>, vector<4x256xf32>
    %c0_333 = arith.constant 0 : index
    %c0_334 = arith.constant 0 : index
    %c0_335 = arith.constant 0 : index
    %395 = vector.load %arg3[%c0_333, %c0_334, %c0_335] : memref<7x1x256xf32, #tpu.memory_space<vmem>>, vector<1x1x256xf32>
    %396 = vector.shape_cast %395 : vector<1x1x256xf32> to vector<1x256xf32>
    %397 = vector.broadcast %396 : vector<1x256xf32> to vector<4x256xf32>
    %398 = arith.mulf %394, %397 : vector<4x256xf32>
    %c0_336 = arith.constant 0 : index
    %c0_337 = arith.constant 0 : index
    %c0_338 = arith.constant 0 : index
    %399 = vector.load %arg16[%c0_336, %c0_337, %c0_338] : memref<7x4x4xbf16, #tpu.memory_space<vmem>>, vector<1x4x4xbf16>
    %400 = vector.shape_cast %399 : vector<1x4x4xbf16> to vector<4x4xbf16>
    %401 = arith.truncf %398 : vector<4x256xf32> to vector<4x256xbf16>
    %cst_339 = arith.constant dense<0.000000e+00> : vector<4x256xf32>
    %402 = tpu.matmul %400, %401, %cst_339 {dimension_numbers = #tpu.dot_dimension_numbers<[1], [0], [0], [1], [0, 0, 1, 1], [], []>} : vector<4x4xbf16>, vector<4x256xbf16>, vector<4x256xf32> -> vector<4x256xf32>
    %403 = arith.addf %393, %402 : vector<4x256xf32>
    %c0_340 = arith.constant 0 : index
    %c16_341 = arith.constant 16 : index
    %404 = vector.load %arg21[%c0_340, %c16_341] : memref<4x352xf32, #tpu.memory_space<vmem>>, vector<4x256xf32>
    %c1_342 = arith.constant 1 : index
    %c0_343 = arith.constant 0 : index
    %c0_344 = arith.constant 0 : index
    %405 = vector.load %arg3[%c1_342, %c0_343, %c0_344] : memref<7x1x256xf32, #tpu.memory_space<vmem>>, vector<1x1x256xf32>
    %406 = vector.shape_cast %405 : vector<1x1x256xf32> to vector<1x256xf32>
    %407 = vector.broadcast %406 : vector<1x256xf32> to vector<4x256xf32>
    %408 = arith.mulf %404, %407 : vector<4x256xf32>
    %c1_345 = arith.constant 1 : index
    %c0_346 = arith.constant 0 : index
    %c0_347 = arith.constant 0 : index
    %409 = vector.load %arg16[%c1_345, %c0_346, %c0_347] : memref<7x4x4xbf16, #tpu.memory_space<vmem>>, vector<1x4x4xbf16>
    %410 = vector.shape_cast %409 : vector<1x4x4xbf16> to vector<4x4xbf16>
    %411 = arith.truncf %408 : vector<4x256xf32> to vector<4x256xbf16>
    %cst_348 = arith.constant dense<0.000000e+00> : vector<4x256xf32>
    %412 = tpu.matmul %410, %411, %cst_348 {dimension_numbers = #tpu.dot_dimension_numbers<[1], [0], [0], [1], [0, 0, 1, 1], [], []>} : vector<4x4xbf16>, vector<4x256xbf16>, vector<4x256xf32> -> vector<4x256xf32>
    %413 = arith.addf %403, %412 : vector<4x256xf32>
    %c0_349 = arith.constant 0 : index
    %c32_350 = arith.constant 32 : index
    %414 = vector.load %arg21[%c0_349, %c32_350] : memref<4x352xf32, #tpu.memory_space<vmem>>, vector<4x256xf32>
    %c2_351 = arith.constant 2 : index
    %c0_352 = arith.constant 0 : index
    %c0_353 = arith.constant 0 : index
    %415 = vector.load %arg3[%c2_351, %c0_352, %c0_353] : memref<7x1x256xf32, #tpu.memory_space<vmem>>, vector<1x1x256xf32>
    %416 = vector.shape_cast %415 : vector<1x1x256xf32> to vector<1x256xf32>
    %417 = vector.broadcast %416 : vector<1x256xf32> to vector<4x256xf32>
    %418 = arith.mulf %414, %417 : vector<4x256xf32>
    %c2_354 = arith.constant 2 : index
    %c0_355 = arith.constant 0 : index
    %c0_356 = arith.constant 0 : index
    %419 = vector.load %arg16[%c2_354, %c0_355, %c0_356] : memref<7x4x4xbf16, #tpu.memory_space<vmem>>, vector<1x4x4xbf16>
    %420 = vector.shape_cast %419 : vector<1x4x4xbf16> to vector<4x4xbf16>
    %421 = arith.truncf %418 : vector<4x256xf32> to vector<4x256xbf16>
    %cst_357 = arith.constant dense<0.000000e+00> : vector<4x256xf32>
    %422 = tpu.matmul %420, %421, %cst_357 {dimension_numbers = #tpu.dot_dimension_numbers<[1], [0], [0], [1], [0, 0, 1, 1], [], []>} : vector<4x4xbf16>, vector<4x256xbf16>, vector<4x256xf32> -> vector<4x256xf32>
    %423 = arith.addf %413, %422 : vector<4x256xf32>
    %c0_358 = arith.constant 0 : index
    %c48_359 = arith.constant 48 : index
    %424 = vector.load %arg21[%c0_358, %c48_359] : memref<4x352xf32, #tpu.memory_space<vmem>>, vector<4x256xf32>
    %c3_360 = arith.constant 3 : index
    %c0_361 = arith.constant 0 : index
    %c0_362 = arith.constant 0 : index
    %425 = vector.load %arg16[%c3_360, %c0_361, %c0_362] : memref<7x4x4xbf16, #tpu.memory_space<vmem>>, vector<1x4x4xbf16>
    %426 = vector.shape_cast %425 : vector<1x4x4xbf16> to vector<4x4xbf16>
    %427 = arith.truncf %424 : vector<4x256xf32> to vector<4x256xbf16>
    %cst_363 = arith.constant dense<0.000000e+00> : vector<4x256xf32>
    %428 = tpu.matmul %426, %427, %cst_363 {dimension_numbers = #tpu.dot_dimension_numbers<[1], [0], [0], [1], [0, 0, 1, 1], [], []>} : vector<4x4xbf16>, vector<4x256xbf16>, vector<4x256xf32> -> vector<4x256xf32>
    %429 = arith.addf %423, %428 : vector<4x256xf32>
    %c0_364 = arith.constant 0 : index
    %c64_365 = arith.constant 64 : index
    %430 = vector.load %arg21[%c0_364, %c64_365] : memref<4x352xf32, #tpu.memory_space<vmem>>, vector<4x256xf32>
    %c4_366 = arith.constant 4 : index
    %c0_367 = arith.constant 0 : index
    %c0_368 = arith.constant 0 : index
    %431 = vector.load %arg3[%c4_366, %c0_367, %c0_368] : memref<7x1x256xf32, #tpu.memory_space<vmem>>, vector<1x1x256xf32>
    %432 = vector.shape_cast %431 : vector<1x1x256xf32> to vector<1x256xf32>
    %433 = vector.broadcast %432 : vector<1x256xf32> to vector<4x256xf32>
    %434 = arith.mulf %430, %433 : vector<4x256xf32>
    %c4_369 = arith.constant 4 : index
    %c0_370 = arith.constant 0 : index
    %c0_371 = arith.constant 0 : index
    %435 = vector.load %arg16[%c4_369, %c0_370, %c0_371] : memref<7x4x4xbf16, #tpu.memory_space<vmem>>, vector<1x4x4xbf16>
    %436 = vector.shape_cast %435 : vector<1x4x4xbf16> to vector<4x4xbf16>
    %437 = arith.truncf %434 : vector<4x256xf32> to vector<4x256xbf16>
    %cst_372 = arith.constant dense<0.000000e+00> : vector<4x256xf32>
    %438 = tpu.matmul %436, %437, %cst_372 {dimension_numbers = #tpu.dot_dimension_numbers<[1], [0], [0], [1], [0, 0, 1, 1], [], []>} : vector<4x4xbf16>, vector<4x256xbf16>, vector<4x256xf32> -> vector<4x256xf32>
    %439 = arith.addf %429, %438 : vector<4x256xf32>
    %c0_373 = arith.constant 0 : index
    %c80_374 = arith.constant 80 : index
    %440 = vector.load %arg21[%c0_373, %c80_374] : memref<4x352xf32, #tpu.memory_space<vmem>>, vector<4x256xf32>
    %c5_375 = arith.constant 5 : index
    %c0_376 = arith.constant 0 : index
    %c0_377 = arith.constant 0 : index
    %441 = vector.load %arg3[%c5_375, %c0_376, %c0_377] : memref<7x1x256xf32, #tpu.memory_space<vmem>>, vector<1x1x256xf32>
    %442 = vector.shape_cast %441 : vector<1x1x256xf32> to vector<1x256xf32>
    %443 = vector.broadcast %442 : vector<1x256xf32> to vector<4x256xf32>
    %444 = arith.mulf %440, %443 : vector<4x256xf32>
    %c5_378 = arith.constant 5 : index
    %c0_379 = arith.constant 0 : index
    %c0_380 = arith.constant 0 : index
    %445 = vector.load %arg16[%c5_378, %c0_379, %c0_380] : memref<7x4x4xbf16, #tpu.memory_space<vmem>>, vector<1x4x4xbf16>
    %446 = vector.shape_cast %445 : vector<1x4x4xbf16> to vector<4x4xbf16>
    %447 = arith.truncf %444 : vector<4x256xf32> to vector<4x256xbf16>
    %cst_381 = arith.constant dense<0.000000e+00> : vector<4x256xf32>
    %448 = tpu.matmul %446, %447, %cst_381 {dimension_numbers = #tpu.dot_dimension_numbers<[1], [0], [0], [1], [0, 0, 1, 1], [], []>} : vector<4x4xbf16>, vector<4x256xbf16>, vector<4x256xf32> -> vector<4x256xf32>
    %449 = arith.addf %439, %448 : vector<4x256xf32>
    %c0_382 = arith.constant 0 : index
    %c96_383 = arith.constant 96 : index
    %450 = vector.load %arg21[%c0_382, %c96_383] : memref<4x352xf32, #tpu.memory_space<vmem>>, vector<4x256xf32>
    %c6_384 = arith.constant 6 : index
    %c0_385 = arith.constant 0 : index
    %c0_386 = arith.constant 0 : index
    %451 = vector.load %arg3[%c6_384, %c0_385, %c0_386] : memref<7x1x256xf32, #tpu.memory_space<vmem>>, vector<1x1x256xf32>
    %452 = vector.shape_cast %451 : vector<1x1x256xf32> to vector<1x256xf32>
    %453 = vector.broadcast %452 : vector<1x256xf32> to vector<4x256xf32>
    %454 = arith.mulf %450, %453 : vector<4x256xf32>
    %c6_387 = arith.constant 6 : index
    %c0_388 = arith.constant 0 : index
    %c0_389 = arith.constant 0 : index
    %455 = vector.load %arg16[%c6_387, %c0_388, %c0_389] : memref<7x4x4xbf16, #tpu.memory_space<vmem>>, vector<1x4x4xbf16>
    %456 = vector.shape_cast %455 : vector<1x4x4xbf16> to vector<4x4xbf16>
    %457 = arith.truncf %454 : vector<4x256xf32> to vector<4x256xbf16>
    %cst_390 = arith.constant dense<0.000000e+00> : vector<4x256xf32>
    %458 = tpu.matmul %456, %457, %cst_390 {dimension_numbers = #tpu.dot_dimension_numbers<[1], [0], [0], [1], [0, 0, 1, 1], [], []>} : vector<4x4xbf16>, vector<4x256xbf16>, vector<4x256xf32> -> vector<4x256xf32>
    %459 = arith.addf %449, %458 : vector<4x256xf32>
    %c0_391 = arith.constant 0 : index
    %c0_392 = arith.constant 0 : index
    %460 = vector.load %arg17[%c0_391, %c0_392] : memref<4x1xf32, #tpu.memory_space<vmem>>, vector<4x1xf32>
    %461 = vector.broadcast %460 : vector<4x1xf32> to vector<4x256xf32>
    %462 = arith.addf %459, %461 : vector<4x256xf32>
    %cst_393 = arith.constant 0.000000e+00 : f32
    %cst_394 = arith.constant 6.000000e+00 : f32
    %463 = vector.broadcast %cst_393 : f32 to vector<4x256xf32>
    %464 = arith.maximumf %463, %462 : vector<4x256xf32>
    %465 = vector.broadcast %cst_394 : f32 to vector<4x256xf32>
    %466 = arith.minimumf %465, %464 : vector<4x256xf32>
    %c0_395 = arith.constant 0 : index
    %c48_396 = arith.constant 48 : index
    %467 = vector.load %arg21[%c0_395, %c48_396] : memref<4x352xf32, #tpu.memory_space<vmem>>, vector<4x256xf32>
    tpu.vector_store %arg21[%c0_395, %c48_396], %3 {strides = array<i32>} : memref<4x352xf32, #tpu.memory_space<vmem>>, vector<4x256xf32>,
    %c2_397 = arith.constant 2 : index
    %c0_398 = arith.constant 0 : index
    %c0_399 = arith.constant 0 : index
    %468 = vector.load %arg2[%c2_397, %c0_398, %c0_399] : memref<7x1x256xf32, #tpu.memory_space<vmem>>, vector<1x1x256xf32>
    %469 = vector.shape_cast %468 : vector<1x1x256xf32> to vector<1x256xf32>
    %c0_400 = arith.constant 0 : index
    %c47_401 = arith.constant 47 : index
    %470 = vector.load %arg21[%c0_400, %c47_401] : memref<4x352xf32, #tpu.memory_space<vmem>>, vector<4x256xf32>
    %471 = vector.broadcast %469 : vector<1x256xf32> to vector<4x256xf32>
    %472 = arith.mulf %470, %471 : vector<4x256xf32>
    %cst_402 = arith.constant 1.000000e+00 : f32
    %473 = vector.broadcast %cst_402 : f32 to vector<1x256xf32>
    %474 = arith.subf %473, %469 : vector<1x256xf32>
    %cst_403 = arith.constant 1.000000e+30 : f32
    %475 = vector.broadcast %cst_403 : f32 to vector<1x256xf32>
    %476 = arith.mulf %474, %475 : vector<1x256xf32>
    %477 = vector.broadcast %476 : vector<1x256xf32> to vector<4x256xf32>
    %478 = arith.subf %472, %477 : vector<4x256xf32>
    %479 = arith.maximumf %3, %478 : vector<4x256xf32>
    %c4_404 = arith.constant 4 : index
    %c0_405 = arith.constant 0 : index
    %c0_406 = arith.constant 0 : index
    %480 = vector.load %arg2[%c4_404, %c0_405, %c0_406] : memref<7x1x256xf32, #tpu.memory_space<vmem>>, vector<1x1x256xf32>
    %481 = vector.shape_cast %480 : vector<1x1x256xf32> to vector<1x256xf32>
    %c0_407 = arith.constant 0 : index
    %c49_408 = arith.constant 49 : index
    %482 = vector.load %arg21[%c0_407, %c49_408] : memref<4x352xf32, #tpu.memory_space<vmem>>, vector<4x256xf32>
    %483 = vector.broadcast %481 : vector<1x256xf32> to vector<4x256xf32>
    %484 = arith.mulf %482, %483 : vector<4x256xf32>
    %cst_409 = arith.constant 1.000000e+00 : f32
    %485 = vector.broadcast %cst_409 : f32 to vector<1x256xf32>
    %486 = arith.subf %485, %481 : vector<1x256xf32>
    %cst_410 = arith.constant 1.000000e+30 : f32
    %487 = vector.broadcast %cst_410 : f32 to vector<1x256xf32>
    %488 = arith.mulf %486, %487 : vector<1x256xf32>
    %489 = vector.broadcast %488 : vector<1x256xf32> to vector<4x256xf32>
    %490 = arith.subf %484, %489 : vector<4x256xf32>
    %491 = arith.maximumf %479, %490 : vector<4x256xf32>
    %c0_411 = arith.constant 0 : index
    %c48_412 = arith.constant 48 : index
    %492 = vector.load %arg21[%c0_411, %c48_412] : memref<4x352xf32, #tpu.memory_space<vmem>>, vector<4x256xf32>
    tpu.vector_store %arg21[%c0_411, %c48_412], %491 {strides = array<i32>} : memref<4x352xf32, #tpu.memory_space<vmem>>, vector<4x256xf32>,
    %c2_413 = arith.constant 2 : index
    %c0_414 = arith.constant 0 : index
    %c0_415 = arith.constant 0 : index
    %493 = vector.load %arg3[%c2_413, %c0_414, %c0_415] : memref<7x1x256xf32, #tpu.memory_space<vmem>>, vector<1x1x256xf32>
    %494 = vector.shape_cast %493 : vector<1x1x256xf32> to vector<1x256xf32>
    %c0_416 = arith.constant 0 : index
    %c32_417 = arith.constant 32 : index
    %495 = vector.load %arg21[%c0_416, %c32_417] : memref<4x352xf32, #tpu.memory_space<vmem>>, vector<4x256xf32>
    %496 = vector.broadcast %494 : vector<1x256xf32> to vector<4x256xf32>
    %497 = arith.mulf %495, %496 : vector<4x256xf32>
    %cst_418 = arith.constant 1.000000e+00 : f32
    %498 = vector.broadcast %cst_418 : f32 to vector<1x256xf32>
    %499 = arith.subf %498, %494 : vector<1x256xf32>
    %cst_419 = arith.constant 1.000000e+30 : f32
    %500 = vector.broadcast %cst_419 : f32 to vector<1x256xf32>
    %501 = arith.mulf %499, %500 : vector<1x256xf32>
    %502 = vector.broadcast %501 : vector<1x256xf32> to vector<4x256xf32>
    %503 = arith.subf %497, %502 : vector<4x256xf32>
    %504 = arith.maximumf %491, %503 : vector<4x256xf32>
    %c4_420 = arith.constant 4 : index
    %c0_421 = arith.constant 0 : index
    %c0_422 = arith.constant 0 : index
    %505 = vector.load %arg3[%c4_420, %c0_421, %c0_422] : memref<7x1x256xf32, #tpu.memory_space<vmem>>, vector<1x1x256xf32>
    %506 = vector.shape_cast %505 : vector<1x1x256xf32> to vector<1x256xf32>
    %c0_423 = arith.constant 0 : index
    %c64_424 = arith.constant 64 : index
    %507 = vector.load %arg21[%c0_423, %c64_424] : memref<4x352xf32, #tpu.memory_space<vmem>>, vector<4x256xf32>
    %508 = vector.broadcast %506 : vector<1x256xf32> to vector<4x256xf32>
    %509 = arith.mulf %507, %508 : vector<4x256xf32>
    %cst_425 = arith.constant 1.000000e+00 : f32
    %510 = vector.broadcast %cst_425 : f32 to vector<1x256xf32>
    %511 = arith.subf %510, %506 : vector<1x256xf32>
    %cst_426 = arith.constant 1.000000e+30 : f32
    %512 = vector.broadcast %cst_426 : f32 to vector<1x256xf32>
    %513 = arith.mulf %511, %512 : vector<1x256xf32>
    %514 = vector.broadcast %513 : vector<1x256xf32> to vector<4x256xf32>
    %515 = arith.subf %509, %514 : vector<4x256xf32>
    %516 = arith.maximumf %504, %515 : vector<4x256xf32>
    %c0_427 = arith.constant 0 : index
    %c0_428 = arith.constant 0 : index
    %517 = vector.load %arg18[%c0_427, %c0_428] : memref<4x4xbf16, #tpu.memory_space<vmem>>, vector<4x4xbf16>
    %518 = arith.truncf %516 : vector<4x256xf32> to vector<4x256xbf16>
    %cst_429 = arith.constant dense<0.000000e+00> : vector<4x256xf32>
    %519 = tpu.matmul %517, %518, %cst_429 {dimension_numbers = #tpu.dot_dimension_numbers<[1], [0], [0], [1], [0, 0, 1, 1], [], []>} : vector<4x4xbf16>, vector<4x256xbf16>, vector<4x256xf32> -> vector<4x256xf32>
    %c0_430 = arith.constant 0 : index
    %c0_431 = arith.constant 0 : index
    %520 = vector.load %arg19[%c0_430, %c0_431] : memref<4x1xf32, #tpu.memory_space<vmem>>, vector<4x1xf32>
    %521 = vector.broadcast %520 : vector<4x1xf32> to vector<4x256xf32>
    %522 = arith.addf %519, %521 : vector<4x256xf32>
    %cst_432 = arith.constant 0.000000e+00 : f32
    %cst_433 = arith.constant 6.000000e+00 : f32
    %523 = vector.broadcast %cst_432 : f32 to vector<4x256xf32>
    %524 = arith.maximumf %523, %522 : vector<4x256xf32>
    %525 = vector.broadcast %cst_433 : f32 to vector<4x256xf32>
    %526 = arith.minimumf %525, %524 : vector<4x256xf32>
    %c0_434 = arith.constant 0 : index
    %c0_435 = arith.constant 0 : index
    %c0_436 = arith.constant 0 : index
    %527 = vector.load %arg20[%c0_434, %c0_435, %c0_436] : memref<1x16x256xf32, #tpu.memory_space<vmem>>, vector<1x4x256xf32>
    %528 = vector.shape_cast %527 : vector<1x4x256xf32> to vector<4x256xf32>
    %529 = vector.shape_cast %14 : vector<4x256xf32> to vector<1x4x256xf32>
    tpu.vector_store %arg20[%c0_434, %c0_435, %c0_436], %529 {strides = array<i32>} : memref<1x16x256xf32, #tpu.memory_space<vmem>>, vector<1x4x256xf32>,
    %c0_437 = arith.constant 0 : index
    %c4_438 = arith.constant 4 : index
    %c0_439 = arith.constant 0 : index
    %530 = vector.load %arg20[%c0_437, %c4_438, %c0_439] : memref<1x16x256xf32, #tpu.memory_space<vmem>>, vector<1x4x256xf32>
    %531 = vector.shape_cast %530 : vector<1x4x256xf32> to vector<4x256xf32>
    %532 = vector.shape_cast %166 : vector<4x256xf32> to vector<1x4x256xf32>
    tpu.vector_store %arg20[%c0_437, %c4_438, %c0_439], %532 {strides = array<i32>} : memref<1x16x256xf32, #tpu.memory_space<vmem>>, vector<1x4x256xf32>,
    %c0_440 = arith.constant 0 : index
    %c8 = arith.constant 8 : index
    %c0_441 = arith.constant 0 : index
    %533 = vector.load %arg20[%c0_440, %c8, %c0_441] : memref<1x16x256xf32, #tpu.memory_space<vmem>>, vector<1x4x256xf32>
    %534 = vector.shape_cast %533 : vector<1x4x256xf32> to vector<4x256xf32>
    %535 = vector.shape_cast %466 : vector<4x256xf32> to vector<1x4x256xf32>
    tpu.vector_store %arg20[%c0_440, %c8, %c0_441], %535 {strides = array<i32>} : memref<1x16x256xf32, #tpu.memory_space<vmem>>, vector<1x4x256xf32>,
    %c0_442 = arith.constant 0 : index
    %c12 = arith.constant 12 : index
    %c0_443 = arith.constant 0 : index
    %536 = vector.load %arg20[%c0_442, %c12, %c0_443] : memref<1x16x256xf32, #tpu.memory_space<vmem>>, vector<1x4x256xf32>
    %537 = vector.shape_cast %536 : vector<1x4x256xf32> to vector<4x256xf32>
    %538 = vector.shape_cast %526 : vector<4x256xf32> to vector<1x4x256xf32>
    tpu.vector_store %arg20[%c0_442, %c12, %c0_443], %538 {strides = array<i32>} : memref<1x16x256xf32, #tpu.memory_space<vmem>>, vector<1x4x256xf32>,
    return
  }
  func.func @transform_0(%arg0: i32) -> (i32, i32, i32) {
    %c0_i32 = arith.constant 0 : i32
    %c0_i32_0 = arith.constant 0 : i32
    %c0_i32_1 = arith.constant 0 : i32
    return %arg0, %c0_i32, %c0_i32_0 : i32, i32, i32
  }
  func.func @transform_1(%arg0: i32) -> (i32, i32, i32) {
    %c0_i32 = arith.constant 0 : i32
    %c0_i32_0 = arith.constant 0 : i32
    %c0_i32_1 = arith.constant 0 : i32
    %c0_i32_2 = arith.constant 0 : i32
    return %c0_i32, %c0_i32_0, %c0_i32_1 : i32, i32, i32
  }
  func.func @transform_2(%arg0: i32) -> (i32, i32, i32) {
    %c0_i32 = arith.constant 0 : i32
    %c0_i32_0 = arith.constant 0 : i32
    %c0_i32_1 = arith.constant 0 : i32
    %c0_i32_2 = arith.constant 0 : i32
    return %c0_i32, %c0_i32_0, %c0_i32_1 : i32, i32, i32
  }
  func.func @transform_3(%arg0: i32) -> (i32, i32) {
    %c0_i32 = arith.constant 0 : i32
    %c0_i32_0 = arith.constant 0 : i32
    %c0_i32_1 = arith.constant 0 : i32
    return %c0_i32, %c0_i32_0 : i32, i32
  }
  func.func @transform_4(%arg0: i32) -> (i32, i32) {
    %c0_i32 = arith.constant 0 : i32
    %c0_i32_0 = arith.constant 0 : i32
    %c0_i32_1 = arith.constant 0 : i32
    return %c0_i32, %c0_i32_0 : i32, i32
  }
  func.func @transform_5(%arg0: i32) -> (i32, i32, i32) {
    %c0_i32 = arith.constant 0 : i32
    %c0_i32_0 = arith.constant 0 : i32
    %c0_i32_1 = arith.constant 0 : i32
    %c0_i32_2 = arith.constant 0 : i32
    return %c0_i32, %c0_i32_0, %c0_i32_1 : i32, i32, i32
  }
  func.func @transform_6(%arg0: i32) -> (i32, i32) {
    %c0_i32 = arith.constant 0 : i32
    %c0_i32_0 = arith.constant 0 : i32
    %c0_i32_1 = arith.constant 0 : i32
    return %c0_i32, %c0_i32_0 : i32, i32
  }
  func.func @transform_7(%arg0: i32) -> (i32, i32, i32) {
    %c0_i32 = arith.constant 0 : i32
    %c0_i32_0 = arith.constant 0 : i32
    %c0_i32_1 = arith.constant 0 : i32
    %c0_i32_2 = arith.constant 0 : i32
    return %c0_i32, %c0_i32_0, %c0_i32_1 : i32, i32, i32
  }
  func.func @transform_8(%arg0: i32) -> (i32, i32) {
    %c0_i32 = arith.constant 0 : i32
    %c0_i32_0 = arith.constant 0 : i32
    %c0_i32_1 = arith.constant 0 : i32
    return %c0_i32, %c0_i32_0 : i32, i32
  }
  func.func @transform_9(%arg0: i32) -> (i32, i32, i32) {
    %c0_i32 = arith.constant 0 : i32
    %c0_i32_0 = arith.constant 0 : i32
    %c0_i32_1 = arith.constant 0 : i32
    %c0_i32_2 = arith.constant 0 : i32
    return %c0_i32, %c0_i32_0, %c0_i32_1 : i32, i32, i32
  }
  func.func @transform_10(%arg0: i32) -> (i32, i32) {
    %c0_i32 = arith.constant 0 : i32
    %c0_i32_0 = arith.constant 0 : i32
    %c0_i32_1 = arith.constant 0 : i32
    return %c0_i32, %c0_i32_0 : i32, i32
  }
  func.func @transform_11(%arg0: i32) -> (i32, i32, i32) {
    %c0_i32 = arith.constant 0 : i32
    %c0_i32_0 = arith.constant 0 : i32
    %c0_i32_1 = arith.constant 0 : i32
    %c0_i32_2 = arith.constant 0 : i32
    return %c0_i32, %c0_i32_0, %c0_i32_1 : i32, i32, i32
  }
  func.func @transform_12(%arg0: i32) -> (i32, i32) {
    %c0_i32 = arith.constant 0 : i32
    %c0_i32_0 = arith.constant 0 : i32
    %c0_i32_1 = arith.constant 0 : i32
    return %c0_i32, %c0_i32_0 : i32, i32
  }
  func.func @transform_13(%arg0: i32) -> (i32, i32, i32) {
    %c0_i32 = arith.constant 0 : i32
    %c0_i32_0 = arith.constant 0 : i32
    %c0_i32_1 = arith.constant 0 : i32
    %c0_i32_2 = arith.constant 0 : i32
    return %c0_i32, %c0_i32_0, %c0_i32_1 : i32, i32, i32
  }
  func.func @transform_14(%arg0: i32) -> (i32, i32) {
    %c0_i32 = arith.constant 0 : i32
    %c0_i32_0 = arith.constant 0 : i32
    %c0_i32_1 = arith.constant 0 : i32
    return %c0_i32, %c0_i32_0 : i32, i32
  }
  func.func @transform_15(%arg0: i32) -> (i32, i32, i32) {
    %c0_i32 = arith.constant 0 : i32
    %c0_i32_0 = arith.constant 0 : i32
    %c0_i32_1 = arith.constant 0 : i32
    %c0_i32_2 = arith.constant 0 : i32
    return %c0_i32, %c0_i32_0, %c0_i32_1 : i32, i32, i32
  }
  func.func @transform_16(%arg0: i32) -> (i32, i32) {
    %c0_i32 = arith.constant 0 : i32
    %c0_i32_0 = arith.constant 0 : i32
    %c0_i32_1 = arith.constant 0 : i32
    return %c0_i32, %c0_i32_0 : i32, i32
  }
  func.func @transform_17(%arg0: i32) -> (i32, i32) {
    %c0_i32 = arith.constant 0 : i32
    %c0_i32_0 = arith.constant 0 : i32
    %c0_i32_1 = arith.constant 0 : i32
    return %c0_i32, %c0_i32_0 : i32, i32
  }
  func.func @transform_18(%arg0: i32) -> (i32, i32) {
    %c0_i32 = arith.constant 0 : i32
    %c0_i32_0 = arith.constant 0 : i32
    %c0_i32_1 = arith.constant 0 : i32
    return %c0_i32, %c0_i32_0 : i32, i32
  }
  func.func @transform_19(%arg0: i32) -> (i32, i32, i32) {
    %c0_i32 = arith.constant 0 : i32
    %c0_i32_0 = arith.constant 0 : i32
    %c0_i32_1 = arith.constant 0 : i32
    return %arg0, %c0_i32, %c0_i32_0 : i32, i32, i32
  }
}

</mosaic_0001>

<bundles_post_ra>
// kernel: inception_v3_module_b.1
= control target key start
LH: loop header
LB: loop body
LE: loop exit
PB: predicated region body
PF: predicated region fallthrough
CT: control target
= control target key end

     0   :  { %s5679_s0 = inlined_call_operand.vmem [shape: f32[2,4,256], index: 0, kind: input, shape index: {}]   ;;  %s5680_s1 = inlined_call_operand.vmem [shape: f32[7,1,256], index: 1, kind: input, shape index: {}]   ;;  %s5681_s2 = inlined_call_operand.vmem [shape: f32[7,1,256], index: 2, kind: input, shape index: {}]   ;;  %s5682_s3 = inlined_call_operand.vmem [shape: bf16[12,4], index: 3, kind: input, shape index: {}]   ;;  %s5683_s4 = inlined_call_operand.vmem [shape: f32[12,1], index: 4, kind: input, shape index: {}]   ;;  %s5684_s5 = inlined_call_operand.vmem [shape: bf16[7,4,4], index: 5, kind: input, shape index: {}]   ;;  %s5685_s6 = inlined_call_operand.vmem [shape: f32[4,1], index: 6, kind: input, shape index: {}]   ;;  %s5686_s7 = inlined_call_operand.vmem [shape: bf16[7,4,4], index: 7, kind: input, shape index: {}]   ;;  %s5687_s8 = inlined_call_operand.vmem [shape: f32[4,1], index: 8, kind: input, shape index: {}]   ;;  %s5688_s9 = inlined_call_operand.vmem [shape: bf16[7,4,4], index: 9, kind: input, shape index: {}]   ;;  %s5689_s10 = inlined_call_operand.vmem [shape: f32[4,1], index: 10, kind: input, shape index: {}]   ;;  %s5690_s11 = inlined_call_operand.vmem [shape: bf16[7,4,4], index: 11, kind: input, shape index: {}]   ;;  %s5691_s12 = inlined_call_operand.vmem [shape: f32[4,1], index: 12, kind: input, shape index: {}]   ;;  %s5692_s13 = inlined_call_operand.vmem [shape: bf16[7,4,4], index: 13, kind: input, shape index: {}]   ;;  %s5693_s14 = inlined_call_operand.vmem [shape: f32[4,1], index: 14, kind: input, shape index: {}]   ;;  %s5694_s15 = inlined_call_operand.vmem [shape: bf16[7,4,4], index: 15, kind: input, shape index: {}]   ;;  %s5695_s16 = inlined_call_operand.vmem [shape: f32[4,1], index: 16, kind: input, shape index: {}]   ;;  %s5696_s17 = inlined_call_operand.vmem [shape: bf16[4,4], index: 17, kind: input, shape index: {}]   ;;  %s5697_s18 = inlined_call_operand.vmem [shape: f32[4,1], index: 18, kind: input, shape index: {}]   ;;  %s5698_s19 = inlined_call_operand.vmem [shape: f32[2,16,256], index: 19, kind: output, shape index: {}]  }
   0x1   :  { %5754 = sst [smem:[#allocation5_spill]] %s5679_s0  ;;  %s4694_s0 = smov 0  }
   0x2   :  { %5755 = sst [smem:[#allocation6_spill]] %s5680_s1 }
   0x3   :  { %5756 = sst [smem:[#allocation7_spill]] %s5681_s2 }
   0x4   :  { %5757 = sst [smem:[#allocation8_spill]] %s5682_s3 }
   0x5   :  { %5758 = sst [smem:[#allocation9_spill]] %s5683_s4 }
   0x6   :  { %5759 = sst [smem:[#allocation10_spill]] %s5684_s5 }
   0x7   :  { %5760 = sst [smem:[#allocation11_spill]] %s5685_s6 }
   0x8   :  { %5761 = sst [smem:[#allocation12_spill]] %s5686_s7 }
   0x9   :  { %5762 = sst [smem:[#allocation13_spill]] %s5688_s9 }
   0xa   :  { %5763 = sst [smem:[#allocation14_spill]] %s5689_s10 }
   0xb   :  { %5764 = sst [smem:[#allocation15_spill]] %s5696_s17 }
   0xc   :  { %5765 = sst [smem:[#allocation16_spill]] %s5698_s19 }
   0xd LB: > { %5766 = sst [smem:[#allocation3_spill]] %s4571_s0  ;;  %s4357_s30 = sadd.s32 4294967295, %s4571_s0   ;;  %s4571_s0 = sphi %s4694_s0, %s29_s0  }
   0xe   : > { %p4361_p0 = scmp.ge.s32.totalorder %s4571_s0, 1  ;;  %p537_p1 = scmp.lt.s32.totalorder %s4571_s0, 3 }
  0x10   : > { %p538_p2 = pnand %p4361_p0, %p537_p1 }
  0x12   : > { %541 = sbr.rel (%p538_p2) target bundleno = 2814 (0xafe), region = 96 }
  0x17   : > { %p593_p3 = scmp.lt.s32.totalorder %s4357_s30, 1  ;;  %s5767_s4 = sld [smem:[#allocation9_spill]]  ;;  %v4573_v1 = vmov 0   ;;  %vm639_vm0 = vcmask 1041408   ;;  %vm635_vm1 = vcmask 31744   ;;  %vm708_vm2 = vcmask 1043456  }
  0x18   : > { %4562 = vset.pattern.permute.xlu0 %v4573_v1  ;;  %4564 = vset.pattern.permute.xlu1 %v4573_v1  ;;  %s5768_s23 = sld [smem:[#allocation5_spill]]  ;;  %s5720_s25 = smov 46   ;;  %vm605_vm3 = vcmask 781312   ;;  %v4581_v52 = vmov 0.0   ;;  %vm695_vm4 = vcmask 1043840   ;;  %vm696_vm5 = vcmask 1047556  }
  0x19   : > { %s5839_s30 = smov (!%p593_p3, %s4357_s30), 1  ;;  %4563 = vset.pattern.permute.xlu2 %v4573_v1  ;;  %s5769_s26 = sld [smem:[#allocation8_spill]]  ;;  %604 = vst [vmem:[#allocation2] sm:$0xff] %v4581_v52  ;;  %vm691_vm6 = vcmask 392192   ;;  %vm5735_vm7 = vcmask 388096   ;;  %vm4763_vm8 = vmor %vm696_vm5, %vm695_vm4  ;;  %vm713_vm9 = vcmask 367616  }
  0x1a   : > { %s4530_s1 = sshll.u32 %s5839_s30, 3  ;;  %s5770_s21 = sld [smem:[#allocation6_spill]]  ;;  %606 = vst.msk [vmem:[#allocation2 + $0x8] sm:$0xf] %vm605_vm3, %v4581_v52  ;;  %vm746_vm10 = vcmask 375808   ;;  %vm5742_vm11 = vcmask 384000  }
  0x1b   : > { %s5710_s20 = smov 51   ;;  %s5727_s22 = smov 47   ;;  %vm1024_vm12 = vcmask 400384   ;;  %vm5749_vm13 = vcmask 408576   ;;  %vm5748_vm14 = vcmask 416768   ;;  %vm5747_vm15 = vcmask 670720  }
  0x1c   : > { %s4531_s2 = sshll.u32 %s5839_s30, 5  ;;  %s5771_s19 = sld [smem:[#allocation16_spill]]  ;;  %vm5726_vm3 = vcmask 662528   ;;  %vm5722_vm4 = vcmask 678912   ;;  %vm5725_vm5 = vcmask 646144  }
  0x1d   : > { %v618_v0 = vld [vmem:[%s5767_s4] sm:$0xff]  ;;  %s5718_s27 = smov 49   ;;  %s5738_s29 = smov 48  }
  0x1e   : > { %622 = vperm.xlu0 %4562, %v618_v0   ;;  %s597_s24 = scalar_lea.vmem %s5768_s23, %s4530_s1  ;;  %s5729_s1 = smov 45  }
  0x1f   : > { %v4711_v2 = vld [vmem:[%s597_s24] sm:$0xff]  ;;  %s5708_s23 = smov 82   ;;  %s5706_s24 = smov 81  }
  0x20   : > { %611 = vst [vmem:[#allocation1] ss:$2 sm:$0xff] %v4711_v2  ;;  %v4368_v3 = vld [vmem:[%s5769_s26] sm:$0xf]  ;;  %v4532_v4 = vld [vmem:[%s5769_s26] sm:$0x30] }
  0x21   : > { %v4369_v11 = vor.u32 %v4532_v4, %v4368_v3  ;;  %v703_v12 = vld [vmem:[%s5770_s21] sm:$0x3]  ;;  %v4372_v17 = vld [vmem:[%s5770_s21 + $0x2] sm:$0x3]  ;;  %v4393_v22 = vld [vmem:[%s5770_s21 + $0xc] sm:$0x3] }
  0x22   : > { %v706_v13 = vperm.slane %v703_v12, 1  ;;  %v705_v14 = vperm.slane %v703_v12, 0  ;;  %v739_v18 = vperm.slane %v4372_v17, 0  ;;  %v740_v19 = vperm.slane %v4372_v17, 1  ;;  %v4378_v27 = vld [vmem:[%s5770_s21 + $0x4] sm:$0x3]  ;;  %s4752_s3 = scalar_lea.vmem %s5771_s19, %s4531_s2 }
  0x23   : > { %v1184_v23 = vperm.slane %v4393_v22, 1  ;;  %v1183_v24 = vperm.slane %v4393_v22, 0  ;;  %v4385_v28 = vld [vmem:[%s5770_s21 + $0x8] sm:$0x3]  ;;  %v867_v29 = vperm.slane %v4378_v27, 0  ;;  %v868_v30 = vperm.slane %v4378_v27, 1 }
  0x24   : > { %v707_v15 = vrot.slane %v706_v13, 4  ;;  %v741_v20 = vrot.slane %v740_v19, 4  ;;  %v1018_v32 = vperm.slane %v4385_v28, 1  ;;  %v1017_v37 = vperm.slane %v4385_v28, 0  ;;  %5772 = sst [smem:[#allocation4_spill]] %s4752_s3  ;;  %s5716_s2 = smov 50  }
  0x25   : > { %v1185_v25 = vrot.slane %v1184_v23, 4  ;;  %v869_v31 = vrot.slane %v868_v30, 4  ;;  %v4389_v46 = vld [vmem:[%s5770_s21 + $0xa] sm:$0x3]  ;;  %s5702_s30 = smov 83   ;;  %s5704_s28 = smov 79  }
  0x26   : > { %v709_v16 = vsel %vm708_vm2, %v705_v14, %v707_v15  ;;  %v742_v21 = vsel %vm708_vm2, %v739_v18, %v741_v20  ;;  %v1019_v38 = vrot.slane %v1018_v32, 4  ;;  %v1101_v47 = vperm.slane %v4389_v46, 1  ;;  %s5775_s5 = sld [smem:[#allocation10_spill]]  ;;  %s5806_s19 = smov 48  }
  0x27   : > { %v612_v5 = vld.sshfl [vmem:[#allocation1] sm:$0xff pattern:$0x75316420]  ;;  %v613_v6 = vld.sshfl [vmem:[#allocation1 + $0x8] sm:$0xff pattern:$0x75316420]  ;;  %710 = vrot.lane.b32.xlu1 %v709_v16, %s5729_s1  ;;  %v1186_v26 = vsel %vm708_vm2, %v1183_v24, %v1185_v25  ;;  %v870_v34 = vsel %vm708_vm2, %v867_v29, %v869_v31 }
  0x28   : > { %v616_v7 = vpack.c.bf16 %v612_v5, %v612_v5  ;;  %v617_v8 = vpack.c.bf16 %v613_v6, %v613_v6  ;;  %871 = vrot.lane.b32.xlu2 %v870_v34, %s5727_s22  ;;  %v1020_v43 = vsel %vm708_vm2, %v1017_v37, %v1019_v38  ;;  %v1100_v49 = vperm.slane %v4389_v46, 0  ;;  %s5777_s6 = sld [smem:[#allocation11_spill]]  ;;  %s5811_s26 = smov 47  }
  0x29   : > { %v1102_v50 = vrot.slane %v1101_v47, 4  ;;  %s5786_s7 = sld [smem:[#allocation12_spill]] }
  0x2a   : > { %v641_v9 = vsel %vm639_vm0, %v616_v7, 0  ;;  %v644_v10 = vsel %vm639_vm0, %v617_v8, 0  ;;  %s5792_s10 = sld [smem:[#allocation14_spill]] }
  0x2b   : > { %653 = vmatpush.bf16.msra.mxu0 %v641_v9  ;;  %667 = vmatpush.bf16.msra.mxu1 %v644_v10  ;;  %v1103_v51 = vsel %vm708_vm2, %v1100_v49, %v1102_v50  ;;  %s5795_s9 = sld [smem:[#allocation13_spill]] }
  0x2e   : > { %4370 = vmatmul.msk.bf16.vlgmr.msra.gmra.mxu0 %vm635_vm1, %v4369_v11  ;;  %4371 = vmatmul.msk.bf16.vlgmr.msra.gmra.mxu1 %vm635_vm1, %v4369_v11 }
  0x2f   : > { %743 = vrot.lane.b32.xlu1 %v742_v21, %s5720_s25  ;;  %s5776_s25 = sld [smem:[#allocation7_spill]] }
  0x30   : > { %1021 = vrot.lane.b32.xlu2 %v1020_v43, %s5718_s27  ;;  %s5723_s27 = smov 64  }
  0x37   : > { %1187 = vrot.lane.b32.xlu1 %v1186_v26, %s5710_s20  ;;  %s5733_s20 = smov 16  }
  0x82   : > { %v872_v5 = vpop.permute.xlu2 %871 }
  0x83   : > { %v873_v6 = vrot.slane %v872_v5, 4 }
  0x85   : > { %v875_v12 = vsel %vm5742_vm11, %v873_v6, %v872_v5 }
  0x8a   : > { %v1022_v22 = vpop.permute.xlu2 %1021 }
  0x8b   : > { %v1023_v24 = vrot.slane %v1022_v22, 4 }
  0x8d   : > { %v1025_v31 = vsel %vm1024_vm12, %v1023_v24, %v1022_v22 }
  0x90   : > { %v623_v33 = vpop.permute.xlu0 %622 }
  0x99   : > { %v711_v56 = vpop.permute.xlu1 %710 }
  0x9a   : > { %v712_v58 = vrot.slane %v711_v56, 4 }
  0x9c   : > { %v714_v60 = vsel %vm713_vm9, %v712_v58, %v711_v56 }
  0xa1   : > { %v744_v63 = vpop.permute.xlu1 %743 }
  0xa2   : > { %v745_v1 = vrot.slane %v744_v63, 4 }
  0xa4   : > { %v747_v3 = vsel %vm746_vm10, %v745_v1, %v744_v63 }
  0xa9   : > { %v1188_v43 = vpop.permute.xlu1 %1187 }
  0xaa   : > { %v1189_v46 = vrot.slane %v1188_v43, 4 }
  0xab   : > { %v655_v35 = vpop.f32.mrf.mxu0  ;;  %v669_v36 = vpop.f32.mrf.mxu1 }
  0xac   : > { %v656_v39 = vadd.f32 %v655_v35, %v623_v33  ;;  %v670_v40 = vadd.f32 %v669_v36, %v623_v33  ;;  %v1191_v56 = vsel %vm5748_vm14, %v1189_v46, %v1188_v43 }
  0xae   : > { %v674_v41 = vmax.f32 %v656_v39, 0.0  ;;  %v675_v42 = vmax.f32 %v670_v40, 0.0 }
  0xb0   : > { %v678_v44 = vmin.f32 %v674_v41, 6.0  ;;  %v679_v45 = vmin.f32 %v675_v42, 6.0 }
  0xb2   : > { %684 = vst.sshfl [vmem:[#allocation1] sm:$0xff pattern:$0x75316420] %v678_v44 }
  0xb3   : > { %4282 = vst [vmem:[%s4752_s3] sm:$0xf] %v678_v44 }
  0xb4   : > { %685 = vst.sshfl [vmem:[#allocation1 + $0x8] sm:$0xff pattern:$0x75316420] %v679_v45 }
  0xb5   : > { %4283 = vst [vmem:[%s4752_s3 + $0x8] sm:$0xf] %v679_v45  ;;  %s5809_s3 = smov 112  }
  0xbb   : > { %v687_v48 = vld [vmem:[#allocation1 + $0x1] ss:$2 sm:$0xff] }
  0xbc   : > { %688 = vrot.lane.b32.xlu0 %v687_v48, %s5738_s29 }
  0xc4   : > { %1104 = vrot.lane.b32.xlu0 %v1103_v51, %s5716_s2  ;;  %s5740_s2 = smov 96  }
 0x12e   : > { %v689_v53 = vpop.permute.xlu0 %688 }
 0x12f   : > { %v690_v55 = vrot.slane %v689_v53, 4 }
 0x131   : > { %v692_v57 = vsel %vm691_vm6, %v690_v55, %v689_v53  ;;  %700 = vst.msk [vmem:[#allocation2 + $0x8] sm:$0xf] %vm5735_vm7, %v690_v55 }
 0x132   : > { %698 = vst.msk [vmem:[#allocation2] sm:$0xff] %vm4763_vm8, %v692_v57 }
 0x136   : > { %v1105_v32 = vpop.permute.xlu0 %1104 }
 0x137   : > { %v1106_v35 = vrot.slane %v1105_v32, 4 }
 0x138   : > { %v702_v59 = vld [vmem:[#allocation2 + $0x8] sm:$0xf] }
 0x139   : > { %v4772_v61 = vld [vmem:[#allocation2] sm:$0xff]  ;;  %v718_v62 = vmul.f32 %v712_v58, %v702_v59  ;;  %v735_v4 = vld [vmem:[#allocation2 + $0x8] sm:$0xf]  ;;  %v1108_v44 = vsel %vm5749_vm13, %v1106_v35, %v1105_v32 }
 0x13a   : > { %v717_v0 = vmul.f32 %v714_v60, %v4772_v61  ;;  %v750_v7 = vmul.f32 %v747_v3, %v4772_v61  ;;  %v751_v11 = vmul.f32 %v745_v1, %v735_v4  ;;  %v863_v13 = vld [vmem:[#allocation2 + $0x8] sm:$0xf]  ;;  %v878_v14 = vmul.f32 %v875_v12, %v4772_v61  ;;  %v619_v12 = vld [vmem:[%s5767_s4 + $0x8] sm:$0xf]  ;;  %s5787_s4 = smov 79  }
 0x13b   : > { %724 = vst [vmem:[#allocation1 + $0x10] ss:$2 sm:$0xff] %v718_v62  ;;  %v879_v17 = vmul.f32 %v873_v6, %v863_v13  ;;  %v946_v23 = vld [vmem:[#allocation2 + $0x8] sm:$0xf]  ;;  %v1028_v34 = vmul.f32 %v1025_v31, %v4772_v61  ;;  %v1111_v47 = vmul.f32 %v1108_v44, %v4772_v61  ;;  %v1194_v58 = vmul.f32 %v1191_v56, %v4772_v61  ;;  %v1261_v56 = vld [vmem:[%s5777_s6] sm:$0xf] }
 0x13c   : > { %722 = vst [vmem:[#allocation1] ss:$2 sm:$0xff] %v717_v0  ;;  %v1013_v33 = vld [vmem:[#allocation2 + $0x8] sm:$0xf]  ;;  %s5789_s6 = smov 77  }
 0x13d   : > { %v1029_v38 = vmul.f32 %v1023_v24, %v1013_v33  ;;  %v1096_v45 = vld [vmem:[#allocation2 + $0x8] sm:$0xf] }
 0x13e   : > { %v1112_v50 = vmul.f32 %v1106_v35, %v1096_v45  ;;  %v1179_v57 = vld [vmem:[#allocation2 + $0x8] sm:$0xf] }
 0x13f   : > { %v1195_v59 = vmul.f32 %v1189_v46, %v1179_v57 }
 0x142   : > { %v727_v8 = vld.sshfl [vmem:[#allocation1 + $0x10] sm:$0xff pattern:$0x75316420] }
 0x143   : > { %v725_v9 = vld.sshfl [vmem:[#allocation1] sm:$0xff pattern:$0x75316420]  ;;  %v726_v10 = vld.sshfl [vmem:[#allocation1 + $0x8] sm:$0xff pattern:$0x75316420]  ;;  %v733_v42 = vpack.c.bf16 %v727_v8, %v727_v8 }
 0x144   : > { %756 = vst [vmem:[#allocation1] ss:$2 sm:$0xff] %v750_v7  ;;  %v732_v40 = vpack.c.bf16 %v726_v10, %v726_v10  ;;  %v731_v41 = vpack.c.bf16 %v725_v9, %v725_v9 }
 0x145   : > { %758 = vst [vmem:[#allocation1 + $0x10] ss:$2 sm:$0xff] %v751_v11 }
 0x14b   : > { %v759_v15 = vld.sshfl [vmem:[#allocation1] sm:$0xff pattern:$0x75316420]  ;;  %v760_v16 = vld.sshfl [vmem:[#allocation1 + $0x8] sm:$0xff pattern:$0x75316420] }
 0x14c   : > { %884 = vst [vmem:[#allocation1] ss:$2 sm:$0xff] %v878_v14  ;;  %v761_v18 = vld.sshfl [vmem:[#allocation1 + $0x10] sm:$0xff pattern:$0x75316420]  ;;  %v766_v19 = vpack.c.bf16 %v760_v16, %v760_v16  ;;  %v765_v20 = vpack.c.bf16 %v759_v15, %v759_v15 }
 0x14d   : > { %886 = vst [vmem:[#allocation1 + $0x10] ss:$2 sm:$0xff] %v879_v17  ;;  %v767_v21 = vpack.c.bf16 %v761_v18, %v761_v18 }
 0x14e   : > { %773 = vrot.lane.b32.xlu2 %v766_v19, %s5708_s23  ;;  %771 = vrot.lane.b32.xlu1 %v765_v20, %s5708_s23 }
 0x14f   : > { %775 = vrot.lane.b32.xlu0 %v767_v21, %s5708_s23  ;;  %v4373_v21 = vld [vmem:[%s5775_s5 + $0x2] sm:$0x3]  ;;  %s5782_s23 = smov 51  }
 0x153   : > { %v887_v25 = vld.sshfl [vmem:[#allocation1] sm:$0xff pattern:$0x75316420]  ;;  %v888_v26 = vld.sshfl [vmem:[#allocation1 + $0x8] sm:$0xff pattern:$0x75316420] }
 0x154   : > { %951 = vst [vmem:[#allocation1] ss:$2 sm:$0xff] %v4772_v61  ;;  %v889_v27 = vld.sshfl [vmem:[#allocation1 + $0x10] sm:$0xff pattern:$0x75316420]  ;;  %v894_v28 = vpack.c.bf16 %v888_v26, %v888_v26  ;;  %v893_v29 = vpack.c.bf16 %v887_v25, %v887_v25 }
 0x155   : > { %953 = vst [vmem:[#allocation1 + $0x10] ss:$2 sm:$0xff] %v946_v23  ;;  %v895_v30 = vpack.c.bf16 %v889_v27, %v889_v27 }
 0x156   : > { %901 = vrot.lane.b32.xlu2 %v894_v28, %s5706_s24  ;;  %899 = vrot.lane.b32.xlu1 %v893_v29, %s5706_s24 }
 0x157   : > { %903 = vrot.lane.b32.xlu0 %v895_v30, %s5706_s24  ;;  %s5712_s24 = smov 78  }
 0x15b   : > { %v954_v36 = vld.sshfl [vmem:[#allocation1] sm:$0xff pattern:$0x75316420]  ;;  %v955_v37 = vld.sshfl [vmem:[#allocation1 + $0x8] sm:$0xff pattern:$0x75316420] }
 0x15c   : > { %v956_v39 = vld.sshfl [vmem:[#allocation1 + $0x10] sm:$0xff pattern:$0x75316420]  ;;  %1034 = vst [vmem:[#allocation1] ss:$2 sm:$0xff] %v1028_v34  ;;  %v961_v0 = vpack.c.bf16 %v955_v37, %v955_v37  ;;  %v960_v1 = vpack.c.bf16 %v954_v36, %v954_v36 }
 0x15d   : > { %1036 = vst [vmem:[#allocation1 + $0x10] ss:$2 sm:$0xff] %v1029_v38  ;;  %v962_v3 = vpack.c.bf16 %v956_v39, %v956_v39  ;;  %v719_v36 = vld [vmem:[%s5775_s5] sm:$0x3]  ;;  %v4379_v37 = vld [vmem:[%s5775_s5 + $0x4] sm:$0x3] }
 0x15e   : > { %820 = vrot.lane.b32.xlu2 %v732_v40, %s5702_s30  ;;  %818 = vrot.lane.b32.xlu1 %v731_v41, %s5702_s30  ;;  %v4410_v38 = vld [vmem:[%s5776_s25 + $0x8] sm:$0x3] }
 0x15f   : > { %822 = vrot.lane.b32.xlu0 %v733_v42, %s5702_s30  ;;  %s5745_s30 = smov 80   ;;  %v1574_v40 = vperm.slane %v4410_v38, 1  ;;  %v1573_v45 = vperm.slane %v4410_v38, 0 }
 0x161   : > { %v1575_v46 = vrot.slane %v1574_v40, 4 }
 0x163   : > { %v1037_v48 = vld.sshfl [vmem:[#allocation1] sm:$0xff pattern:$0x75316420]  ;;  %v1038_v49 = vld.sshfl [vmem:[#allocation1 + $0x8] sm:$0xff pattern:$0x75316420] }
 0x164   : > { %v1039_v51 = vld.sshfl [vmem:[#allocation1 + $0x10] sm:$0xff pattern:$0x75316420]  ;;  %1117 = vst [vmem:[#allocation1] ss:$2 sm:$0xff] %v1111_v47  ;;  %v1044_v52 = vpack.c.bf16 %v1038_v49, %v1038_v49  ;;  %v1043_v53 = vpack.c.bf16 %v1037_v48, %v1037_v48  ;;  %v1576_v49 = vsel %vm708_vm2, %v1573_v45, %v1575_v46 }
 0x165   : > { %1119 = vst [vmem:[#allocation1 + $0x10] ss:$2 sm:$0xff] %v1112_v50  ;;  %v1045_v55 = vpack.c.bf16 %v1039_v51, %v1039_v51 }
 0x166   : > { %1051 = vrot.lane.b32.xlu2 %v1044_v52, %s5704_s28  ;;  %1049 = vrot.lane.b32.xlu1 %v1043_v53, %s5704_s28 }
 0x167   : > { %1053 = vrot.lane.b32.xlu0 %v1045_v55, %s5704_s28  ;;  %s5714_s28 = smov 77  }
 0x16b   : > { %v1120_v60 = vld.sshfl [vmem:[#allocation1] sm:$0xff pattern:$0x75316420]  ;;  %v1121_v62 = vld.sshfl [vmem:[#allocation1 + $0x8] sm:$0xff pattern:$0x75316420] }
 0x16c   : > { %v1122_v63 = vld.sshfl [vmem:[#allocation1 + $0x10] sm:$0xff pattern:$0x75316420]  ;;  %1200 = vst [vmem:[#allocation1] ss:$2 sm:$0xff] %v1194_v58  ;;  %v1127_v9 = vpack.c.bf16 %v1121_v62, %v1121_v62  ;;  %v1126_v10 = vpack.c.bf16 %v1120_v60, %v1120_v60 }
 0x16d   : > { %1202 = vst [vmem:[#allocation1 + $0x10] ss:$2 sm:$0xff] %v1195_v59  ;;  %v1128_v11 = vpack.c.bf16 %v1122_v63, %v1122_v63  ;;  %v4382_v58 = vld [vmem:[%s5775_s5 + $0x6] sm:$0x3]  ;;  %v4386_v59 = vld [vmem:[%s5775_s5 + $0x8] sm:$0x3] }
 0x16e   : > { %968 = vrot.lane.b32.xlu2 %v961_v0, %s5745_s30  ;;  %966 = vrot.lane.b32.xlu1 %v960_v1, %s5745_s30 }
 0x16f   : > { %970 = vrot.lane.b32.xlu0 %v962_v3, %s5745_s30 }
 0x173   : > { %v1203_v4 = vld.sshfl [vmem:[#allocation1] sm:$0xff pattern:$0x75316420]  ;;  %v1204_v5 = vld.sshfl [vmem:[#allocation1 + $0x8] sm:$0xff pattern:$0x75316420] }
 0x174   : > { %v1205_v6 = vld.sshfl [vmem:[#allocation1 + $0x10] sm:$0xff pattern:$0x75316420]  ;;  %v1210_v61 = vpack.c.bf16 %v1204_v5, %v1204_v5  ;;  %v1209_v7 = vpack.c.bf16 %v1203_v4, %v1203_v4 }
 0x175   : > { %v1211_v8 = vpack.c.bf16 %v1205_v6, %v1205_v6 }
 0x176   : > { %1217 = vrot.lane.b32.xlu2 %v1210_v61, %s5714_s28  ;;  %1215 = vrot.lane.b32.xlu1 %v1209_v7, %s5714_s28 }
 0x177   : > { %1219 = vrot.lane.b32.xlu0 %v1211_v8, %s5714_s28  ;;  %s5780_s28 = smov 50  }
 0x17e   : > { %1134 = vrot.lane.b32.xlu2 %v1127_v9, %s5712_s24  ;;  %1132 = vrot.lane.b32.xlu1 %v1126_v10, %s5712_s24 }
 0x17f   : > { %1136 = vrot.lane.b32.xlu0 %v1128_v11, %s5712_s24  ;;  %v4390_v11 = vld [vmem:[%s5775_s5 + $0xa] sm:$0x3]  ;;  %s5743_s24 = smov 32  }
 0x186   : > { %627 = vperm.xlu1 %4564, %v619_v12   ;;  %1264 = vperm.xlu2 %4563, %v1261_v56   ;;  %v4394_v12 = vld [vmem:[%s5775_s5 + $0xc] sm:$0x3] }
 0x18e   : > { %1577 = vrot.lane.b32.xlu1 %v1576_v49, %s5723_s27  ;;  %s5781_s27 = smov 64  }
 0x1a8   : > { %v774_v13 = vpop.permute.xlu2 %773 }
 0x1b0   : > { %v902_v14 = vpop.permute.xlu2 %901 }
 0x1b8   : > { %v821_v22 = vpop.permute.xlu2 %820 }
 0x1c0   : > { %v772_v15 = vpop.permute.xlu1 %771  ;;  %v1052_v32 = vpop.permute.xlu2 %1051 }
 0x1c1   : > { %v776_v16 = vpop.permute.xlu0 %775  ;;  %v778_v17 = vsel %vm5747_vm15, %v772_v15, %v774_v13 }
 0x1c2   : > { %v779_v18 = vsel %vm5747_vm15, %v774_v13, %v776_v16  ;;  %v784_v19 = vsel %vm639_vm0, %v778_v17, 0  ;;  %v657_v13 = vpop.f32.mrf.mxu0 }
 0x1c3   : > { %v787_v20 = vsel %vm639_vm0, %v779_v18, 0  ;;  %796 = vmatpush.bf16.msra.mxu2 %v784_v19 }
 0x1c4   : > { %809 = vmatpush.bf16.msra.mxu3 %v787_v20 }
 0x1c6   : > { %4374 = vmatmul.msk.bf16.vlgmr.msra.gmra.mxu2 %vm635_vm1, %v4373_v21 }
 0x1c7   : > { %4375 = vmatmul.msk.bf16.vlgmr.msra.gmra.mxu3 %vm635_vm1, %v4373_v21 }
 0x1c8   : > { %v900_v23 = vpop.permute.xlu1 %899  ;;  %v969_v48 = vpop.permute.xlu2 %968 }
 0x1c9   : > { %v904_v24 = vpop.permute.xlu0 %903  ;;  %v906_v25 = vsel %vm5726_vm3, %v900_v23, %v902_v14 }
 0x1ca   : > { %v907_v26 = vsel %vm5726_vm3, %v902_v14, %v904_v24  ;;  %v912_v27 = vsel %vm639_vm0, %v906_v25, 0  ;;  %vm5730_vm3 = vcmask 637952   ;;  %v671_v14 = vpop.f32.mrf.mxu1 }
 0x1cb   : > { %v915_v28 = vsel %vm639_vm0, %v907_v26, 0  ;;  %924 = vmatpush.bf16.msrb.mxu2 %v912_v27 }
 0x1cc   : > { %937 = vmatpush.bf16.msrb.mxu3 %v915_v28 }
 0x1d0   : > { %v819_v29 = vpop.permute.xlu1 %818  ;;  %v1218_v60 = vpop.permute.xlu2 %1217 }
 0x1d1   : > { %v823_v30 = vpop.permute.xlu0 %822  ;;  %v825_v31 = vsel %vm5722_vm4, %v819_v29, %v821_v22 }
 0x1d2   : > { %v826_v33 = vsel %vm5722_vm4, %v821_v22, %v823_v30  ;;  %v831_v34 = vsel %vm639_vm0, %v825_v31, 0  ;;  %vm972_vm4 = vcmask 654336  }
 0x1d3   : > { %v834_v35 = vsel %vm639_vm0, %v826_v33, 0  ;;  %843 = vmatpush.bf16.msrb.mxu0 %v831_v34 }
 0x1d4   : > { %856 = vmatpush.bf16.msrb.mxu1 %v834_v35 }
 0x1d6   : > { %4376 = vmatmul.msk.bf16.vlgmr.msrb.gmra.mxu0 %vm635_vm1, %v719_v36  ;;  %4380 = vmatmul.msk.bf16.vlgmr.msrb.gmra.mxu2 %vm635_vm1, %v4379_v37 }
 0x1d7   : > { %4377 = vmatmul.msk.bf16.vlgmr.msrb.gmra.mxu1 %vm635_vm1, %v719_v36  ;;  %4381 = vmatmul.msk.bf16.vlgmr.msrb.gmra.mxu3 %vm635_vm1, %v4379_v37 }
 0x1d8   : > { %v1050_v39 = vpop.permute.xlu1 %1049  ;;  %v1135_v5 = vpop.permute.xlu2 %1134 }
 0x1d9   : > { %v1054_v41 = vpop.permute.xlu0 %1053  ;;  %v1056_v42 = vsel %vm5725_vm5, %v1050_v39, %v1052_v32 }
 0x1da   : > { %v1057_v43 = vsel %vm5725_vm5, %v1052_v32, %v1054_v41  ;;  %v1062_v44 = vsel %vm639_vm0, %v1056_v42, 0  ;;  %vm5731_vm5 = vcmask 629760   ;;  %v4428_v42 = vld [vmem:[%s5770_s21 + $0x4] sm:$0x3] }
 0x1db   : > { %v1065_v47 = vsel %vm639_vm0, %v1057_v43, 0  ;;  %1074 = vmatpush.bf16.msra.mxu2 %v1062_v44  ;;  %v2000_v43 = vperm.slane %v4428_v42, 0  ;;  %v2001_v44 = vperm.slane %v4428_v42, 1 }
 0x1dc   : > { %1087 = vmatpush.bf16.msra.mxu3 %v1065_v47 }
 0x1e0   : > { %v967_v50 = vpop.permute.xlu1 %966 }
 0x1e1   : > { %v971_v51 = vpop.permute.xlu0 %970  ;;  %v973_v52 = vsel %vm972_vm4, %v967_v50, %v969_v48 }
 0x1e2   : > { %v974_v53 = vsel %vm972_vm4, %v969_v48, %v971_v51  ;;  %v979_v55 = vsel %vm639_vm0, %v973_v52, 0  ;;  %v2002_v48 = vrot.slane %v2001_v44, 4 }
 0x1e3   : > { %v982_v57 = vsel %vm639_vm0, %v974_v53, 0  ;;  %991 = vmatpush.bf16.msra.mxu0 %v979_v55 }
 0x1e4   : > { %1004 = vmatpush.bf16.msra.mxu1 %v982_v57  ;;  %v2003_v53 = vsel %vm708_vm2, %v2000_v43, %v2002_v48 }
 0x1e6   : > { %4383 = vmatmul.msk.bf16.vlgmr.msra.gmra.mxu0 %vm635_vm1, %v4382_v58  ;;  %4387 = vmatmul.msk.bf16.vlgmr.msra.gmra.mxu2 %vm635_vm1, %v4386_v59 }
 0x1e7   : > { %4384 = vmatmul.msk.bf16.vlgmr.msra.gmra.mxu1 %vm635_vm1, %v4382_v58  ;;  %4388 = vmatmul.msk.bf16.vlgmr.msra.gmra.mxu3 %vm635_vm1, %v4386_v59  ;;  %v4397_v59 = vld [vmem:[%s5776_s25 + $0x2] sm:$0x3] }
 0x1e8   : > { %v1216_v62 = vpop.permute.xlu1 %1215 }
 0x1e9   : > { %v1220_v63 = vpop.permute.xlu0 %1219  ;;  %v1222_v0 = vsel %vm5731_vm5, %v1216_v62, %v1218_v60  ;;  %v1308_v62 = vperm.slane %v4397_v59, 0 }
 0x1ea   : > { %v1223_v1 = vsel %vm5731_vm5, %v1218_v60, %v1220_v63  ;;  %v1228_v3 = vsel %vm639_vm0, %v1222_v0, 0  ;;  %v1309_v63 = vperm.slane %v4397_v59, 1  ;;  %vm1431_vm5 = vcmask 261120  }
 0x1eb   : > { %v1231_v4 = vsel %vm639_vm0, %v1223_v1, 0  ;;  %1240 = vmatpush.bf16.msrb.mxu2 %v1228_v3 }
 0x1ec   : > { %1253 = vmatpush.bf16.msrb.mxu3 %v1231_v4  ;;  %v1265_v4 = vpop.permute.xlu2 %1264 }
 0x1f0   : > { %v1133_v6 = vpop.permute.xlu1 %1132 }
 0x1f1   : > { %v1137_v61 = vpop.permute.xlu0 %1136  ;;  %v1139_v7 = vsel %vm5730_vm3, %v1133_v6, %v1135_v5 }
 0x1f2   : > { %v1140_v8 = vsel %vm5730_vm3, %v1135_v5, %v1137_v61  ;;  %v1145_v9 = vsel %vm639_vm0, %v1139_v7, 0  ;;  %v1310_v5 = vrot.slane %v1309_v63, 4  ;;  %vm5732_vm3 = vcmask 130048  }
 0x1f3   : > { %v1148_v10 = vsel %vm639_vm0, %v1140_v8, 0  ;;  %1157 = vmatpush.bf16.msrb.mxu0 %v1145_v9 }
 0x1f4   : > { %1170 = vmatpush.bf16.msrb.mxu1 %v1148_v10  ;;  %v1311_v9 = vsel %vm708_vm2, %v1308_v62, %v1310_v5 }
 0x1f5   : > { %1312 = vrot.lane.b32.xlu2 %v1311_v9, %s5733_s20  ;;  %s5779_s20 = smov 49  }
 0x1f6   : > { %4391 = vmatmul.msk.bf16.vlgmr.msrb.gmra.mxu0 %vm635_vm1, %v4390_v11  ;;  %4395 = vmatmul.msk.bf16.vlgmr.msrb.gmra.mxu2 %vm635_vm1, %v4394_v12 }
 0x1f7   : > { %4392 = vmatmul.msk.bf16.vlgmr.msrb.gmra.mxu1 %vm635_vm1, %v4390_v11  ;;  %4396 = vmatmul.msk.bf16.vlgmr.msrb.gmra.mxu3 %vm635_vm1, %v4394_v12 }
 0x1f8   : > { %v628_v15 = vpop.permute.xlu1 %627 }
 0x1f9   : > { %v658_v16 = vadd.f32 %v657_v13, %v628_v15  ;;  %v672_v17 = vadd.f32 %v671_v14, %v628_v15  ;;  %v4414_v14 = vld [vmem:[%s5776_s25 + $0xa] sm:$0x3]  ;;  %v1843_v15 = vld [vmem:[%s5770_s21] sm:$0x3] }
 0x1fb   : > { %v676_v18 = vmax.f32 %v658_v16, 0.0  ;;  %v677_v19 = vmax.f32 %v672_v17, 0.0  ;;  %v1656_v17 = vperm.slane %v4414_v14, 0 }
 0x1fd   : > { %v681_v20 = vmin.f32 %v677_v19, 6.0  ;;  %v680_v21 = vmin.f32 %v676_v18, 6.0  ;;  %v1657_v18 = vperm.slane %v4414_v14, 1  ;;  %v4403_v19 = vld [vmem:[%s5776_s25 + $0x4] sm:$0x3] }
 0x1ff   : > { %v1831_v22 = vrot.slane %v681_v20, 4 }
 0x201   : > { %v1832_v23 = vsel %vm708_vm2, %v680_v21, %v1831_v22 }
 0x202   : > { %1833 = vrot.lane.b32.xlu1 %v1832_v23, %s5738_s29  ;;  %v1658_v23 = vrot.slane %v1657_v18, 4 }
 0x20a   : > { %2004 = vrot.lane.b32.xlu1 %v2003_v53, %s5727_s22  ;;  %s5778_s22 = smov 46  }
 0x249   : > { %v798_v24 = vpop.f32.mrf.mxu2 }
 0x24a   : > { %v811_v25 = vpop.f32.mrf.mxu3 }
 0x251   : > { %v800_v26 = vpop.f32.mrf.mxu2 }
 0x252   : > { %v813_v27 = vpop.f32.mrf.mxu3 }
 0x253   : > { %v845_v28 = vpop.f32.mrf.mxu0  ;;  %v1425_v27 = vperm.slane %v4403_v19, 1 }
 0x254   : > { %v858_v29 = vpop.f32.mrf.mxu1  ;;  %v846_v45 = vadd.f32 %v845_v28, %v798_v24  ;;  %v1846_v24 = vperm.slane %v1843_v15, 1  ;;  %v1659_v28 = vsel %vm708_vm2, %v1656_v17, %v1658_v23 }
 0x255   : > { %v859_v46 = vadd.f32 %v858_v29, %v811_v25  ;;  %1660 = vrot.lane.b32.xlu2 %v1659_v28, %s5745_s30 }
 0x259   : > { %v926_v30 = vpop.f32.mrf.mxu2 }
 0x25a   : > { %v939_v31 = vpop.f32.mrf.mxu3  ;;  %v943_v49 = vadd.f32 %v926_v30, %v846_v45  ;;  %v1845_v30 = vperm.slane %v1843_v15, 0 }
 0x25b   : > { %v847_v32 = vpop.f32.mrf.mxu0  ;;  %v944_v51 = vadd.f32 %v939_v31, %v859_v46  ;;  %v1847_v31 = vrot.slane %v1846_v24, 4  ;;  %v4920_v46 = vpop.permute.xlu1 %1577 }
 0x25c   : > { %v860_v33 = vpop.f32.mrf.mxu1  ;;  %v1424_v32 = vperm.slane %v4403_v19, 0 }
 0x25d   : > { %v1426_v33 = vrot.slane %v1425_v27, 4  ;;  %v1579_v27 = vrot.slane %v4920_v46, 4 }
 0x261   : > { %v928_v34 = vpop.f32.mrf.mxu2 }
 0x262   : > { %v941_v35 = vpop.f32.mrf.mxu3  ;;  %v4418_v34 = vld [vmem:[%s5776_s25 + $0xc] sm:$0x3] }
 0x263   : > { %v993_v36 = vpop.f32.mrf.mxu0  ;;  %v1848_v35 = vsel %vm708_vm2, %v1845_v30, %v1847_v31 }
 0x264   : > { %v1006_v37 = vpop.f32.mrf.mxu1  ;;  %v1010_v55 = vadd.f32 %v993_v36, %v943_v49  ;;  %v1427_v36 = vsel %vm708_vm2, %v1424_v32, %v1426_v33  ;;  %1849 = vrot.lane.b32.xlu2 %v1848_v35, %s5729_s1  ;;  %s5736_s1 = smov 112  }
 0x265   : > { %v1011_v57 = vadd.f32 %v1006_v37, %v944_v51  ;;  %v1740_v37 = vperm.slane %v4418_v34, 1 }
 0x269   : > { %v1076_v38 = vpop.f32.mrf.mxu2 }
 0x26a   : > { %v1089_v39 = vpop.f32.mrf.mxu3  ;;  %v1093_v58 = vadd.f32 %v1076_v38, %v1010_v55  ;;  %v1739_v38 = vperm.slane %v4418_v34, 0 }
 0x26b   : > { %v995_v40 = vpop.f32.mrf.mxu0  ;;  %v1094_v60 = vadd.f32 %v1089_v39, %v1011_v57  ;;  %v1741_v39 = vrot.slane %v1740_v37, 4 }
 0x26c   : > { %v1008_v41 = vpop.f32.mrf.mxu1  ;;  %v4422_v40 = vld [vmem:[%s5770_s21 + $0x2] sm:$0x3] }
 0x26d   : > { %v1742_v41 = vsel %vm708_vm2, %v1739_v38, %v1741_v39  ;;  %v1877_v42 = vperm.slane %v4422_v40, 1  ;;  %v1876_v43 = vperm.slane %v4422_v40, 0  ;;  %v4435_v38 = vld [vmem:[%s5770_s21 + $0x8] sm:$0x3]  ;;  %v4439_v39 = vld [vmem:[%s5770_s21 + $0xa] sm:$0x3] }
 0x26f   : > { %v1878_v44 = vrot.slane %v1877_v42, 4 }
 0x271   : > { %v1078_v47 = vpop.f32.mrf.mxu2  ;;  %v1879_v45 = vsel %vm708_vm2, %v1876_v43, %v1878_v44 }
 0x272   : > { %v1091_v50 = vpop.f32.mrf.mxu3  ;;  %v1286_v47 = vld [vmem:[%s5776_s25] sm:$0x3] }
 0x273   : > { %v1159_v52 = vpop.f32.mrf.mxu0  ;;  %v1289_v50 = vperm.slane %v1286_v47, 1  ;;  %v1288_v53 = vperm.slane %v1286_v47, 0 }
 0x274   : > { %v1172_v56 = vpop.f32.mrf.mxu1  ;;  %v1176_v0 = vadd.f32 %v1159_v52, %v1093_v58  ;;  %v1834_v52 = vpop.permute.xlu1 %1833 }
 0x275   : > { %v1177_v1 = vadd.f32 %v1172_v56, %v1094_v60  ;;  %v1290_v55 = vrot.slane %v1289_v50, 4  ;;  %v1313_v56 = vpop.permute.xlu2 %1312  ;;  %v1835_v57 = vrot.slane %v1834_v52, 4 }
 0x276   : > { %v1314_v58 = vrot.slane %v1313_v56, 4 }
 0x277   : > { %v1291_v59 = vsel %vm708_vm2, %v1288_v53, %v1290_v55  ;;  %v1836_v63 = vsel %vm691_vm6, %v1835_v57, %v1834_v52  ;;  %v2146_v53 = vperm.slane %v4435_v38, 0 }
 0x279   : > { %v1242_v3 = vpop.f32.mrf.mxu2 }
 0x27a   : > { %v1255_v6 = vpop.f32.mrf.mxu3  ;;  %v1259_v61 = vadd.f32 %v1242_v3, %v1176_v0 }
 0x27b   : > { %v1260_v7 = vadd.f32 %v1255_v6, %v1177_v1  ;;  %v1161_v8 = vpop.f32.mrf.mxu0 }
 0x27c   : > { %v1267_v10 = vadd.f32 %v1265_v4, %v1259_v61  ;;  %v1174_v11 = vpop.f32.mrf.mxu1  ;;  %v1316_v8 = vsel %vm5732_vm3, %v1314_v58, %v1313_v56  ;;  %vm1580_vm3 = vcmask 523264   ;;  %v2226_v56 = vperm.slane %v4439_v39, 0 }
 0x27d   : > { %v1268_v12 = vadd.f32 %v1265_v4, %v1260_v7 }
 0x27e   : > { %v1269_v13 = vmax.f32 %v1267_v10, 0.0 }
 0x27f   : > { %v1270_v16 = vmax.f32 %v1268_v12, 0.0 }
 0x280   : > { %v1271_v20 = vmin.f32 %v1269_v13, 6.0 }
 0x281   : > { %v1272_v21 = vmin.f32 %v1270_v16, 6.0  ;;  %v1244_v22 = vpop.f32.mrf.mxu2 }
 0x282   : > { %v1257_v25 = vpop.f32.mrf.mxu3 }
 0x283   : > { %v1275_v26 = vrot.slane %v1272_v21, 4 }
 0x285   : > { %v1276_v29 = vsel %vm708_vm2, %v1271_v20, %v1275_v26 }
 0x286   : > { %1277 = vrot.lane.b32.xlu0 %v1276_v29, %s5738_s29 }
 0x28e   : > { %1428 = vrot.lane.b32.xlu0 %v1427_v36, %s5743_s24  ;;  %v1581_v36 = vsel %vm1580_vm3, %v1579_v27, %v4920_v46 }
 0x296   : > { %1743 = vrot.lane.b32.xlu0 %v1742_v41, %s5740_s2  ;;  %v2147_v41 = vperm.slane %v4435_v38, 1 }
 0x298   : > { %v2148_v55 = vrot.slane %v2147_v41, 4 }
 0x29e   : > { %1880 = vrot.lane.b32.xlu0 %v1879_v45, %s5778_s22 }
 0x2af   : > { %v1661_v31 = vpop.permute.xlu2 %1660 }
 0x2b0   : > { %v1662_v37 = vrot.slane %v1661_v31, 4 }
 0x2f8   : > { %v1278_v48 = vpop.permute.xlu0 %1277 }
 0x2f9   : > { %v1279_v49 = vrot.slane %v1278_v48, 4 }
 0x2fb   : > { %v1280_v51 = vsel %vm691_vm6, %v1279_v49, %v1278_v48  ;;  %1284 = vst.msk [vmem:[#allocation2 + $0x8] sm:$0xf] %vm5735_vm7, %v1279_v49  ;;  %v2227_v49 = vperm.slane %v4439_v39, 1 }
 0x2fc   : > { %1283 = vst.msk [vmem:[#allocation2] sm:$0xff] %vm4763_vm8, %v1280_v51  ;;  %v1664_v51 = vsel %vm972_vm4, %v1662_v37, %v1661_v31 }
 0x300   : > { %v1429_v7 = vpop.permute.xlu0 %1428 }
 0x301   : > { %v1430_v9 = vrot.slane %v1429_v7, 4 }
 0x302   : > { %v1304_v60 = vld [vmem:[#allocation2 + $0x8] sm:$0xf] }
 0x303   : > { %v1503_v62 = vld [vmem:[#allocation2 + $0x8] sm:$0xf]  ;;  %v1320_v0 = vmul.f32 %v1314_v58, %v1304_v60  ;;  %v4933_v4 = vld [vmem:[#allocation2] sm:$0xff]  ;;  %v1432_v20 = vsel %vm1431_vm5, %v1430_v9, %v1429_v7 }
 0x304   : > { %v1569_v1 = vld [vmem:[#allocation2 + $0x8] sm:$0xf]  ;;  %v1293_v6 = vmul.f32 %v4933_v4, %v1291_v59  ;;  %1839 = vst.msk [vmem:[#allocation2] sm:$0xff] %vm4763_vm8, %v1836_v63  ;;  %v1319_v10 = vmul.f32 %v4933_v4, %v1316_v8  ;;  %v1435_v21 = vmul.f32 %v4933_v4, %v1432_v20  ;;  %v1584_v40 = vmul.f32 %v4933_v4, %v1581_v36  ;;  %v4443_v8 = vld [vmem:[%s5770_s21 + $0xc] sm:$0x3] }
 0x305   : > { %v4931_v3 = vld [vmem:[#allocation2 + $0x8] sm:$0xf]  ;;  %1327 = vst [vmem:[#allocation1 + $0x10] ss:$2 sm:$0xff] %v1320_v0  ;;  %v1585_v28 = vmul.f32 %v1579_v27, %v1569_v1  ;;  %v1667_v58 = vmul.f32 %v1664_v51, %v4933_v4  ;;  %v2149_v63 = vsel %vm708_vm2, %v2146_v53, %v2148_v55  ;;  %v1850_v0 = vpop.permute.xlu2 %1849 }
 0x306   : > { %v1652_v5 = vld [vmem:[#allocation2 + $0x8] sm:$0xf]  ;;  %1296 = vst [vmem:[#allocation1] ss:$2 sm:$0xff] %v1293_v6 }
 0x307   : > { %v1420_v61 = vld [vmem:[#allocation2 + $0x8] sm:$0xf]  ;;  %v1668_v42 = vmul.f32 %v1662_v37, %v1652_v5 }
 0x308   : > { %1840 = vst.msk [vmem:[#allocation2 + $0x8] sm:$0xf] %vm5735_vm7, %v1835_v57  ;;  %v1436_v14 = vmul.f32 %v1430_v9, %v1420_v61  ;;  %v1744_v46 = vpop.permute.xlu0 %1743  ;;  %v2228_v57 = vrot.slane %v2227_v49, 4  ;;  %vm1462_vm7 = vcmask 785408   ;;  %v1851_v61 = vrot.slane %v1850_v0, 4 }
 0x309   : > { %v1745_v52 = vrot.slane %v1744_v46, 4 }
 0x30a   : > { %v2229_v5 = vsel %vm708_vm2, %v2226_v56, %v2228_v57  ;;  %v1852_v20 = vsel %vm713_vm9, %v1851_v61, %v1850_v0 }
 0x30b   : > { %v1747_v7 = vsel %vm1462_vm7, %v1745_v52, %v1744_v46 }
 0x30c   : > { %v1330_v11 = vld.sshfl [vmem:[#allocation1 + $0x10] sm:$0xff pattern:$0x75316420]  ;;  %v1750_v9 = vmul.f32 %v1747_v7, %v4933_v4 }
 0x30d   : > { %v1297_v12 = vld.sshfl [vmem:[#allocation1] sm:$0xff pattern:$0x75316420]  ;;  %v1298_v13 = vld.sshfl [vmem:[#allocation1 + $0x8] sm:$0xff pattern:$0x75316420]  ;;  %v1336_v15 = vpack.c.bf16 %v1330_v11, %v1330_v11 }
 0x30e   : > { %1325 = vst [vmem:[#allocation1] ss:$2 sm:$0xff] %v1319_v10  ;;  %v1301_v16 = vpack.c.bf16 %v1297_v12, %v1297_v12  ;;  %v1302_v17 = vpack.c.bf16 %v1298_v13, %v1298_v13 }
 0x30f   : > { %1443 = vst [vmem:[#allocation1 + $0x10] ss:$2 sm:$0xff] %v1436_v14  ;;  %1344 = vrot.lane.b32.xlu2 %v1336_v15, %s5736_s1 }
 0x310   : > { %v1388_v18 = vsel %vm639_vm0, %v1301_v16, 0  ;;  %v1391_v19 = vsel %vm639_vm0, %v1302_v17, 0  ;;  %v1881_v14 = vpop.permute.xlu0 %1880  ;;  %v2307_v17 = vperm.slane %v4443_v8, 1 }
 0x311   : > { %1400 = vmatpush.bf16.msra.mxu2 %v1388_v18  ;;  %1413 = vmatpush.bf16.msra.mxu3 %v1391_v19  ;;  %v4981_v19 = vld [vmem:[#allocation2] sm:$0xff] }
 0x315   : > { %v1328_v22 = vld.sshfl [vmem:[#allocation1] sm:$0xff pattern:$0x75316420]  ;;  %v1329_v23 = vld.sshfl [vmem:[#allocation1 + $0x8] sm:$0xff pattern:$0x75316420] }
 0x316   : > { %1441 = vst [vmem:[#allocation1] ss:$2 sm:$0xff] %v1435_v21  ;;  %v1446_v24 = vld.sshfl [vmem:[#allocation1 + $0x10] sm:$0xff pattern:$0x75316420]  ;;  %v1335_v25 = vpack.c.bf16 %v1329_v23, %v1329_v23  ;;  %v1334_v35 = vpack.c.bf16 %v1328_v22, %v1328_v22  ;;  %v1882_v21 = vrot.slane %v1881_v14, 4  ;;  %v1855_v23 = vmul.f32 %v4981_v19, %v1852_v20 }
 0x317   : > { %1510 = vst [vmem:[#allocation1 + $0x10] ss:$2 sm:$0xff] %v1503_v62  ;;  %v1452_v26 = vpack.c.bf16 %v1446_v24, %v1446_v24  ;;  %v1751_v62 = vmul.f32 %v1745_v52, %v4931_v3  ;;  %v1842_v3 = vld [vmem:[#allocation2 + $0x8] sm:$0xf]  ;;  %v2308_v22 = vrot.slane %v2307_v17, 4 }
 0x318   : > { %1342 = vrot.lane.b32.xlu1 %v1335_v25, %s5736_s1  ;;  %v1856_v10 = vmul.f32 %v1851_v61, %v1842_v3  ;;  %v1873_v24 = vld [vmem:[#allocation2 + $0x8] sm:$0xf]  ;;  %v1294_v20 = vld [vmem:[%s5786_s7] sm:$0x3] }
 0x319   : > { %1460 = vrot.lane.b32.xlu0 %v1452_v26, %s5740_s2  ;;  %v1887_v25 = vmul.f32 %v1882_v21, %v1873_v24  ;;  %4401 = vmatmul.msk.bf16.vlgmr.msra.gmra.mxu2 %vm635_vm1, %v1294_v20 }
 0x31a   : > { %4402 = vmatmul.msk.bf16.vlgmr.msra.gmra.mxu3 %vm635_vm1, %v1294_v20 }
 0x31d   : > { %v1444_v29 = vld.sshfl [vmem:[#allocation1] sm:$0xff pattern:$0x75316420]  ;;  %v1445_v30 = vld.sshfl [vmem:[#allocation1 + $0x8] sm:$0xff pattern:$0x75316420] }
 0x31e   : > { %1508 = vst [vmem:[#allocation1] ss:$2 sm:$0xff] %v4933_v4  ;;  %v1513_v32 = vld.sshfl [vmem:[#allocation1 + $0x10] sm:$0xff pattern:$0x75316420]  ;;  %v1451_v33 = vpack.c.bf16 %v1445_v30, %v1445_v30  ;;  %v1450_v34 = vpack.c.bf16 %v1444_v29, %v1444_v29  ;;  %v2306_v4 = vperm.slane %v4443_v8, 0 }
 0x31f   : > { %1592 = vst [vmem:[#allocation1 + $0x10] ss:$2 sm:$0xff] %v1585_v28  ;;  %v1519_v50 = vpack.c.bf16 %v1513_v32, %v1513_v32  ;;  %v2005_v28 = vpop.permute.xlu1 %2004 }
 0x320   : > { %1458 = vrot.lane.b32.xlu2 %v1451_v33, %s5740_s2  ;;  %1456 = vrot.lane.b32.xlu1 %v1450_v34, %s5740_s2  ;;  %v2309_v31 = vsel %vm708_vm2, %v2306_v4, %v2308_v22  ;;  %v2006_v33 = vrot.slane %v2005_v28, 4  ;;  %v1883_v34 = vsel %vm746_vm10, %v1882_v21, %v1881_v14  ;;  %s5785_s2 = smov 83  }
 0x321   : > { %1340 = vrot.lane.b32.xlu0 %v1334_v35, %s5736_s1  ;;  %v1997_v35 = vld [vmem:[#allocation2 + $0x8] sm:$0xf]  ;;  %v1886_v36 = vmul.f32 %v4981_v19, %v1883_v34  ;;  %s5783_s1 = smov 82  }
 0x322   : > { %v2011_v37 = vmul.f32 %v2006_v33, %v1997_v35 }
 0x325   : > { %v1511_v43 = vld.sshfl [vmem:[#allocation1] sm:$0xff pattern:$0x75316420]  ;;  %v1512_v44 = vld.sshfl [vmem:[#allocation1 + $0x8] sm:$0xff pattern:$0x75316420] }
 0x326   : > { %1590 = vst [vmem:[#allocation1] ss:$2 sm:$0xff] %v1584_v40  ;;  %v4962_v45 = vld.sshfl [vmem:[#allocation1 + $0x10] sm:$0xff pattern:$0x75316420]  ;;  %v1518_v47 = vpack.c.bf16 %v1512_v44, %v1512_v44  ;;  %v1517_v48 = vpack.c.bf16 %v1511_v43, %v1511_v43 }
 0x327   : > { %1675 = vst [vmem:[#allocation1 + $0x10] ss:$2 sm:$0xff] %v1668_v42  ;;  %v1601_v30 = vpack.c.bf16 %v4962_v45, %v4962_v45  ;;  %v2007_v42 = vsel %vm5742_vm11, %v2006_v33, %v2005_v28  ;;  %v2077_v43 = vld [vmem:[#allocation2 + $0x8] sm:$0xf]  ;;  %vm1346_vm11 = vcmask 916480  }
 0x328   : > { %1525 = vrot.lane.b32.xlu2 %v1518_v47, %s5745_s30  ;;  %1523 = vrot.lane.b32.xlu1 %v1517_v48, %s5745_s30  ;;  %v2010_v44 = vmul.f32 %v4981_v19, %v2007_v42 }
 0x329   : > { %1527 = vrot.lane.b32.xlu0 %v1519_v50, %s5745_s30  ;;  %s5790_s30 = smov 78  }
 0x32d   : > { %v1593_v59 = vld.sshfl [vmem:[#allocation1] sm:$0xff pattern:$0x75316420]  ;;  %v1594_v60 = vld.sshfl [vmem:[#allocation1 + $0x8] sm:$0xff pattern:$0x75316420] }
 0x32e   : > { %1673 = vst [vmem:[#allocation1] ss:$2 sm:$0xff] %v1667_v58  ;;  %v1678_v1 = vld.sshfl [vmem:[#allocation1 + $0x10] sm:$0xff pattern:$0x75316420]  ;;  %v1600_v18 = vpack.c.bf16 %v1594_v60, %v1594_v60  ;;  %v1599_v32 = vpack.c.bf16 %v1593_v59, %v1593_v59 }
 0x32f   : > { %1758 = vst [vmem:[#allocation1 + $0x10] ss:$2 sm:$0xff] %v1751_v62  ;;  %v1684_v6 = vpack.c.bf16 %v1678_v1, %v1678_v1 }
 0x330   : > { %2150 = vrot.lane.b32.xlu2 %v2149_v63, %s5779_s20 }
 0x331   : > { %2230 = vrot.lane.b32.xlu0 %v2229_v5, %s5780_s28  ;;  %1692 = vrot.lane.b32.xlu1 %v1684_v6, %s5738_s29 }
 0x335   : > { %v1677_v11 = vld.sshfl [vmem:[#allocation1 + $0x8] sm:$0xff pattern:$0x75316420]  ;;  %v1676_v12 = vld.sshfl [vmem:[#allocation1] sm:$0xff pattern:$0x75316420] }
 0x336   : > { %v1761_v13 = vld.sshfl [vmem:[#allocation1 + $0x10] sm:$0xff pattern:$0x75316420]  ;;  %v1683_v15 = vpack.c.bf16 %v1677_v11, %v1677_v11  ;;  %1756 = vst [vmem:[#allocation1] ss:$2 sm:$0xff] %v1750_v9  ;;  %v1682_v16 = vpack.c.bf16 %v1676_v12, %v1676_v12 }
 0x337   : > { %1862 = vst [vmem:[#allocation1 + $0x10] ss:$2 sm:$0xff] %v1856_v10  ;;  %v1767_v50 = vpack.c.bf16 %v1761_v13, %v1761_v13  ;;  %v2143_v10 = vld [vmem:[#allocation2 + $0x8] sm:$0xf] }
 0x338   : > { %1688 = vrot.lane.b32.xlu2 %v1682_v16, %s5738_s29 }
 0x339   : > { %1690 = vrot.lane.b32.xlu0 %v1683_v15, %s5738_s29  ;;  %1607 = vrot.lane.b32.xlu1 %v1600_v18, %s5781_s27  ;;  %s5784_s29 = smov 81   ;;  %v4398_v18 = vld [vmem:[%s5786_s7 + $0x2] sm:$0x3] }
 0x33d   : > { %v1759_v26 = vld.sshfl [vmem:[#allocation1] sm:$0xff pattern:$0x75316420]  ;;  %v1760_v27 = vld.sshfl [vmem:[#allocation1 + $0x8] sm:$0xff pattern:$0x75316420] }
 0x33e   : > { %v1865_v29 = vld.sshfl [vmem:[#allocation1 + $0x10] sm:$0xff pattern:$0x75316420]  ;;  %1860 = vst [vmem:[#allocation1] ss:$2 sm:$0xff] %v1855_v23  ;;  %v1766_v53 = vpack.c.bf16 %v1760_v27, %v1760_v27  ;;  %v1765_v55 = vpack.c.bf16 %v1759_v26, %v1759_v26 }
 0x33f   : > { %1894 = vst [vmem:[#allocation1 + $0x10] ss:$2 sm:$0xff] %v1887_v25  ;;  %v1871_v59 = vpack.c.bf16 %v1865_v29, %v1865_v29 }
 0x340   : > { %1609 = vrot.lane.b32.xlu2 %v1601_v30, %s5781_s27 }
 0x341   : > { %1605 = vrot.lane.b32.xlu0 %v1599_v32, %s5781_s27  ;;  %2310 = vrot.lane.b32.xlu1 %v2309_v31, %s5782_s23 }
 0x345   : > { %v1863_v38 = vld.sshfl [vmem:[#allocation1] sm:$0xff pattern:$0x75316420]  ;;  %v1864_v39 = vld.sshfl [vmem:[#allocation1 + $0x8] sm:$0xff pattern:$0x75316420] }
 0x346   : > { %v1897_v40 = vld.sshfl [vmem:[#allocation1 + $0x10] sm:$0xff pattern:$0x75316420]  ;;  %1892 = vst [vmem:[#allocation1] ss:$2 sm:$0xff] %v1886_v36  ;;  %v1870_v60 = vpack.c.bf16 %v1864_v39, %v1864_v39  ;;  %v1869_v62 = vpack.c.bf16 %v1863_v38, %v1863_v38 }
 0x347   : > { %v1903_v41 = vpack.c.bf16 %v1897_v40, %v1897_v40  ;;  %2018 = vst [vmem:[#allocation1 + $0x10] ss:$2 sm:$0xff] %v2011_v37  ;;  %v4407_v38 = vld [vmem:[%s5786_s7 + $0x6] sm:$0x3] }
 0x349   : > { %1911 = vrot.lane.b32.xlu0 %v1903_v41, %s5783_s1 }
 0x34d   : > { %v1896_v45 = vld.sshfl [vmem:[#allocation1 + $0x8] sm:$0xff pattern:$0x75316420]  ;;  %v1895_v46 = vld.sshfl [vmem:[#allocation1] sm:$0xff pattern:$0x75316420] }
 0x34e   : > { %v1902_v47 = vpack.c.bf16 %v1896_v45, %v1896_v45  ;;  %v1901_v48 = vpack.c.bf16 %v1895_v46, %v1895_v46  ;;  %2016 = vst [vmem:[#allocation1] ss:$2 sm:$0xff] %v2010_v44  ;;  %v2021_v49 = vld.sshfl [vmem:[#allocation1 + $0x10] sm:$0xff pattern:$0x75316420] }
 0x34f   : > { %2084 = vst [vmem:[#allocation1 + $0x10] ss:$2 sm:$0xff] %v2077_v43  ;;  %v2027_v56 = vpack.c.bf16 %v2021_v49, %v2021_v49  ;;  %v2223_v46 = vld [vmem:[#allocation2 + $0x8] sm:$0xf] }
 0x350   : > { %1909 = vrot.lane.b32.xlu2 %v1902_v47, %s5783_s1  ;;  %1907 = vrot.lane.b32.xlu1 %v1901_v48, %s5783_s1  ;;  %v4404_v47 = vld [vmem:[%s5786_s7 + $0x4] sm:$0x3] }
 0x351   : > { %1775 = vrot.lane.b32.xlu0 %v1767_v50, %s5743_s24 }
 0x355   : > { %v2020_v51 = vld.sshfl [vmem:[#allocation1 + $0x8] sm:$0xff pattern:$0x75316420]  ;;  %v2019_v52 = vld.sshfl [vmem:[#allocation1] sm:$0xff pattern:$0x75316420] }
 0x356   : > { %2082 = vst [vmem:[#allocation1] ss:$2 sm:$0xff] %v4981_v19  ;;  %v2026_v57 = vpack.c.bf16 %v2020_v51, %v2020_v51  ;;  %v2025_v58 = vpack.c.bf16 %v2019_v52, %v2019_v52  ;;  %v2087_v14 = vld.sshfl [vmem:[#allocation1 + $0x10] sm:$0xff pattern:$0x75316420] }
 0x357   : > { %v2093_v39 = vpack.c.bf16 %v2087_v14, %v2087_v14 }
 0x358   : > { %1773 = vrot.lane.b32.xlu2 %v1766_v53, %s5743_s24  ;;  %1771 = vrot.lane.b32.xlu1 %v1765_v55, %s5743_s24  ;;  %s5788_s24 = smov 80  }
 0x359   : > { %2035 = vrot.lane.b32.xlu0 %v2027_v56, %s5784_s29 }
 0x35d   : > { %v2085_v15 = vld.sshfl [vmem:[#allocation1] sm:$0xff pattern:$0x75316420]  ;;  %v2086_v16 = vld.sshfl [vmem:[#allocation1 + $0x8] sm:$0xff pattern:$0x75316420] }
 0x35e   : > { %v2092_v41 = vpack.c.bf16 %v2086_v16, %v2086_v16  ;;  %v2091_v42 = vpack.c.bf16 %v2085_v15, %v2085_v15 }
 0x360   : > { %2033 = vrot.lane.b32.xlu2 %v2026_v57, %s5784_s29  ;;  %2031 = vrot.lane.b32.xlu1 %v2025_v58, %s5784_s29 }
 0x361   : > { %1957 = vrot.lane.b32.xlu0 %v1871_v59, %s5785_s2 }
 0x368   : > { %1955 = vrot.lane.b32.xlu2 %v1870_v60, %s5785_s2  ;;  %1953 = vrot.lane.b32.xlu1 %v1869_v62, %s5785_s2  ;;  %v4415_v62 = vld [vmem:[%s5786_s7 + $0xa] sm:$0x3] }
 0x369   : > { %v1345_v63 = vpop.permute.xlu2 %1344 }
 0x37a   : > { %v1459_v0 = vpop.permute.xlu2 %1458 }
 0x382   : > { %v1526_v1 = vpop.permute.xlu2 %1525 }
 0x38a   : > { %v1343_v5 = vpop.permute.xlu1 %1342  ;;  %v2151_v6 = vpop.permute.xlu2 %2150 }
 0x38b   : > { %v1461_v61 = vpop.permute.xlu0 %1460  ;;  %v1348_v7 = vsel %vm1346_vm11, %v1343_v5, %v1345_v63  ;;  %v2152_v3 = vrot.slane %v2151_v6, 4 }
 0x38c   : > { %v1464_v8 = vsel %vm1462_vm7, %v1459_v0, %v1461_v61  ;;  %v1356_v9 = vsel %vm639_vm0, %v1348_v7, 0  ;;  %v2303_v61 = vld [vmem:[#allocation2 + $0x8] sm:$0xf] }
 0x38d   : > { %v1472_v11 = vsel %vm639_vm0, %v1464_v8, 0  ;;  %v2153_v12 = vsel %vm1024_vm12, %v2152_v3, %v2151_v6  ;;  %v2157_v13 = vmul.f32 %v2152_v3, %v2143_v10  ;;  %1378 = vmatpush.bf16.msra.mxu1 %v1356_v9  ;;  %v4411_v3 = vld [vmem:[%s5786_s7 + $0x8] sm:$0x3] }
 0x38e   : > { %v2156_v17 = vmul.f32 %v2153_v12, %v4981_v19 }
 0x38f   : > { %2164 = vst [vmem:[#allocation1 + $0x10] ss:$2 sm:$0xff] %v2157_v13 }
 0x390   : > { %2162 = vst [vmem:[#allocation1] ss:$2 sm:$0xff] %v2156_v17  ;;  %4400 = vmatmul.msk.bf16.vlgmr.msra.gmra.mxu1 %vm635_vm1, %v4398_v18 }
 0x391   : > { %1494 = vmatpush.bf16.msrb.mxu1 %v1472_v11 }
 0x392   : > { %v1457_v21 = vpop.permute.xlu1 %1456  ;;  %v1689_v40 = vpop.permute.xlu2 %1688 }
 0x393   : > { %v1341_v4 = vpop.permute.xlu0 %1340  ;;  %v1463_v22 = vsel %vm1462_vm7, %v1457_v21, %v1459_v0 }
 0x394   : > { %v1347_v23 = vsel %vm1346_vm11, %v1341_v4, %v1343_v5  ;;  %v1469_v24 = vsel %vm639_vm0, %v1463_v22, 0 }
 0x395   : > { %v1353_v25 = vsel %vm639_vm0, %v1347_v23, 0 }
 0x396   : > { %1365 = vmatpush.bf16.msra.mxu0 %v1353_v25  ;;  %v2167_v26 = vld.sshfl [vmem:[#allocation1 + $0x10] sm:$0xff pattern:$0x75316420] }
 0x397   : > { %v2173_v27 = vpack.c.bf16 %v2167_v26, %v2167_v26  ;;  %v2166_v28 = vld.sshfl [vmem:[#allocation1 + $0x8] sm:$0xff pattern:$0x75316420]  ;;  %v2165_v29 = vld.sshfl [vmem:[#allocation1] sm:$0xff pattern:$0x75316420] }
 0x398   : > { %v2172_v30 = vpack.c.bf16 %v2166_v28, %v2166_v28  ;;  %v2171_v31 = vpack.c.bf16 %v2165_v29, %v2165_v29  ;;  %v4419_v29 = vld [vmem:[%s5786_s7 + $0xc] sm:$0x3]  ;;  %s5804_s7 = smov 32  }
 0x399   : > { %2181 = vrot.lane.b32.xlu0 %v2173_v27, %s5787_s4  ;;  %4399 = vmatmul.msk.bf16.vlgmr.msra.gmra.mxu0 %vm635_vm1, %v4398_v18 }
 0x39a   : > { %1481 = vmatpush.bf16.msrb.mxu0 %v1469_v24  ;;  %v1524_v32 = vpop.permute.xlu1 %1523  ;;  %2179 = vrot.lane.b32.xlu2 %v2172_v30, %s5787_s4  ;;  %v1610_v51 = vpop.permute.xlu2 %1609 }
 0x39b   : > { %2177 = vrot.lane.b32.xlu1 %v2171_v31, %s5787_s4  ;;  %v1528_v33 = vpop.permute.xlu0 %1527  ;;  %v1529_v34 = vsel %vm972_vm4, %v1524_v32, %v1526_v1 }
 0x39c   : > { %v1530_v35 = vsel %vm972_vm4, %v1526_v1, %v1528_v33  ;;  %v1535_v36 = vsel %vm639_vm0, %v1529_v34, 0 }
 0x39d   : > { %v1538_v37 = vsel %vm639_vm0, %v1530_v35, 0  ;;  %1547 = vmatpush.bf16.msrb.mxu2 %v1535_v36 }
 0x39e   : > { %1560 = vmatpush.bf16.msrb.mxu3 %v1538_v37 }
 0x3a0   : > { %4408 = vmatmul.msk.bf16.vlgmr.msrb.gmra.mxu2 %vm635_vm1, %v4407_v38  ;;  %4406 = vmatmul.msk.bf16.vlgmr.msrb.gmra.mxu1 %vm635_vm1, %v4404_v47 }
 0x3a1   : > { %2101 = vrot.lane.b32.xlu0 %v2093_v39, %s5788_s24  ;;  %4409 = vmatmul.msk.bf16.vlgmr.msrb.gmra.mxu3 %vm635_vm1, %v4407_v38 }
 0x3a2   : > { %2099 = vrot.lane.b32.xlu2 %v2092_v41, %s5788_s24 }
 0x3a3   : > { %2097 = vrot.lane.b32.xlu1 %v2091_v42, %s5788_s24  ;;  %v2231_v43 = vpop.permute.xlu0 %2230  ;;  %v1693_v44 = vpop.permute.xlu1 %1692 }
 0x3a4   : > { %v2232_v45 = vrot.slane %v2231_v43, 4 }
 0x3a6   : > { %v2233_v48 = vsel %vm5749_vm13, %v2232_v45, %v2231_v43  ;;  %v2237_v49 = vmul.f32 %v2232_v45, %v2223_v46  ;;  %vm5794_vm13 = vcmask 678912  }
 0x3a7   : > { %v2236_v50 = vmul.f32 %v2233_v48, %v4981_v19 }
 0x3a8   : > { %2244 = vst [vmem:[#allocation1 + $0x10] ss:$2 sm:$0xff] %v2237_v49 }
 0x3a9   : > { %2242 = vst [vmem:[#allocation1] ss:$2 sm:$0xff] %v2236_v50  ;;  %4405 = vmatmul.msk.bf16.vlgmr.msrb.gmra.mxu0 %vm635_vm1, %v4404_v47  ;;  %v4423_v47 = vld [vmem:[%s5795_s9 + $0x2] sm:$0x3] }
 0x3aa   : > { %v1910_v6 = vpop.permute.xlu2 %1909 }
 0x3ab   : > { %v1608_v52 = vpop.permute.xlu1 %1607  ;;  %v1691_v53 = vpop.permute.xlu0 %1690 }
 0x3ac   : > { %v1613_v55 = vsel %vm1580_vm3, %v1608_v52, %v1610_v51  ;;  %v1695_v56 = vsel %vm691_vm6, %v1689_v40, %v1691_v53  ;;  %v1696_v57 = vsel %vm691_vm6, %v1691_v53, %v1693_v44  ;;  %v2382_v40 = vld [vmem:[%s5792_s10] sm:$0xf]  ;;  %v4429_v53 = vld [vmem:[%s5795_s9 + $0x4] sm:$0x3]  ;;  %s5805_s10 = smov 96  }
 0x3ad   : > { %v1621_v58 = vsel %vm639_vm0, %v1613_v55, 0  ;;  %v1701_v59 = vsel %vm639_vm0, %v1695_v56, 0  ;;  %v1704_v60 = vsel %vm639_vm0, %v1696_v57, 0 }
 0x3ae   : > { %1643 = vmatpush.bf16.msra.mxu1 %v1621_v58  ;;  %1713 = vmatpush.bf16.msra.mxu2 %v1701_v59 }
 0x3af   : > { %1726 = vmatpush.bf16.msra.mxu3 %v1704_v60  ;;  %v2247_v10 = vld.sshfl [vmem:[#allocation1 + $0x10] sm:$0xff pattern:$0x75316420] }
 0x3b0   : > { %v2245_v12 = vld.sshfl [vmem:[#allocation1] sm:$0xff pattern:$0x75316420]  ;;  %v2246_v13 = vld.sshfl [vmem:[#allocation1 + $0x8] sm:$0xff pattern:$0x75316420]  ;;  %v2253_v30 = vpack.c.bf16 %v2247_v10, %v2247_v10 }
 0x3b1   : > { %4416 = vmatmul.msk.bf16.vlgmr.msra.gmra.mxu2 %vm635_vm1, %v4415_v62  ;;  %4413 = vmatmul.msk.bf16.vlgmr.msra.gmra.mxu1 %vm635_vm1, %v4411_v3  ;;  %v2252_v32 = vpack.c.bf16 %v2246_v13, %v2246_v13  ;;  %v2251_v33 = vpack.c.bf16 %v2245_v12, %v2245_v12  ;;  %v1415_v13 = vpop.f32.mrf.mxu3 }
 0x3b2   : > { %4417 = vmatmul.msk.bf16.vlgmr.msra.gmra.mxu3 %vm635_vm1, %v4415_v62  ;;  %v1774_v17 = vpop.permute.xlu2 %1773 }
 0x3b3   : > { %v2311_v63 = vpop.permute.xlu1 %2310  ;;  %v1606_v0 = vpop.permute.xlu0 %1605 }
 0x3b4   : > { %v2312_v1 = vrot.slane %v2311_v63, 4  ;;  %v1612_v5 = vsel %vm1580_vm3, %v1606_v0, %v1608_v52  ;;  %v1857_v52 = vld [vmem:[%s5795_s9] sm:$0x3] }
 0x3b5   : > { %v1618_v7 = vsel %vm639_vm0, %v1612_v5, 0 }
 0x3b6   : > { %v2313_v8 = vsel %vm5748_vm14, %v2312_v1, %v2311_v63  ;;  %v2317_v9 = vmul.f32 %v2312_v1, %v2303_v61  ;;  %1630 = vmatpush.bf16.msra.mxu0 %v1618_v7  ;;  %v4436_v63 = vld [vmem:[%s5795_s9 + $0x8] sm:$0x3] }
 0x3b7   : > { %v2316_v11 = vmul.f32 %v2313_v8, %v4981_v19  ;;  %v4432_v8 = vld [vmem:[%s5795_s9 + $0x6] sm:$0x3] }
 0x3b8   : > { %2324 = vst [vmem:[#allocation1 + $0x10] ss:$2 sm:$0xff] %v2317_v9 }
 0x3b9   : > { %2322 = vst [vmem:[#allocation1] ss:$2 sm:$0xff] %v2316_v11  ;;  %4412 = vmatmul.msk.bf16.vlgmr.msra.gmra.mxu0 %vm635_vm1, %v4411_v3 }
 0x3ba   : > { %v2034_v31 = vpop.permute.xlu2 %2033 }
 0x3bb   : > { %v1912_v14 = vpop.permute.xlu0 %1911 }
 0x3bc   : > { %v1914_v15 = vsel %vm5747_vm15, %v1910_v6, %v1912_v14  ;;  %v1402_v14 = vpop.f32.mrf.mxu2 }
 0x3bd   : > { %v1922_v16 = vsel %vm639_vm0, %v1914_v15, 0 }
 0x3be   : > { %1944 = vmatpush.bf16.msrb.mxu3 %v1922_v16 }
 0x3bf   : > { %v2327_v18 = vld.sshfl [vmem:[#allocation1 + $0x10] sm:$0xff pattern:$0x75316420] }
 0x3c0   : > { %v2333_v20 = vpack.c.bf16 %v2327_v18, %v2327_v18  ;;  %v2326_v21 = vld.sshfl [vmem:[#allocation1 + $0x8] sm:$0xff pattern:$0x75316420]  ;;  %v2325_v4 = vld.sshfl [vmem:[#allocation1] sm:$0xff pattern:$0x75316420] }
 0x3c1   : > { %v2332_v22 = vpack.c.bf16 %v2326_v21, %v2326_v21  ;;  %v2331_v23 = vpack.c.bf16 %v2325_v4, %v2325_v4  ;;  %v1417_v4 = vpop.f32.mrf.mxu3 }
 0x3c2   : > { %2341 = vrot.lane.b32.xlu0 %v2333_v20, %s5789_s6  ;;  %v1908_v19 = vpop.permute.xlu1 %1907  ;;  %v1956_v42 = vpop.permute.xlu2 %1955  ;;  %4425 = vmatmul.msk.bf16.vlgmr.msrb.gmra.mxu3 %vm635_vm1, %v4423_v47 }
 0x3c3   : > { %v1913_v24 = vsel %vm5747_vm15, %v1908_v19, %v1910_v6  ;;  %2339 = vrot.lane.b32.xlu2 %v2332_v22, %s5789_s6  ;;  %2337 = vrot.lane.b32.xlu1 %v2331_v23, %s5789_s6  ;;  %v1776_v25 = vpop.permute.xlu0 %1775  ;;  %vm5791_vm15 = vcmask 662528  }
 0x3c4   : > { %v1919_v26 = vsel %vm639_vm0, %v1913_v24, 0  ;;  %v1779_v27 = vsel %vm1431_vm5, %v1774_v17, %v1776_v25  ;;  %vm5793_vm14 = vmmov %vm5791_vm15  ;;  %v1404_v22 = vpop.f32.mrf.mxu2 }
 0x3c5   : > { %v1787_v28 = vsel %vm639_vm0, %v1779_v27, 0  ;;  %1931 = vmatpush.bf16.msrb.mxu2 %v1919_v26 }
 0x3c6   : > { %1809 = vmatpush.bf16.msrb.mxu1 %v1787_v28 }
 0x3c8   : > { %4424 = vmatmul.msk.bf16.vlgmr.msrb.gmra.mxu2 %vm635_vm1, %v4423_v47 }
 0x3c9   : > { %4421 = vmatmul.msk.bf16.vlgmr.msrb.gmra.mxu1 %vm635_vm1, %v4419_v29 }
 0x3ca   : > { %2261 = vrot.lane.b32.xlu0 %v2253_v30, %s5790_s30  ;;  %v1772_v34 = vpop.permute.xlu1 %1771 }
 0x3cb   : > { %v1778_v35 = vsel %vm1431_vm5, %v1772_v34, %v1774_v17  ;;  %2259 = vrot.lane.b32.xlu2 %v2252_v32, %s5790_s30  ;;  %2257 = vrot.lane.b32.xlu1 %v2251_v33, %s5790_s30  ;;  %v2036_v36 = vpop.permute.xlu0 %2035 }
 0x3cc   : > { %v1784_v37 = vsel %vm639_vm0, %v1778_v35, 0  ;;  %v2038_v38 = vsel %vm5791_vm15, %v2034_v31, %v2036_v36  ;;  %v4444_v35 = vld [vmem:[%s5795_s9 + $0xc] sm:$0x3] }
 0x3cd   : > { %v2046_v39 = vsel %vm639_vm0, %v2038_v38, 0  ;;  %1796 = vmatpush.bf16.msrb.mxu0 %v1784_v37 }
 0x3ce   : > { %2068 = vmatpush.bf16.msra.mxu3 %v2046_v39 }
 0x3d0   : > { %4420 = vmatmul.msk.bf16.vlgmr.msrb.gmra.mxu0 %vm635_vm1, %v4419_v29 }
 0x3d2   : > { %v2032_v41 = vpop.permute.xlu1 %2031  ;;  %4431 = vmatmul.msk.bf16.vlgmr.msra.gmra.mxu3 %vm635_vm1, %v4429_v53 }
 0x3d3   : > { %v2037_v43 = vsel %vm5793_vm14, %v2032_v41, %v2034_v31  ;;  %2385 = vperm.xlu2 %4563, %v2382_v40   ;;  %v1958_v44 = vpop.permute.xlu0 %1957  ;;  %vm5796_vm14 = vmmov %vm5794_vm13 }
 0x3d4   : > { %v2043_v45 = vsel %vm639_vm0, %v2037_v43, 0  ;;  %v1960_v46 = vsel %vm5794_vm13, %v1956_v42, %v1958_v44  ;;  %vm5797_vm13 = vcmask 646144  }
 0x3d5   : > { %v1968_v48 = vsel %vm639_vm0, %v1960_v46, 0  ;;  %2055 = vmatpush.bf16.msra.mxu2 %v2043_v45  ;;  %vm5798_vm15 = vmmov %vm5797_vm13 }
 0x3d6   : > { %1990 = vmatpush.bf16.msra.mxu1 %v1968_v48 }
 0x3d8   : > { %4430 = vmatmul.msk.bf16.vlgmr.msra.gmra.mxu2 %vm635_vm1, %v4429_v53 }
 0x3d9   : > { %4427 = vmatmul.msk.bf16.vlgmr.msra.gmra.mxu1 %vm635_vm1, %v1857_v52 }
 0x3da   : > { %v1954_v49 = vpop.permute.xlu1 %1953 }
 0x3db   : > { %v1959_v50 = vsel %vm5796_vm14, %v1954_v49, %v1956_v42  ;;  %vm5799_vm14 = vcmask 629760   ;;  %v4440_v49 = vld [vmem:[%s5795_s9 + $0xa] sm:$0x3]  ;;  %s5803_s9 = smov 16  }
 0x3dc   : > { %v1965_v51 = vsel %vm639_vm0, %v1959_v50, 0 }
 0x3dd   : > { %1977 = vmatpush.bf16.msra.mxu0 %v1965_v51 }
 0x3e0   : > { %4426 = vmatmul.msk.bf16.vlgmr.msra.gmra.mxu0 %vm635_vm1, %v1857_v52 }
 0x3f4   : > { %v2180_v55 = vpop.permute.xlu2 %2179 }
 0x3fc   : > { %v2100_v0 = vpop.permute.xlu2 %2099 }
 0x40b   : > { %v2182_v56 = vpop.permute.xlu0 %2181 }
 0x40c   : > { %v2184_v57 = vsel %vm5797_vm13, %v2180_v55, %v2182_v56  ;;  %vm5800_vm13 = vmmov %vm5799_vm14 }
 0x40d   : > { %v2178_v58 = vpop.permute.xlu1 %2177  ;;  %v2192_v59 = vsel %vm639_vm0, %v2184_v57, 0  ;;  %v1380_v9 = vpop.f32.mrf.mxu1 }
 0x40e   : > { %v2183_v60 = vsel %vm5798_vm15, %v2178_v58, %v2180_v55  ;;  %2214 = vmatpush.bf16.msrb.mxu3 %v2192_v59  ;;  %v1416_v15 = vadd.f32 %v1415_v13, %v1380_v9  ;;  %vm5801_vm15 = vcmask 637952  }
 0x40f   : > { %v2189_v62 = vsel %vm639_vm0, %v2183_v60, 0 }
 0x410   : > { %2201 = vmatpush.bf16.msrb.mxu2 %v2189_v62 }
 0x411   : > { %4438 = vmatmul.msk.bf16.vlgmr.msrb.gmra.mxu3 %vm635_vm1, %v4436_v63 }
 0x413   : > { %4437 = vmatmul.msk.bf16.vlgmr.msrb.gmra.mxu2 %vm635_vm1, %v4436_v63  ;;  %v2102_v1 = vpop.permute.xlu0 %2101 }
 0x414   : > { %v2104_v5 = vsel %vm972_vm4, %v2100_v0, %v2102_v1 }
 0x415   : > { %v2098_v6 = vpop.permute.xlu1 %2097  ;;  %v2112_v61 = vsel %vm639_vm0, %v2104_v5, 0  ;;  %v1382_v11 = vpop.f32.mrf.mxu1 }
 0x416   : > { %v2103_v7 = vsel %vm972_vm4, %v2098_v6, %v2100_v0  ;;  %2134 = vmatpush.bf16.msrb.mxu1 %v2112_v61  ;;  %v1367_v10 = vpop.f32.mrf.mxu0 }
 0x417   : > { %v2109_v3 = vsel %vm639_vm0, %v2103_v7, 0  ;;  %v1403_v16 = vadd.f32 %v1402_v14, %v1367_v10 }
 0x418   : > { %2121 = vmatpush.bf16.msrb.mxu0 %v2109_v3 }
 0x419   : > { %4434 = vmatmul.msk.bf16.vlgmr.msrb.gmra.mxu1 %vm635_vm1, %v4432_v8 }
 0x41b   : > { %4433 = vmatmul.msk.bf16.vlgmr.msrb.gmra.mxu0 %vm635_vm1, %v4432_v8 }
 0x41d   : > { %v1496_v17 = vpop.f32.mrf.mxu1  ;;  %v2340_v19 = vpop.permute.xlu2 %2339 }
 0x41e   : > { %v1369_v12 = vpop.f32.mrf.mxu0  ;;  %v1501_v18 = vadd.f32 %v1496_v17, %v1416_v15 }
 0x423   : > { %v1549_v26 = vpop.f32.mrf.mxu2 }
 0x424   : > { %v1562_v25 = vpop.f32.mrf.mxu3 }
 0x425   : > { %v1498_v23 = vpop.f32.mrf.mxu1  ;;  %v1567_v28 = vadd.f32 %v1562_v25, %v1501_v18  ;;  %v2260_v42 = vpop.permute.xlu2 %2259 }
 0x426   : > { %v1483_v20 = vpop.f32.mrf.mxu0 }
 0x427   : > { %v1500_v21 = vadd.f32 %v1483_v20, %v1403_v16 }
 0x429   : > { %v1566_v29 = vadd.f32 %v1549_v26, %v1500_v21  ;;  %v4447_v26 = vld [vmem:[%s5776_s25 + $0x2] sm:$0x3] }
 0x42b   : > { %v1551_v41 = vpop.f32.mrf.mxu2 }
 0x42c   : > { %v1564_v40 = vpop.f32.mrf.mxu3 }
 0x42e   : > { %v1485_v24 = vpop.f32.mrf.mxu0  ;;  %v1645_v36 = vpop.f32.mrf.mxu1 }
 0x42f   : > { %v1650_v37 = vadd.f32 %v1645_v36, %v1567_v28  ;;  %v2429_v28 = vperm.slane %v4447_v26, 1  ;;  %v4453_v36 = vld [vmem:[%s5776_s25 + $0x4] sm:$0x3] }
 0x434   : > { %v2342_v27 = vpop.permute.xlu0 %2341  ;;  %v1715_v53 = vpop.f32.mrf.mxu2 }
 0x435   : > { %v2344_v30 = vsel %vm5799_vm14, %v2340_v19, %v2342_v27  ;;  %v2338_v31 = vpop.permute.xlu1 %2337  ;;  %vm5802_vm14 = vmmov %vm5801_vm15  ;;  %v1728_v52 = vpop.f32.mrf.mxu3  ;;  %v2428_v27 = vperm.slane %v4447_v26, 0 }
 0x436   : > { %v2352_v32 = vsel %vm639_vm0, %v2344_v30, 0  ;;  %v2343_v33 = vsel %vm5800_vm13, %v2338_v31, %v2340_v19  ;;  %v1632_v38 = vpop.f32.mrf.mxu0  ;;  %v1647_v50 = vpop.f32.mrf.mxu1  ;;  %v1733_v55 = vadd.f32 %v1728_v52, %v1650_v37  ;;  %v4464_v30 = vld [vmem:[%s5776_s25 + $0xa] sm:$0x3]  ;;  %v4468_v37 = vld [vmem:[%s5776_s25 + $0xc] sm:$0x3]  ;;  %vm5807_vm13 = vcmask 388096  }
 0x437   : > { %v2349_v34 = vsel %vm639_vm0, %v2343_v33, 0  ;;  %2374 = vmatpush.bf16.msra.mxu3 %v2352_v32  ;;  %v1649_v39 = vadd.f32 %v1632_v38, %v1566_v29  ;;  %v2430_v29 = vrot.slane %v2429_v28, 4  ;;  %v2768_v31 = vperm.slane %v4464_v30, 1 }
 0x438   : > { %2361 = vmatpush.bf16.msra.mxu2 %v2349_v34  ;;  %v2767_v33 = vperm.slane %v4464_v30, 0  ;;  %v2541_v38 = vperm.slane %v4453_v36, 0  ;;  %v2848_v41 = vperm.slane %v4468_v37, 1 }
 0x439   : > { %v1732_v56 = vadd.f32 %v1715_v53, %v1649_v39  ;;  %v2431_v32 = vsel %vm708_vm2, %v2428_v27, %v2430_v29  ;;  %v2769_v34 = vrot.slane %v2768_v31, 4  ;;  %v2542_v39 = vperm.slane %v4453_v36, 1 }
 0x43a   : > { %4446 = vmatmul.msk.bf16.vlgmr.msra.gmra.mxu3 %vm635_vm1, %v4444_v35  ;;  %2432 = vrot.lane.b32.xlu1 %v2431_v32, %s5803_s9 }
 0x43b   : > { %4445 = vmatmul.msk.bf16.vlgmr.msra.gmra.mxu2 %vm635_vm1, %v4444_v35  ;;  %v2770_v35 = vsel %vm708_vm2, %v2767_v33, %v2769_v34  ;;  %v2543_v40 = vrot.slane %v2542_v39, 4 }
 0x43c   : > { %v2262_v43 = vpop.permute.xlu0 %2261  ;;  %v1717_v60 = vpop.f32.mrf.mxu2 }
 0x43d   : > { %v2264_v44 = vsel %vm5801_vm15, %v2260_v42, %v2262_v43  ;;  %v2258_v45 = vpop.permute.xlu1 %2257  ;;  %v1730_v59 = vpop.f32.mrf.mxu3  ;;  %v2544_v43 = vsel %vm708_vm2, %v2541_v38, %v2543_v40  ;;  %vm5808_vm15 = vcmask 130048  }
 0x43e   : > { %v2272_v46 = vsel %vm639_vm0, %v2264_v44, 0  ;;  %v2263_v47 = vsel %vm5802_vm14, %v2258_v45, %v2260_v42  ;;  %v1634_v51 = vpop.f32.mrf.mxu0  ;;  %2545 = vrot.lane.b32.xlu2 %v2544_v43, %s5804_s7  ;;  %v2847_v45 = vperm.slane %v4468_v37, 0  ;;  %v2386_v59 = vpop.permute.xlu2 %2385  ;;  %vm5812_vm14 = vmmov %vm5807_vm13 }
 0x43f   : > { %v2269_v48 = vsel %vm639_vm0, %v2263_v47, 0  ;;  %2294 = vmatpush.bf16.msra.mxu1 %v2272_v46  ;;  %v2849_v46 = vrot.slane %v2848_v41, 4 }
 0x440   : > { %2281 = vmatpush.bf16.msra.mxu0 %v2269_v48 }
 0x442   : > { %4442 = vmatmul.msk.bf16.vlgmr.msra.gmra.mxu1 %vm635_vm1, %v4440_v49  ;;  %2771 = vrot.lane.b32.xlu1 %v2770_v35, %s5788_s24 }
 0x443   : > { %4441 = vmatmul.msk.bf16.vlgmr.msra.gmra.mxu0 %vm635_vm1, %v4440_v49 }
 0x445   : > { %v1946_v5 = vpop.f32.mrf.mxu3 }
 0x446   : > { %v1811_v57 = vpop.f32.mrf.mxu1 }
 0x447   : > { %v5153_v58 = vadd.f32 %v1811_v57, %v1733_v55  ;;  %v2850_v55 = vsel %vm708_vm2, %v2847_v45, %v2849_v46 }
 0x448   : > { %2851 = vrot.lane.b32.xlu2 %v2850_v55, %s5805_s10 }
 0x44b   : > { %v1933_v6 = vpop.f32.mrf.mxu2 }
 0x44d   : > { %v1798_v62 = vpop.f32.mrf.mxu0  ;;  %v1948_v9 = vpop.f32.mrf.mxu3 }
 0x44e   : > { %v5155_v63 = vadd.f32 %v1798_v62, %v1732_v56  ;;  %v1813_v0 = vpop.f32.mrf.mxu1 }
 0x453   : > { %v1935_v10 = vpop.f32.mrf.mxu2 }
 0x455   : > { %v1800_v1 = vpop.f32.mrf.mxu0  ;;  %v2070_v13 = vpop.f32.mrf.mxu3 }
 0x456   : > { %v1992_v61 = vpop.f32.mrf.mxu1 }
 0x457   : > { %v1993_v7 = vadd.f32 %v1992_v61, %v1946_v5 }
 0x459   : > { %v2075_v14 = vadd.f32 %v2070_v13, %v1993_v7 }
 0x45b   : > { %v2057_v15 = vpop.f32.mrf.mxu2 }
 0x45d   : > { %v1979_v3 = vpop.f32.mrf.mxu0  ;;  %v2072_v17 = vpop.f32.mrf.mxu3 }
 0x45e   : > { %v1980_v8 = vadd.f32 %v1979_v3, %v1933_v6  ;;  %v1994_v11 = vpop.f32.mrf.mxu1  ;;  %v4460_v3 = vld [vmem:[%s5776_s25 + $0x8] sm:$0x3]  ;;  %v2407_v17 = vld [vmem:[%s5776_s25] sm:$0x3] }
 0x460   : > { %v2074_v16 = vadd.f32 %v2057_v15, %v1980_v8 }
 0x463   : > { %v2059_v18 = vpop.f32.mrf.mxu2 }
 0x465   : > { %v1981_v12 = vpop.f32.mrf.mxu0 }
 0x466   : > { %v2688_v12 = vperm.slane %v4460_v3, 1 }
 0x468   : > { %v2689_v15 = vrot.slane %v2688_v12, 4 }
 0x494   : > { %v2216_v20 = vpop.f32.mrf.mxu3 }
 0x496   : > { %v2203_v21 = vpop.f32.mrf.mxu2  ;;  %v2136_v4 = vpop.f32.mrf.mxu1 }
 0x497   : > { %v2141_v42 = vadd.f32 %v2136_v4, %v2075_v14  ;;  %v2687_v14 = vperm.slane %v4460_v3, 0 }
 0x498   : > { %v2123_v22 = vpop.f32.mrf.mxu0  ;;  %v2546_v30 = vpop.permute.xlu2 %2545 }
 0x499   : > { %v2140_v44 = vadd.f32 %v2123_v22, %v2074_v16  ;;  %v2221_v48 = vadd.f32 %v2216_v20, %v2141_v42  ;;  %v2690_v16 = vsel %vm708_vm2, %v2687_v14, %v2689_v15  ;;  %v2410_v20 = vperm.slane %v2407_v17, 1 }
 0x49a   : > { %v2409_v22 = vperm.slane %v2407_v17, 0  ;;  %v2547_v31 = vrot.slane %v2546_v30, 4 }
 0x49b   : > { %v2220_v50 = vadd.f32 %v2203_v21, %v2140_v44 }
 0x49c   : > { %v2218_v23 = vpop.f32.mrf.mxu3  ;;  %v2548_v44 = vsel %vm1431_vm5, %v2547_v31, %v2546_v30 }
 0x49d   : > { %v2411_v23 = vrot.slane %v2410_v20, 4 }
 0x49e   : > { %v2205_v19 = vpop.f32.mrf.mxu2  ;;  %v2138_v24 = vpop.f32.mrf.mxu1 }
 0x4a0   : > { %v2125_v25 = vpop.f32.mrf.mxu0 }
 0x4a1   : > { %v2412_v25 = vsel %vm708_vm2, %v2409_v22, %v2411_v23 }
 0x4ac   : > { %v2433_v19 = vpop.permute.xlu1 %2432 }
 0x4ad   : > { %v2434_v24 = vrot.slane %v2433_v19, 4 }
 0x4af   : > { %v2435_v33 = vsel %vm5808_vm15, %v2434_v24, %v2433_v19  ;;  %vm5816_vm15 = vcmask 670720  }
 0x4bd   : > { %v2376_v47 = vpop.f32.mrf.mxu3 }
 0x4be   : > { %v2363_v49 = vpop.f32.mrf.mxu2 }
 0x4bf   : > { %v2296_v51 = vpop.f32.mrf.mxu1 }
 0x4c0   : > { %v2301_v52 = vadd.f32 %v2296_v51, %v2221_v48  ;;  %v2283_v53 = vpop.f32.mrf.mxu0 }
 0x4c1   : > { %v2300_v56 = vadd.f32 %v2283_v53, %v2220_v50 }
 0x4c2   : > { %v2381_v57 = vadd.f32 %v2376_v47, %v2301_v52 }
 0x4c3   : > { %v2380_v60 = vadd.f32 %v2363_v49, %v2300_v56 }
 0x4c4   : > { %v2389_v62 = vadd.f32 %v2386_v59, %v2381_v57 }
 0x4c5   : > { %v2388_v0 = vadd.f32 %v2386_v59, %v2380_v60  ;;  %v2378_v1 = vpop.f32.mrf.mxu3  ;;  %v2772_v59 = vpop.permute.xlu1 %2771 }
 0x4c6   : > { %v2391_v5 = vmax.f32 %v2389_v62, 0.0  ;;  %v2365_v6 = vpop.f32.mrf.mxu2 }
 0x4c7   : > { %v2390_v61 = vmax.f32 %v2388_v0, 0.0  ;;  %v2298_v7 = vpop.f32.mrf.mxu1 }
 0x4c8   : > { %v2393_v8 = vmin.f32 %v2391_v5, 6.0  ;;  %v2285_v9 = vpop.f32.mrf.mxu0  ;;  %v2773_v5 = vrot.slane %v2772_v59, 4 }
 0x4c9   : > { %v2392_v10 = vmin.f32 %v2390_v61, 6.0  ;;  %v2852_v9 = vpop.permute.xlu2 %2851 }
 0x4ca   : > { %v2396_v11 = vrot.slane %v2393_v8, 4  ;;  %v2853_v15 = vrot.slane %v2852_v9, 4  ;;  %v2774_v20 = vsel %vm972_vm4, %v2773_v5, %v2772_v59 }
 0x4cc   : > { %v2397_v13 = vsel %vm708_vm2, %v2392_v10, %v2396_v11 }
 0x4cd   : > { %2398 = vrot.lane.b32.xlu0 %v2397_v13, %s5806_s19 }
 0x4d5   : > { %2691 = vrot.lane.b32.xlu0 %v2690_v16, %s5781_s27 }
 0x53f   : > { %v2399_v18 = vpop.permute.xlu0 %2398 }
 0x540   : > { %v2400_v21 = vrot.slane %v2399_v18, 4 }
 0x542   : > { %v2401_v4 = vsel %vm691_vm6, %v2400_v21, %v2399_v18  ;;  %2405 = vst.msk [vmem:[#allocation2 + $0x8] sm:$0xf] %vm5807_vm13, %v2400_v21  ;;  %vm5815_vm13 = vcmask 416768  }
 0x543   : > { %2404 = vst.msk [vmem:[#allocation2] sm:$0xff] %vm4763_vm8, %v2401_v4 }
 0x547   : > { %v2692_v45 = vpop.permute.xlu0 %2691 }
 0x548   : > { %v2693_v52 = vrot.slane %v2692_v45, 4 }
 0x549   : > { %v2425_v26 = vld [vmem:[#allocation2 + $0x8] sm:$0xf] }
 0x54a   : > { %v5192_v27 = vld [vmem:[#allocation2] sm:$0xff]  ;;  %v2439_v28 = vmul.f32 %v2434_v24, %v2425_v26  ;;  %v2538_v32 = vld [vmem:[#allocation2 + $0x8] sm:$0xf]  ;;  %v2694_v3 = vsel %vm1580_vm3, %v2693_v52, %v2692_v45 }
 0x54b   : > { %v2414_v29 = vmul.f32 %v2412_v25, %v5192_v27  ;;  %v2552_v34 = vmul.f32 %v2547_v31, %v2538_v32  ;;  %v2438_v36 = vmul.f32 %v2435_v33, %v5192_v27  ;;  %v2618_v47 = vld [vmem:[#allocation2 + $0x8] sm:$0xf]  ;;  %v2551_v48 = vmul.f32 %v2548_v44, %v5192_v27 }
 0x54c   : > { %2446 = vst [vmem:[#allocation1 + $0x10] ss:$2 sm:$0xff] %v2439_v28  ;;  %v2684_v56 = vld [vmem:[#allocation2 + $0x8] sm:$0xf]  ;;  %v2697_v11 = vmul.f32 %v2694_v3, %v5192_v27  ;;  %v2777_v22 = vmul.f32 %v2774_v20, %v5192_v27  ;;  %v2854_v28 = vsel %vm1462_vm7, %v2853_v15, %v2852_v9  ;;  %v4457_v3 = vld [vmem:[%s5690_s11 + $0x6] sm:$0x3] }
 0x54d   : > { %2417 = vst [vmem:[#allocation1] ss:$2 sm:$0xff] %v2414_v29  ;;  %v2698_v57 = vmul.f32 %v2693_v52, %v2684_v56  ;;  %v2764_v7 = vld [vmem:[#allocation2 + $0x8] sm:$0xf]  ;;  %v2857_v30 = vmul.f32 %v2854_v28, %v5192_v27 }
 0x54e   : > { %v2778_v8 = vmul.f32 %v2773_v5, %v2764_v7  ;;  %v2844_v18 = vld [vmem:[#allocation2 + $0x8] sm:$0xf] }
 0x54f   : > { %v2858_v21 = vmul.f32 %v2853_v15, %v2844_v18 }
 0x553   : > { %v2449_v35 = vld.sshfl [vmem:[#allocation1 + $0x10] sm:$0xff pattern:$0x75316420] }
 0x554   : > { %v2455_v37 = vpack.c.bf16 %v2449_v35, %v2449_v35  ;;  %2559 = vst [vmem:[#allocation1 + $0x10] ss:$2 sm:$0xff] %v2552_v34  ;;  %v2418_v38 = vld.sshfl [vmem:[#allocation1] sm:$0xff pattern:$0x75316420] }
 0x555   : > { %v2422_v39 = vpack.c.bf16 %v2418_v38, %v2418_v38  ;;  %v2419_v40 = vld.sshfl [vmem:[#allocation1 + $0x8] sm:$0xff pattern:$0x75316420] }
 0x556   : > { %2463 = vrot.lane.b32.xlu1 %v2455_v37, %s5809_s3  ;;  %v2423_v41 = vpack.c.bf16 %v2419_v40, %v2419_v40  ;;  %2444 = vst [vmem:[#allocation1] ss:$2 sm:$0xff] %v2438_v36  ;;  %v2415_v40 = vld [vmem:[%s5690_s11] sm:$0x3] }
 0x557   : > { %v2506_v42 = vsel %vm639_vm0, %v2422_v39, 0 }
 0x558   : > { %2518 = vmatpush.bf16.msrb.mxu2 %v2506_v42  ;;  %v2509_v43 = vsel %vm639_vm0, %v2423_v41, 0 }
 0x559   : > { %2531 = vmatpush.bf16.msrb.mxu3 %v2509_v43 }
 0x55b   : > { %v2562_v46 = vld.sshfl [vmem:[#allocation1 + $0x10] sm:$0xff pattern:$0x75316420]  ;;  %4451 = vmatmul.msk.bf16.vlgmr.msrb.gmra.mxu2 %vm635_vm1, %v2415_v40 }
 0x55c   : > { %v2568_v49 = vpack.c.bf16 %v2562_v46, %v2562_v46  ;;  %2625 = vst [vmem:[#allocation1 + $0x10] ss:$2 sm:$0xff] %v2618_v47  ;;  %4452 = vmatmul.msk.bf16.vlgmr.msrb.gmra.mxu3 %vm635_vm1, %v2415_v40 }
 0x55d   : > { %v2448_v50 = vld.sshfl [vmem:[#allocation1 + $0x8] sm:$0xff pattern:$0x75316420]  ;;  %v2447_v51 = vld.sshfl [vmem:[#allocation1] sm:$0xff pattern:$0x75316420] }
 0x55e   : > { %2576 = vrot.lane.b32.xlu1 %v2568_v49, %s5805_s10  ;;  %v2454_v53 = vpack.c.bf16 %v2448_v50, %v2448_v50  ;;  %v2453_v55 = vpack.c.bf16 %v2447_v51, %v2447_v51  ;;  %2557 = vst [vmem:[#allocation1] ss:$2 sm:$0xff] %v2551_v48  ;;  %v4448_v50 = vld [vmem:[%s5690_s11 + $0x2] sm:$0x3] }
 0x560   : > { %2461 = vrot.lane.b32.xlu0 %v2454_v53, %s5809_s3  ;;  %2459 = vrot.lane.b32.xlu2 %v2453_v55, %s5809_s3 }
 0x563   : > { %v2628_v60 = vld.sshfl [vmem:[#allocation1 + $0x10] sm:$0xff pattern:$0x75316420] }
 0x564   : > { %v2634_v62 = vpack.c.bf16 %v2628_v60, %v2628_v60  ;;  %2705 = vst [vmem:[#allocation1 + $0x10] ss:$2 sm:$0xff] %v2698_v57 }
 0x565   : > { %v2561_v0 = vld.sshfl [vmem:[#allocation1 + $0x8] sm:$0xff pattern:$0x75316420]  ;;  %v2560_v1 = vld.sshfl [vmem:[#allocation1] sm:$0xff pattern:$0x75316420] }
 0x566   : > { %2642 = vrot.lane.b32.xlu1 %v2634_v62, %s5788_s24  ;;  %v2567_v6 = vpack.c.bf16 %v2561_v0, %v2561_v0  ;;  %v2566_v61 = vpack.c.bf16 %v2560_v1, %v2560_v1  ;;  %2623 = vst [vmem:[#allocation1] ss:$2 sm:$0xff] %v5192_v27  ;;  %v2923_v27 = vld [vmem:[%s5691_s12] sm:$0xf] }
 0x568   : > { %2574 = vrot.lane.b32.xlu0 %v2567_v6, %s5805_s10  ;;  %2572 = vrot.lane.b32.xlu2 %v2566_v61, %s5805_s10  ;;  %v4454_v61 = vld [vmem:[%s5690_s11 + $0x4] sm:$0x3] }
 0x56b   : > { %v2708_v10 = vld.sshfl [vmem:[#allocation1 + $0x10] sm:$0xff pattern:$0x75316420] }
 0x56c   : > { %v2714_v12 = vpack.c.bf16 %v2708_v10, %v2708_v10  ;;  %2785 = vst [vmem:[#allocation1 + $0x10] ss:$2 sm:$0xff] %v2778_v8 }
 0x56d   : > { %v2627_v13 = vld.sshfl [vmem:[#allocation1 + $0x8] sm:$0xff pattern:$0x75316420]  ;;  %v2626_v14 = vld.sshfl [vmem:[#allocation1] sm:$0xff pattern:$0x75316420] }
 0x56e   : > { %2722 = vrot.lane.b32.xlu1 %v2714_v12, %s5781_s27  ;;  %v2633_v16 = vpack.c.bf16 %v2627_v13, %v2627_v13  ;;  %v2632_v17 = vpack.c.bf16 %v2626_v14, %v2626_v14  ;;  %2703 = vst [vmem:[#allocation1] ss:$2 sm:$0xff] %v2697_v11 }
 0x570   : > { %2640 = vrot.lane.b32.xlu0 %v2633_v16, %s5788_s24  ;;  %2638 = vrot.lane.b32.xlu2 %v2632_v17, %s5788_s24 }
 0x573   : > { %v2788_v4 = vld.sshfl [vmem:[#allocation1 + $0x10] sm:$0xff pattern:$0x75316420] }
 0x574   : > { %v2794_v23 = vpack.c.bf16 %v2788_v4, %v2788_v4  ;;  %2865 = vst [vmem:[#allocation1 + $0x10] ss:$2 sm:$0xff] %v2858_v21  ;;  %v4461_v21 = vld [vmem:[%s5690_s11 + $0x8] sm:$0x3]  ;;  %v4465_v4 = vld [vmem:[%s5690_s11 + $0xa] sm:$0x3] }
 0x575   : > { %v2707_v19 = vld.sshfl [vmem:[#allocation1 + $0x8] sm:$0xff pattern:$0x75316420]  ;;  %v2706_v24 = vld.sshfl [vmem:[#allocation1] sm:$0xff pattern:$0x75316420] }
 0x576   : > { %2802 = vrot.lane.b32.xlu1 %v2794_v23, %s5806_s19  ;;  %v2713_v25 = vpack.c.bf16 %v2707_v19, %v2707_v19  ;;  %v2712_v26 = vpack.c.bf16 %v2706_v24, %v2706_v24  ;;  %2783 = vst [vmem:[#allocation1] ss:$2 sm:$0xff] %v2777_v22 }
 0x578   : > { %2720 = vrot.lane.b32.xlu0 %v2713_v25, %s5781_s27  ;;  %2718 = vrot.lane.b32.xlu2 %v2712_v26, %s5781_s27 }
 0x57b   : > { %v2868_v29 = vld.sshfl [vmem:[#allocation1 + $0x10] sm:$0xff pattern:$0x75316420] }
 0x57c   : > { %v2874_v31 = vpack.c.bf16 %v2868_v29, %v2868_v29  ;;  %v4469_v29 = vld [vmem:[%s5690_s11 + $0xc] sm:$0x3] }
 0x57d   : > { %v2787_v32 = vld.sshfl [vmem:[#allocation1 + $0x8] sm:$0xff pattern:$0x75316420]  ;;  %v2786_v33 = vld.sshfl [vmem:[#allocation1] sm:$0xff pattern:$0x75316420] }
 0x57e   : > { %2882 = vrot.lane.b32.xlu1 %v2874_v31, %s5804_s7  ;;  %v2793_v34 = vpack.c.bf16 %v2787_v32, %v2787_v32  ;;  %v2792_v35 = vpack.c.bf16 %v2786_v33, %v2786_v33  ;;  %2863 = vst [vmem:[#allocation1] ss:$2 sm:$0xff] %v2857_v30 }
 0x580   : > { %2800 = vrot.lane.b32.xlu0 %v2793_v34, %s5806_s19  ;;  %2798 = vrot.lane.b32.xlu2 %v2792_v35, %s5806_s19 }
 0x585   : > { %v2867_v36 = vld.sshfl [vmem:[#allocation1 + $0x8] sm:$0xff pattern:$0x75316420]  ;;  %v2866_v37 = vld.sshfl [vmem:[#allocation1] sm:$0xff pattern:$0x75316420] }
 0x586   : > { %v2873_v38 = vpack.c.bf16 %v2867_v36, %v2867_v36  ;;  %v2872_v39 = vpack.c.bf16 %v2866_v37, %v2866_v37 }
 0x588   : > { %2880 = vrot.lane.b32.xlu0 %v2873_v38, %s5804_s7  ;;  %2878 = vrot.lane.b32.xlu2 %v2872_v39, %s5804_s7 }
 0x590   : > { %2926 = vperm.xlu0 %4562, %v2923_v27  }
 0x5ba   : > { %v2460_v41 = vpop.permute.xlu2 %2459 }
 0x5c2   : > { %v2573_v43 = vpop.permute.xlu2 %2572 }
 0x5c8   : > { %v2464_v42 = vpop.permute.xlu1 %2463 }
 0x5ca   : > { %v2639_v52 = vpop.permute.xlu2 %2638 }
 0x5d0   : > { %v2577_v44 = vpop.permute.xlu1 %2576 }
 0x5d2   : > { %v2462_v45 = vpop.permute.xlu0 %2461  ;;  %v2719_v6 = vpop.permute.xlu2 %2718 }
 0x5d3   : > { %v2465_v46 = vsel %vm1346_vm11, %v2460_v41, %v2462_v45  ;;  %v2466_v47 = vsel %vm1346_vm11, %v2462_v45, %v2464_v42 }
 0x5d4   : > { %v2471_v48 = vsel %vm639_vm0, %v2465_v46, 0  ;;  %v2474_v49 = vsel %vm639_vm0, %v2466_v47, 0  ;;  %v4489_v47 = vld [vmem:[%s5770_s21 + $0xa] sm:$0x3] }
 0x5d5   : > { %2483 = vmatpush.bf16.msrb.mxu0 %v2471_v48  ;;  %2496 = vmatpush.bf16.msrb.mxu1 %v2474_v49  ;;  %v3333_v48 = vperm.slane %v4489_v47, 1 }
 0x5d8   : > { %4449 = vmatmul.msk.bf16.vlgmr.msrb.gmra.mxu0 %vm635_vm1, %v4448_v50  ;;  %4450 = vmatmul.msk.bf16.vlgmr.msrb.gmra.mxu1 %vm635_vm1, %v4448_v50  ;;  %v2643_v56 = vpop.permute.xlu1 %2642 }
 0x5da   : > { %v2575_v51 = vpop.permute.xlu0 %2574  ;;  %v2799_v13 = vpop.permute.xlu2 %2798 }
 0x5db   : > { %v2578_v53 = vsel %vm1462_vm7, %v2573_v43, %v2575_v51  ;;  %v2579_v55 = vsel %vm1462_vm7, %v2575_v51, %v2577_v44  ;;  %v4472_v43 = vld [vmem:[%s5770_s21 + $0x2] sm:$0x3] }
 0x5dc   : > { %v2584_v57 = vsel %vm639_vm0, %v2578_v53, 0  ;;  %v2587_v59 = vsel %vm639_vm0, %v2579_v55, 0  ;;  %v2982_v44 = vperm.slane %v4472_v43, 0  ;;  %v2983_v45 = vperm.slane %v4472_v43, 1 }
 0x5dd   : > { %2596 = vmatpush.bf16.msra.mxu0 %v2584_v57  ;;  %2609 = vmatpush.bf16.msra.mxu1 %v2587_v59  ;;  %v3332_v55 = vperm.slane %v4489_v47, 0 }
 0x5de   : > { %v2520_v31 = vpop.f32.mrf.mxu2  ;;  %v2984_v46 = vrot.slane %v2983_v45, 4 }
 0x5df   : > { %v2533_v30 = vpop.f32.mrf.mxu3 }
 0x5e0   : > { %v2723_v7 = vpop.permute.xlu1 %2722  ;;  %v2985_v49 = vsel %vm708_vm2, %v2982_v44, %v2984_v46 }
 0x5e1   : > { %2986 = vrot.lane.b32.xlu0 %v2985_v49, %s5778_s22 }
 0x5e2   : > { %v2641_v60 = vpop.permute.xlu0 %2640  ;;  %v2879_v22 = vpop.permute.xlu2 %2878 }
 0x5e3   : > { %v2644_v62 = vsel %vm972_vm4, %v2639_v52, %v2641_v60  ;;  %v2645_v0 = vsel %vm972_vm4, %v2641_v60, %v2643_v56  ;;  %v3334_v56 = vrot.slane %v3333_v48, 4 }
 0x5e4   : > { %v2650_v1 = vsel %vm639_vm0, %v2644_v62, 0  ;;  %v2653_v5 = vsel %vm639_vm0, %v2645_v0, 0 }
 0x5e5   : > { %2662 = vmatpush.bf16.msra.mxu2 %v2650_v1  ;;  %2675 = vmatpush.bf16.msra.mxu3 %v2653_v5  ;;  %v3335_v57 = vsel %vm708_vm2, %v3332_v55, %v3334_v56 }
 0x5e6   : > { %v2522_v33 = vpop.f32.mrf.mxu2 }
 0x5e7   : > { %v2535_v32 = vpop.f32.mrf.mxu3 }
 0x5e8   : > { %4455 = vmatmul.msk.bf16.vlgmr.msra.gmra.mxu0 %vm635_vm1, %v4454_v61  ;;  %4456 = vmatmul.msk.bf16.vlgmr.msra.gmra.mxu1 %vm635_vm1, %v4454_v61  ;;  %v2803_v14 = vpop.permute.xlu1 %2802  ;;  %v4478_v32 = vld [vmem:[%s5770_s21 + $0x4] sm:$0x3] }
 0x5e9   : > { %4458 = vmatmul.msk.bf16.vlgmr.msra.gmra.mxu2 %vm635_vm1, %v4457_v3  ;;  %4459 = vmatmul.msk.bf16.vlgmr.msra.gmra.mxu3 %vm635_vm1, %v4457_v3 }
 0x5ea   : > { %v2721_v8 = vpop.permute.xlu0 %2720  ;;  %3336 = vrot.lane.b32.xlu0 %v3335_v57, %s5780_s28  ;;  %s5810_s28 = smov 45  }
 0x5eb   : > { %v2724_v9 = vsel %vm1580_vm3, %v2719_v6, %v2721_v8  ;;  %v2725_v10 = vsel %vm1580_vm3, %v2721_v8, %v2723_v7  ;;  %v2949_v8 = vld [vmem:[%s5770_s21] sm:$0x3] }
 0x5ec   : > { %v2730_v11 = vsel %vm639_vm0, %v2724_v9, 0  ;;  %v2733_v12 = vsel %vm639_vm0, %v2725_v10, 0  ;;  %v4485_v9 = vld [vmem:[%s5770_s21 + $0x8] sm:$0x3] }
 0x5ed   : > { %2742 = vmatpush.bf16.msrb.mxu0 %v2730_v11  ;;  %2755 = vmatpush.bf16.msrb.mxu1 %v2733_v12  ;;  %v2951_v12 = vperm.slane %v2949_v8, 0 }
 0x5f0   : > { %v2883_v23 = vpop.permute.xlu1 %2882 }
 0x5f2   : > { %v2801_v15 = vpop.permute.xlu0 %2800 }
 0x5f3   : > { %v2804_v16 = vsel %vm691_vm6, %v2799_v13, %v2801_v15  ;;  %v2805_v17 = vsel %vm691_vm6, %v2801_v15, %v2803_v14  ;;  %v2952_v13 = vperm.slane %v2949_v8, 1 }
 0x5f4   : > { %v2810_v18 = vsel %vm639_vm0, %v2804_v16, 0  ;;  %v2813_v20 = vsel %vm639_vm0, %v2805_v17, 0 }
 0x5f5   : > { %2822 = vmatpush.bf16.msrb.mxu2 %v2810_v18  ;;  %2835 = vmatpush.bf16.msrb.mxu3 %v2813_v20  ;;  %v2953_v18 = vrot.slane %v2952_v13, 4  ;;  %v3253_v20 = vperm.slane %v4485_v9, 1 }
 0x5f8   : > { %4462 = vmatmul.msk.bf16.vlgmr.msrb.gmra.mxu0 %vm635_vm1, %v4461_v21  ;;  %4463 = vmatmul.msk.bf16.vlgmr.msrb.gmra.mxu1 %vm635_vm1, %v4461_v21 }
 0x5f9   : > { %4466 = vmatmul.msk.bf16.vlgmr.msrb.gmra.mxu2 %vm635_vm1, %v4465_v4  ;;  %4467 = vmatmul.msk.bf16.vlgmr.msrb.gmra.mxu3 %vm635_vm1, %v4465_v4 }
 0x5fa   : > { %v2881_v19 = vpop.permute.xlu0 %2880 }
 0x5fb   : > { %v2884_v24 = vsel %vm1431_vm5, %v2879_v22, %v2881_v19  ;;  %v2885_v25 = vsel %vm1431_vm5, %v2881_v19, %v2883_v23  ;;  %v2954_v19 = vsel %vm708_vm2, %v2951_v12, %v2953_v18 }
 0x5fc   : > { %v2890_v26 = vsel %vm639_vm0, %v2884_v24, 0  ;;  %v2893_v28 = vsel %vm639_vm0, %v2885_v25, 0  ;;  %2955 = vrot.lane.b32.xlu2 %v2954_v19, %s5810_s28 }
 0x5fd   : > { %2902 = vmatpush.bf16.msra.mxu0 %v2890_v26  ;;  %2915 = vmatpush.bf16.msra.mxu1 %v2893_v28  ;;  %v3252_v28 = vperm.slane %v4485_v9, 0 }
 0x602   : > { %v2927_v24 = vpop.permute.xlu0 %2926 }
 0x608   : > { %4470 = vmatmul.msk.bf16.vlgmr.msra.gmra.mxu0 %vm635_vm1, %v4469_v29  ;;  %4471 = vmatmul.msk.bf16.vlgmr.msra.gmra.mxu1 %vm635_vm1, %v4469_v29  ;;  %v3254_v29 = vrot.slane %v3253_v20, 4 }
 0x655   : > { %v2485_v34 = vpop.f32.mrf.mxu0  ;;  %v2498_v35 = vpop.f32.mrf.mxu1 }
 0x656   : > { %v2534_v59 = vadd.f32 %v2533_v30, %v2498_v35  ;;  %v2521_v60 = vadd.f32 %v2520_v31, %v2485_v34  ;;  %v3255_v34 = vsel %vm708_vm2, %v3252_v28, %v3254_v29 }
 0x657   : > { %3256 = vrot.lane.b32.xlu2 %v3255_v34, %s5779_s20 }
 0x65d   : > { %v2487_v36 = vpop.f32.mrf.mxu0  ;;  %v2500_v37 = vpop.f32.mrf.mxu1 }
 0x665   : > { %v2598_v38 = vpop.f32.mrf.mxu0  ;;  %v2611_v39 = vpop.f32.mrf.mxu1 }
 0x666   : > { %v2615_v6 = vadd.f32 %v2598_v38, %v2521_v60  ;;  %v2616_v61 = vadd.f32 %v2611_v39, %v2534_v59  ;;  %v3107_v39 = vperm.slane %v4478_v32, 1  ;;  %v2987_v60 = vpop.permute.xlu0 %2986 }
 0x66c   : > { %v2664_v27 = vpop.f32.mrf.mxu2  ;;  %v2677_v40 = vpop.f32.mrf.mxu3 }
 0x66d   : > { %v2600_v41 = vpop.f32.mrf.mxu0  ;;  %v2613_v42 = vpop.f32.mrf.mxu1  ;;  %v2681_v7 = vadd.f32 %v2664_v27, %v2615_v6  ;;  %v2682_v3 = vadd.f32 %v2677_v40, %v2616_v61  ;;  %v3106_v40 = vperm.slane %v4478_v32, 0 }
 0x66e   : > { %v3108_v41 = vrot.slane %v3107_v39, 4  ;;  %v4493_v42 = vld [vmem:[%s5770_s21 + $0xc] sm:$0x3] }
 0x66f   : > { %v3413_v44 = vperm.slane %v4493_v42, 1  ;;  %v3412_v45 = vperm.slane %v4493_v42, 0 }
 0x670   : > { %v3109_v43 = vsel %vm708_vm2, %v3106_v40, %v3108_v41 }
 0x671   : > { %v3414_v46 = vrot.slane %v3413_v44, 4 }
 0x673   : > { %v3415_v47 = vsel %vm708_vm2, %v3412_v45, %v3414_v46 }
 0x674   : > { %v2666_v50 = vpop.f32.mrf.mxu2  ;;  %v2679_v51 = vpop.f32.mrf.mxu3 }
 0x675   : > { %v2744_v52 = vpop.f32.mrf.mxu0  ;;  %v2757_v53 = vpop.f32.mrf.mxu1 }
 0x676   : > { %v2761_v10 = vadd.f32 %v2744_v52, %v2681_v7  ;;  %v2762_v11 = vadd.f32 %v2757_v53, %v2682_v3  ;;  %v2956_v51 = vpop.permute.xlu2 %2955 }
 0x677   : > { %v2957_v52 = vrot.slane %v2956_v51, 4 }
 0x679   : > { %v2958_v55 = vsel %vm713_vm9, %v2957_v52, %v2956_v51  ;;  %vm5813_vm9 = vcmask 384000  }
 0x67c   : > { %v2824_v62 = vpop.f32.mrf.mxu2  ;;  %v2837_v0 = vpop.f32.mrf.mxu3 }
 0x67d   : > { %v2746_v1 = vpop.f32.mrf.mxu0  ;;  %v2759_v5 = vpop.f32.mrf.mxu1  ;;  %v2841_v14 = vadd.f32 %v2824_v62, %v2761_v10  ;;  %v2842_v15 = vadd.f32 %v2837_v0, %v2762_v11  ;;  %v2988_v62 = vrot.slane %v2987_v60, 4 }
 0x67f   : > { %v2989_v1 = vsel %vm746_vm10, %v2988_v62, %v2987_v60  ;;  %vm5814_vm10 = vcmask 408576  }
 0x684   : > { %v2839_v16 = vpop.f32.mrf.mxu3  ;;  %v2826_v17 = vpop.f32.mrf.mxu2 }
 0x685   : > { %v2904_v21 = vpop.f32.mrf.mxu0  ;;  %v2917_v4 = vpop.f32.mrf.mxu1 }
 0x686   : > { %v2921_v22 = vadd.f32 %v2904_v21, %v2841_v14  ;;  %v2922_v23 = vadd.f32 %v2917_v4, %v2842_v15 }
 0x688   : > { %v2929_v25 = vadd.f32 %v2927_v24, %v2921_v22  ;;  %v2930_v26 = vadd.f32 %v2927_v24, %v2922_v23 }
 0x68a   : > { %v2931_v30 = vmax.f32 %v2929_v25, 0.0  ;;  %v2932_v31 = vmax.f32 %v2930_v26, 0.0 }
 0x68c   : > { %v2934_v33 = vmin.f32 %v2932_v31, 6.0  ;;  %v2933_v37 = vmin.f32 %v2931_v30, 6.0  ;;  %v3337_v31 = vpop.permute.xlu0 %3336 }
 0x68d   : > { %v2906_v35 = vpop.f32.mrf.mxu0  ;;  %v2919_v36 = vpop.f32.mrf.mxu1 }
 0x68e   : > { %v2937_v38 = vrot.slane %v2934_v33, 4  ;;  %v3338_v35 = vrot.slane %v3337_v31, 4 }
 0x690   : > { %v2938_v27 = vsel %vm708_vm2, %v2933_v37, %v2937_v38  ;;  %v3339_v41 = vsel %vm5814_vm10, %v3338_v35, %v3337_v31 }
 0x691   : > { %2939 = vrot.lane.b32.xlu1 %v2938_v27, %s5806_s19 }
 0x699   : > { %3110 = vrot.lane.b32.xlu1 %v3109_v43, %s5811_s26 }
 0x6a1   : > { %3416 = vrot.lane.b32.xlu1 %v3415_v47, %s5782_s23 }
 0x6b1   : > { %v3257_v21 = vpop.permute.xlu2 %3256 }
 0x6b2   : > { %v3258_v23 = vrot.slane %v3257_v21, 4 }
 0x6b4   : > { %v3259_v30 = vsel %vm1024_vm12, %v3258_v23, %v3257_v21  ;;  %v4473_v21 = vld [vmem:[%s5692_s13 + $0x2] sm:$0x3] }
 0x703   : > { %v2940_v48 = vpop.permute.xlu1 %2939 }
 0x704   : > { %v2941_v49 = vrot.slane %v2940_v48, 4 }
 0x706   : > { %v2942_v50 = vsel %vm691_vm6, %v2941_v49, %v2940_v48  ;;  %2946 = vst.msk [vmem:[#allocation2 + $0x8] sm:$0xf] %vm5812_vm14, %v2941_v49  ;;  %vm5817_vm14 = vmmov %vm5816_vm15 }
 0x707   : > { %2945 = vst.msk [vmem:[#allocation2] sm:$0xff] %vm4763_vm8, %v2942_v50 }
 0x70b   : > { %v3111_v6 = vpop.permute.xlu1 %3110 }
 0x70c   : > { %v3112_v8 = vrot.slane %v3111_v6, 4 }
 0x70d   : > { %v2948_v53 = vld [vmem:[#allocation2 + $0x8] sm:$0xf] }
 0x70e   : > { %v5325_v56 = vld [vmem:[#allocation2] sm:$0xff]  ;;  %v2962_v57 = vmul.f32 %v2957_v52, %v2948_v53  ;;  %v2979_v0 = vld [vmem:[#allocation2 + $0x8] sm:$0xf]  ;;  %v3113_v11 = vsel %vm5813_vm9, %v3112_v8, %v3111_v6  ;;  %vm5818_vm9 = vcmask 662528  }
 0x70f   : > { %v2961_v59 = vmul.f32 %v2958_v55, %v5325_v56  ;;  %v2993_v5 = vmul.f32 %v2988_v62, %v2979_v0  ;;  %v2992_v7 = vmul.f32 %v2989_v1, %v5325_v56  ;;  %v3103_v10 = vld [vmem:[#allocation2 + $0x8] sm:$0xf]  ;;  %v3116_v14 = vmul.f32 %v3113_v11, %v5325_v56  ;;  %vm5819_vm10 = vmmov %vm5818_vm9 }
 0x710   : > { %2968 = vst [vmem:[#allocation1 + $0x10] ss:$2 sm:$0xff] %v2962_v57  ;;  %v3117_v12 = vmul.f32 %v3112_v8, %v3103_v10  ;;  %v3183_v4 = vld [vmem:[#allocation2 + $0x8] sm:$0xf]  ;;  %v3262_v34 = vmul.f32 %v3259_v30, %v5325_v56  ;;  %v3342_v45 = vmul.f32 %v3339_v41, %v5325_v56 }
 0x711   : > { %2966 = vst [vmem:[#allocation1] ss:$2 sm:$0xff] %v2961_v59  ;;  %v3249_v29 = vld [vmem:[#allocation2 + $0x8] sm:$0xf] }
 0x712   : > { %v3263_v32 = vmul.f32 %v3258_v23, %v3249_v29  ;;  %v3329_v40 = vld [vmem:[#allocation2 + $0x8] sm:$0xf] }
 0x713   : > { %v3417_v42 = vpop.permute.xlu1 %3416  ;;  %v3343_v43 = vmul.f32 %v3338_v35, %v3329_v40  ;;  %v3409_v52 = vld [vmem:[#allocation2 + $0x8] sm:$0xf]  ;;  %v2963_v35 = vld [vmem:[%s5692_s13] sm:$0x3] }
 0x714   : > { %v3418_v46 = vrot.slane %v3417_v42, 4 }
 0x716   : > { %v3419_v53 = vsel %vm5815_vm13, %v3418_v46, %v3417_v42  ;;  %v3423_v55 = vmul.f32 %v3418_v46, %v3409_v52  ;;  %vm5820_vm13 = vcmask 678912  }
 0x717   : > { %v2971_v61 = vld.sshfl [vmem:[#allocation1 + $0x10] sm:$0xff pattern:$0x75316420]  ;;  %v3422_v59 = vmul.f32 %v3419_v53, %v5325_v56 }
 0x718   : > { %3000 = vst [vmem:[#allocation1 + $0x10] ss:$2 sm:$0xff] %v2993_v5  ;;  %v2969_v3 = vld.sshfl [vmem:[#allocation1] sm:$0xff pattern:$0x75316420]  ;;  %v2977_v36 = vpack.c.bf16 %v2971_v61, %v2971_v61 }
 0x719   : > { %v2970_v9 = vld.sshfl [vmem:[#allocation1 + $0x8] sm:$0xff pattern:$0x75316420]  ;;  %v2975_v27 = vpack.c.bf16 %v2969_v3, %v2969_v3 }
 0x71a   : > { %2998 = vst [vmem:[#allocation1] ss:$2 sm:$0xff] %v2992_v7  ;;  %v2976_v39 = vpack.c.bf16 %v2970_v9, %v2970_v9 }
 0x71f   : > { %v3003_v13 = vld.sshfl [vmem:[#allocation1 + $0x10] sm:$0xff pattern:$0x75316420] }
 0x720   : > { %v3009_v15 = vpack.c.bf16 %v3003_v13, %v3003_v13  ;;  %3124 = vst [vmem:[#allocation1 + $0x10] ss:$2 sm:$0xff] %v3117_v12  ;;  %v3488_v12 = vld [vmem:[%s5693_s14] sm:$0xf] }
 0x721   : > { %v3002_v16 = vld.sshfl [vmem:[#allocation1 + $0x8] sm:$0xff pattern:$0x75316420]  ;;  %v3001_v17 = vld.sshfl [vmem:[#allocation1] sm:$0xff pattern:$0x75316420] }
 0x722   : > { %3017 = vrot.lane.b32.xlu0 %v3009_v15, %s5783_s1  ;;  %v3008_v18 = vpack.c.bf16 %v3002_v16, %v3002_v16  ;;  %v3007_v20 = vpack.c.bf16 %v3001_v17, %v3001_v17  ;;  %3122 = vst [vmem:[#allocation1] ss:$2 sm:$0xff] %v3116_v14 }
 0x724   : > { %3015 = vrot.lane.b32.xlu2 %v3008_v18, %s5783_s1  ;;  %3013 = vrot.lane.b32.xlu1 %v3007_v20, %s5783_s1 }
 0x727   : > { %v3127_v22 = vld.sshfl [vmem:[#allocation1 + $0x10] sm:$0xff pattern:$0x75316420] }
 0x728   : > { %v3133_v19 = vpack.c.bf16 %v3127_v22, %v3127_v22  ;;  %3190 = vst [vmem:[#allocation1 + $0x10] ss:$2 sm:$0xff] %v3183_v4 }
 0x729   : > { %v3126_v24 = vld.sshfl [vmem:[#allocation1 + $0x8] sm:$0xff pattern:$0x75316420]  ;;  %v3125_v25 = vld.sshfl [vmem:[#allocation1] sm:$0xff pattern:$0x75316420] }
 0x72a   : > { %3141 = vrot.lane.b32.xlu0 %v3133_v19, %s5784_s29  ;;  %v3132_v26 = vpack.c.bf16 %v3126_v24, %v3126_v24  ;;  %v3131_v28 = vpack.c.bf16 %v3125_v25, %v3125_v25  ;;  %3188 = vst [vmem:[#allocation1] ss:$2 sm:$0xff] %v5325_v56 }
 0x72c   : > { %3139 = vrot.lane.b32.xlu2 %v3132_v26, %s5784_s29  ;;  %3137 = vrot.lane.b32.xlu1 %v3131_v28, %s5784_s29 }
 0x72f   : > { %v3193_v33 = vld.sshfl [vmem:[#allocation1 + $0x10] sm:$0xff pattern:$0x75316420] }
 0x730   : > { %3270 = vst [vmem:[#allocation1 + $0x10] ss:$2 sm:$0xff] %v3263_v32  ;;  %v3199_v60 = vpack.c.bf16 %v3193_v33, %v3193_v33 }
 0x731   : > { %v3191_v37 = vld.sshfl [vmem:[#allocation1] sm:$0xff pattern:$0x75316420]  ;;  %v3192_v38 = vld.sshfl [vmem:[#allocation1 + $0x8] sm:$0xff pattern:$0x75316420] }
 0x732   : > { %3063 = vrot.lane.b32.xlu0 %v2977_v36, %s5785_s2  ;;  %3268 = vst [vmem:[#allocation1] ss:$2 sm:$0xff] %v3262_v34  ;;  %v3198_v1 = vpack.c.bf16 %v3192_v38, %v3192_v38  ;;  %v3197_v5 = vpack.c.bf16 %v3191_v37, %v3191_v37  ;;  %v4479_v36 = vld [vmem:[%s5692_s13 + $0x4] sm:$0x3] }
 0x734   : > { %3061 = vrot.lane.b32.xlu2 %v2976_v39, %s5785_s2  ;;  %3059 = vrot.lane.b32.xlu1 %v2975_v27, %s5785_s2 }
 0x737   : > { %v3273_v44 = vld.sshfl [vmem:[#allocation1 + $0x10] sm:$0xff pattern:$0x75316420] }
 0x738   : > { %v3279_v47 = vpack.c.bf16 %v3273_v44, %v3273_v44  ;;  %3350 = vst [vmem:[#allocation1 + $0x10] ss:$2 sm:$0xff] %v3343_v43 }
 0x739   : > { %v3272_v48 = vld.sshfl [vmem:[#allocation1 + $0x8] sm:$0xff pattern:$0x75316420]  ;;  %v3271_v49 = vld.sshfl [vmem:[#allocation1] sm:$0xff pattern:$0x75316420] }
 0x73a   : > { %3287 = vrot.lane.b32.xlu0 %v3279_v47, %s5787_s4  ;;  %v3278_v50 = vpack.c.bf16 %v3272_v48, %v3272_v48  ;;  %v3277_v51 = vpack.c.bf16 %v3271_v49, %v3271_v49  ;;  %3348 = vst [vmem:[#allocation1] ss:$2 sm:$0xff] %v3342_v45  ;;  %v4482_v49 = vld [vmem:[%s5692_s13 + $0x6] sm:$0x3] }
 0x73c   : > { %3285 = vrot.lane.b32.xlu2 %v3278_v50, %s5787_s4  ;;  %3283 = vrot.lane.b32.xlu1 %v3277_v51, %s5787_s4  ;;  %v4486_v50 = vld [vmem:[%s5692_s13 + $0x8] sm:$0x3] }
 0x73f   : > { %v3353_v57 = vld.sshfl [vmem:[#allocation1 + $0x10] sm:$0xff pattern:$0x75316420] }
 0x740   : > { %3430 = vst [vmem:[#allocation1 + $0x10] ss:$2 sm:$0xff] %v3423_v55  ;;  %v3359_v9 = vpack.c.bf16 %v3353_v57, %v3353_v57 }
 0x741   : > { %v3351_v62 = vld.sshfl [vmem:[#allocation1] sm:$0xff pattern:$0x75316420]  ;;  %v3352_v0 = vld.sshfl [vmem:[#allocation1 + $0x8] sm:$0xff pattern:$0x75316420] }
 0x742   : > { %3207 = vrot.lane.b32.xlu0 %v3199_v60, %s5788_s24  ;;  %3428 = vst [vmem:[#allocation1] ss:$2 sm:$0xff] %v3422_v59  ;;  %v3358_v10 = vpack.c.bf16 %v3352_v0, %v3352_v0  ;;  %v3357_v11 = vpack.c.bf16 %v3351_v62, %v3351_v62 }
 0x744   : > { %3205 = vrot.lane.b32.xlu2 %v3198_v1, %s5788_s24  ;;  %3203 = vrot.lane.b32.xlu1 %v3197_v5, %s5788_s24 }
 0x747   : > { %v3433_v6 = vld.sshfl [vmem:[#allocation1 + $0x10] sm:$0xff pattern:$0x75316420] }
 0x748   : > { %v3439_v61 = vpack.c.bf16 %v3433_v6, %v3433_v6 }
 0x749   : > { %v3432_v7 = vld.sshfl [vmem:[#allocation1 + $0x8] sm:$0xff pattern:$0x75316420]  ;;  %v3431_v3 = vld.sshfl [vmem:[#allocation1] sm:$0xff pattern:$0x75316420] }
 0x74a   : > { %3447 = vrot.lane.b32.xlu0 %v3439_v61, %s5789_s6  ;;  %v3438_v56 = vpack.c.bf16 %v3432_v7, %v3432_v7  ;;  %v3437_v8 = vpack.c.bf16 %v3431_v3, %v3431_v3  ;;  %v4490_v3 = vld [vmem:[%s5692_s13 + $0xa] sm:$0x3] }
 0x74c   : > { %3445 = vrot.lane.b32.xlu2 %v3438_v56, %s5789_s6  ;;  %3443 = vrot.lane.b32.xlu1 %v3437_v8, %s5789_s6  ;;  %v4494_v56 = vld [vmem:[%s5692_s13 + $0xc] sm:$0x3] }
 0x752   : > { %3367 = vrot.lane.b32.xlu0 %v3359_v9, %s5790_s30 }
 0x754   : > { %3365 = vrot.lane.b32.xlu2 %v3358_v10, %s5790_s30  ;;  %3363 = vrot.lane.b32.xlu1 %v3357_v11, %s5790_s30 }
 0x75c   : > { %3491 = vperm.xlu2 %4563, %v3488_v12   ;;  %4041 = vrot.lane.b32.xlu1 %v4711_v2, %s5806_s19 }
 0x77e   : > { %v3016_v13 = vpop.permute.xlu2 %3015 }
 0x786   : > { %v3140_v14 = vpop.permute.xlu2 %3139 }
 0x78e   : > { %v3062_v22 = vpop.permute.xlu2 %3061 }
 0x794   : > { %v3018_v15 = vpop.permute.xlu0 %3017 }
 0x795   : > { %v3020_v16 = vsel %vm5816_vm15, %v3016_v13, %v3018_v15  ;;  %vm5821_vm15 = vmmov %vm5820_vm13 }
 0x796   : > { %v3028_v17 = vsel %vm639_vm0, %v3020_v16, 0  ;;  %v3014_v18 = vpop.permute.xlu1 %3013  ;;  %v3286_v31 = vpop.permute.xlu2 %3285 }
 0x797   : > { %v3019_v20 = vsel %vm5817_vm14, %v3014_v18, %v3016_v13  ;;  %3050 = vmatpush.bf16.msra.mxu3 %v3028_v17  ;;  %vm5822_vm14 = vcmask 646144  }
 0x798   : > { %v3025_v4 = vsel %vm639_vm0, %v3019_v20, 0 }
 0x799   : > { %3037 = vmatpush.bf16.msra.mxu2 %v3025_v4 }
 0x79a   : > { %4475 = vmatmul.msk.bf16.vlgmr.msra.gmra.mxu3 %vm635_vm1, %v4473_v21 }
 0x79c   : > { %4474 = vmatmul.msk.bf16.vlgmr.msra.gmra.mxu2 %vm635_vm1, %v4473_v21  ;;  %v3142_v23 = vpop.permute.xlu0 %3141 }
 0x79d   : > { %v3144_v19 = vsel %vm5818_vm9, %v3140_v14, %v3142_v23  ;;  %vm5823_vm9 = vmmov %vm5822_vm14  ;;  %v4523_v23 = vld [vmem:[%s5770_s21 + $0x8] sm:$0x3] }
 0x79e   : > { %v3152_v24 = vsel %vm639_vm0, %v3144_v19, 0  ;;  %v3138_v25 = vpop.permute.xlu1 %3137  ;;  %v3206_v42 = vpop.permute.xlu2 %3205  ;;  %v4095_v19 = vperm.slane %v4523_v23, 0 }
 0x79f   : > { %v3143_v26 = vsel %vm5819_vm10, %v3138_v25, %v3140_v14  ;;  %3174 = vmatpush.bf16.msrb.mxu3 %v3152_v24  ;;  %vm5824_vm10 = vcmask 629760   ;;  %v4096_v24 = vperm.slane %v4523_v23, 1 }
 0x7a0   : > { %v3149_v28 = vsel %vm639_vm0, %v3143_v26, 0 }
 0x7a1   : > { %3161 = vmatpush.bf16.msrb.mxu2 %v3149_v28  ;;  %v4097_v25 = vrot.slane %v4096_v24, 4 }
 0x7a3   : > { %v4098_v28 = vsel %vm708_vm2, %v4095_v19, %v4097_v25 }
 0x7a4   : > { %v3064_v29 = vpop.permute.xlu0 %3063  ;;  %4099 = vrot.lane.b32.xlu1 %v4098_v28, %s5779_s20 }
 0x7a5   : > { %v3066_v30 = vsel %vm5820_vm13, %v3062_v22, %v3064_v29  ;;  %vm5825_vm13 = vmmov %vm5824_vm10 }
 0x7a6   : > { %v3074_v32 = vsel %vm639_vm0, %v3066_v30, 0  ;;  %v3060_v33 = vpop.permute.xlu1 %3059  ;;  %v3446_v52 = vpop.permute.xlu2 %3445 }
 0x7a7   : > { %v3065_v34 = vsel %vm5821_vm15, %v3060_v33, %v3062_v22  ;;  %3096 = vmatpush.bf16.msrb.mxu1 %v3074_v32  ;;  %vm5826_vm15 = vcmask 637952  }
 0x7a8   : > { %v3071_v37 = vsel %vm639_vm0, %v3065_v34, 0 }
 0x7a9   : > { %3083 = vmatpush.bf16.msrb.mxu0 %v3071_v37 }
 0x7aa   : > { %4477 = vmatmul.msk.bf16.vlgmr.msrb.gmra.mxu1 %vm635_vm1, %v2963_v35  ;;  %4481 = vmatmul.msk.bf16.vlgmr.msrb.gmra.mxu3 %vm635_vm1, %v4479_v36 }
 0x7ac   : > { %4476 = vmatmul.msk.bf16.vlgmr.msrb.gmra.mxu0 %vm635_vm1, %v2963_v35  ;;  %4480 = vmatmul.msk.bf16.vlgmr.msrb.gmra.mxu2 %vm635_vm1, %v4479_v36  ;;  %v3288_v38 = vpop.permute.xlu0 %3287  ;;  %v4107_v35 = vsub.f32 1.0, %v4523_v23 }
 0x7ad   : > { %v3290_v39 = vsel %vm5822_vm14, %v3286_v31, %v3288_v38  ;;  %vm5827_vm14 = vmmov %vm5826_vm15 }
 0x7ae   : > { %v3298_v27 = vsel %vm639_vm0, %v3290_v39, 0  ;;  %v3284_v40 = vpop.permute.xlu1 %3283  ;;  %v3366_v0 = vpop.permute.xlu2 %3365  ;;  %v4108_v37 = vmul.f32 1e+30, %v4107_v35 }
 0x7af   : > { %v3289_v41 = vsel %vm5823_vm9, %v3284_v40, %v3286_v31  ;;  %3320 = vmatpush.bf16.msra.mxu3 %v3298_v27  ;;  %v4522_v31 = vld [vmem:[%s5770_s21 + $0x4] sm:$0x3]  ;;  %vm5828_vm9 = vcmask 388096  }
 0x7b0   : > { %v3295_v43 = vsel %vm639_vm0, %v3289_v41, 0  ;;  %v4053_v33 = vperm.slane %v4522_v31, 0  ;;  %v4054_v34 = vperm.slane %v4522_v31, 1  ;;  %v4111_v40 = vperm.slane %v4108_v37, 1 }
 0x7b1   : > { %3307 = vmatpush.bf16.msra.mxu2 %v3295_v43 }
 0x7b2   : > { %v4055_v36 = vrot.slane %v4054_v34, 4 }
 0x7b4   : > { %v3208_v44 = vpop.permute.xlu0 %3207  ;;  %v4056_v27 = vsel %vm708_vm2, %v4053_v33, %v4055_v36 }
 0x7b5   : > { %v3210_v45 = vsel %vm972_vm4, %v3206_v42, %v3208_v44  ;;  %4057 = vrot.lane.b32.xlu2 %v4056_v27, %s5811_s26 }
 0x7b6   : > { %v3218_v46 = vsel %vm639_vm0, %v3210_v45, 0  ;;  %v3204_v47 = vpop.permute.xlu1 %3203  ;;  %v4110_v45 = vperm.slane %v4108_v37, 0 }
 0x7b7   : > { %v3209_v48 = vsel %vm972_vm4, %v3204_v47, %v3206_v42  ;;  %3240 = vmatpush.bf16.msra.mxu1 %v3218_v46  ;;  %v4112_v46 = vrot.slane %v4111_v40, 4 }
 0x7b8   : > { %v3215_v51 = vsel %vm639_vm0, %v3209_v48, 0 }
 0x7b9   : > { %3227 = vmatpush.bf16.msra.mxu0 %v3215_v51 }
 0x7ba   : > { %4484 = vmatmul.msk.bf16.vlgmr.msra.gmra.mxu1 %vm635_vm1, %v4482_v49  ;;  %4488 = vmatmul.msk.bf16.vlgmr.msra.gmra.mxu3 %vm635_vm1, %v4486_v50 }
 0x7bc   : > { %4483 = vmatmul.msk.bf16.vlgmr.msra.gmra.mxu0 %vm635_vm1, %v4482_v49  ;;  %4487 = vmatmul.msk.bf16.vlgmr.msra.gmra.mxu2 %vm635_vm1, %v4486_v50  ;;  %v3448_v53 = vpop.permute.xlu0 %3447 }
 0x7bd   : > { %v3450_v55 = vsel %vm5824_vm10, %v3446_v52, %v3448_v53  ;;  %vm5829_vm10 = vmmov %vm5828_vm9 }
 0x7be   : > { %v3458_v57 = vsel %vm639_vm0, %v3450_v55, 0  ;;  %v3444_v59 = vpop.permute.xlu1 %3443 }
 0x7bf   : > { %v3449_v60 = vsel %vm5825_vm13, %v3444_v59, %v3446_v52  ;;  %3480 = vmatpush.bf16.msrb.mxu3 %v3458_v57  ;;  %v4113_v52 = vsel %vm708_vm2, %v4110_v45, %v4112_v46  ;;  %v3492_v59 = vpop.permute.xlu2 %3491  ;;  %vm5830_vm13 = vcmask 384000  }
 0x7c0   : > { %v3455_v62 = vsel %vm639_vm0, %v3449_v60, 0  ;;  %4114 = vrot.lane.b32.xlu2 %v4113_v52, %s5779_s20  ;;  %s5835_s20 = sld [smem:[#allocation15_spill]] }
 0x7c1   : > { %3467 = vmatpush.bf16.msrb.mxu2 %v3455_v62 }
 0x7c4   : > { %v3368_v1 = vpop.permute.xlu0 %3367 }
 0x7c5   : > { %v3370_v5 = vsel %vm5826_vm15, %v3366_v0, %v3368_v1  ;;  %vm5831_vm15 = vmmov %vm5830_vm13 }
 0x7c6   : > { %v3378_v6 = vsel %vm639_vm0, %v3370_v5, 0  ;;  %v3364_v61 = vpop.permute.xlu1 %3363 }
 0x7c7   : > { %v3369_v7 = vsel %vm5827_vm14, %v3364_v61, %v3366_v0  ;;  %3400 = vmatpush.bf16.msrb.mxu1 %v3378_v6  ;;  %v4065_v0 = vsub.f32 1.0, %v4522_v31  ;;  %vm5833_vm14 = vcmask 130048  }
 0x7c8   : > { %v3375_v8 = vsel %vm639_vm0, %v3369_v7, 0 }
 0x7c9   : > { %3387 = vmatpush.bf16.msrb.mxu0 %v3375_v8  ;;  %v4066_v8 = vmul.f32 1e+30, %v4065_v0 }
 0x7ca   : > { %4492 = vmatmul.msk.bf16.vlgmr.msrb.gmra.mxu1 %vm635_vm1, %v4490_v3  ;;  %4496 = vmatmul.msk.bf16.vlgmr.msrb.gmra.mxu3 %vm635_vm1, %v4494_v56 }
 0x7cc   : > { %4491 = vmatmul.msk.bf16.vlgmr.msrb.gmra.mxu0 %vm635_vm1, %v4490_v3  ;;  %4495 = vmatmul.msk.bf16.vlgmr.msrb.gmra.mxu2 %vm635_vm1, %v4494_v56 }
 0x7ce   : > { %v4042_v19 = vpop.permute.xlu1 %4041 }
 0x80f   : > { %v4058_v24 = vpop.permute.xlu2 %4057 }
 0x816   : > { %v4100_v34 = vpop.permute.xlu1 %4099 }
 0x81a   : > { %v4115_v40 = vpop.permute.xlu2 %4114 }
 0x81d   : > { %v3052_v9 = vpop.f32.mrf.mxu3 }
 0x81f   : > { %v3039_v10 = vpop.f32.mrf.mxu2 }
 0x825   : > { %v3054_v11 = vpop.f32.mrf.mxu3 }
 0x827   : > { %v3041_v12 = vpop.f32.mrf.mxu2  ;;  %v3098_v13 = vpop.f32.mrf.mxu1 }
 0x828   : > { %v3099_v38 = vadd.f32 %v3098_v13, %v3052_v9 }
 0x829   : > { %v3085_v14 = vpop.f32.mrf.mxu0 }
 0x82a   : > { %v3086_v41 = vadd.f32 %v3085_v14, %v3039_v10  ;;  %v4069_v14 = vperm.slane %v4066_v8, 1 }
 0x82d   : > { %v3176_v15 = vpop.f32.mrf.mxu3 }
 0x82e   : > { %v3181_v42 = vadd.f32 %v3176_v15, %v3099_v38 }
 0x82f   : > { %v3163_v16 = vpop.f32.mrf.mxu2  ;;  %v3100_v17 = vpop.f32.mrf.mxu1 }
 0x830   : > { %v3180_v47 = vadd.f32 %v3163_v16, %v3086_v41  ;;  %v4068_v17 = vperm.slane %v4066_v8, 0  ;;  %v4101_v41 = vrot.slane %v4100_v34, 4 }
 0x831   : > { %v3087_v18 = vpop.f32.mrf.mxu0 }
 0x832   : > { %v4070_v18 = vrot.slane %v4069_v14, 4  ;;  %v4102_v45 = vsel %vm1024_vm12, %v4101_v41, %v4100_v34  ;;  %v4514_v14 = vld [vmem:[%s5776_s25 + $0xa] sm:$0x3]  ;;  %v4525_v34 = vld [vmem:[%s5776_s25 + $0x8] sm:$0x3] }
 0x835   : > { %v3178_v20 = vpop.f32.mrf.mxu3 }
 0x836   : > { %v4071_v20 = vsel %vm708_vm2, %v4068_v17, %v4070_v18  ;;  %v3874_v17 = vperm.slane %v4514_v14, 1 }
 0x837   : > { %v3165_v21 = vpop.f32.mrf.mxu2  ;;  %v3242_v4 = vpop.f32.mrf.mxu1 }
 0x838   : > { %v3247_v48 = vadd.f32 %v3242_v4, %v3181_v42  ;;  %v3513_v21 = vld [vmem:[%s5776_s25] sm:$0x3] }
 0x839   : > { %v3229_v22 = vpop.f32.mrf.mxu0  ;;  %v3516_v23 = vperm.slane %v3513_v21, 1 }
 0x83a   : > { %v3246_v50 = vadd.f32 %v3229_v22, %v3180_v47  ;;  %v4497_v47 = vld [vmem:[%s5776_s25 + $0x2] sm:$0x3] }
 0x83b   : > { %v3517_v28 = vrot.slane %v3516_v23, 4 }
 0x83d   : > { %v3322_v26 = vpop.f32.mrf.mxu3 }
 0x83e   : > { %v3327_v51 = vadd.f32 %v3322_v26, %v3247_v48  ;;  %v3515_v26 = vperm.slane %v3513_v21, 0  ;;  %v4503_v48 = vld [vmem:[%s5776_s25 + $0x4] sm:$0x3] }
 0x83f   : > { %v3309_v29 = vpop.f32.mrf.mxu2  ;;  %v3244_v30 = vpop.f32.mrf.mxu1 }
 0x840   : > { %v3326_v53 = vadd.f32 %v3309_v29, %v3246_v50  ;;  %v4043_v29 = vrot.slane %v4042_v19, 4  ;;  %v3518_v30 = vsel %vm708_vm2, %v3515_v26, %v3517_v28  ;;  %v4524_v26 = vld [vmem:[%s5776_s25 + $0x4] sm:$0x3] }
 0x841   : > { %v3231_v32 = vpop.f32.mrf.mxu0  ;;  %v4149_v28 = vperm.slane %v4524_v26, 1 }
 0x842   : > { %v4044_v36 = vsel %vm691_vm6, %v4043_v29, %v4042_v19 }
 0x845   : > { %v3324_v39 = vpop.f32.mrf.mxu3 }
 0x847   : > { %v3311_v43 = vpop.f32.mrf.mxu2  ;;  %v3402_v44 = vpop.f32.mrf.mxu1 }
 0x848   : > { %v3407_v55 = vadd.f32 %v3402_v44, %v3327_v51  ;;  %v4059_v43 = vrot.slane %v4058_v24, 4  ;;  %v4116_v44 = vrot.slane %v4115_v40, 4 }
 0x849   : > { %v3389_v49 = vpop.f32.mrf.mxu0 }
 0x84a   : > { %v3406_v60 = vadd.f32 %v3389_v49, %v3326_v53  ;;  %v4060_v50 = vsel %vm5830_vm13, %v4059_v43, %v4058_v24  ;;  %v4117_v51 = vsel %vm1024_vm12, %v4116_v44, %v4115_v40  ;;  %vm5832_vm12 = vcmask 662528  }
 0x84d   : > { %v3482_v57 = vpop.f32.mrf.mxu3 }
 0x84e   : > { %v3487_v62 = vadd.f32 %v3482_v57, %v3407_v55  ;;  %v3535_v57 = vperm.slane %v4497_v47, 1 }
 0x84f   : > { %v3469_v1 = vpop.f32.mrf.mxu2  ;;  %v3404_v5 = vpop.f32.mrf.mxu1 }
 0x850   : > { %v3495_v6 = vadd.f32 %v3492_v59, %v3487_v62  ;;  %v3486_v61 = vadd.f32 %v3469_v1, %v3406_v60 }
 0x851   : > { %v3391_v7 = vpop.f32.mrf.mxu0 }
 0x852   : > { %v3497_v3 = vmax.f32 %v3495_v6, 0.0  ;;  %v3494_v56 = vadd.f32 %v3492_v59, %v3486_v61  ;;  %v3648_v59 = vperm.slane %v4503_v48, 1 }
 0x854   : > { %v3499_v9 = vmin.f32 %v3497_v3, 6.0  ;;  %v3496_v10 = vmax.f32 %v3494_v56, 0.0 }
 0x855   : > { %v3484_v11 = vpop.f32.mrf.mxu3 }
 0x856   : > { %v3502_v12 = vrot.slane %v3499_v9, 4  ;;  %v3498_v13 = vmin.f32 %v3496_v10, 6.0  ;;  %v3647_v9 = vperm.slane %v4503_v48, 0  ;;  %v3649_v10 = vrot.slane %v3648_v59, 4 }
 0x857   : > { %v3471_v15 = vpop.f32.mrf.mxu2 }
 0x858   : > { %v3503_v16 = vsel %vm708_vm2, %v3498_v13, %v3502_v12  ;;  %v3534_v12 = vperm.slane %v4497_v47, 0  ;;  %v3536_v13 = vrot.slane %v3535_v57, 4  ;;  %v4510_v15 = vld [vmem:[%s5776_s25 + $0x8] sm:$0x3] }
 0x859   : > { %3504 = vrot.lane.b32.xlu0 %v3503_v16, %s5806_s19  ;;  %v3650_v16 = vsel %vm708_vm2, %v3647_v9, %v3649_v10  ;;  %v3794_v18 = vperm.slane %v4510_v15, 1  ;;  %v3793_v23 = vperm.slane %v4510_v15, 0  ;;  %v4518_v15 = vld [vmem:[%s5776_s25 + $0xc] sm:$0x3] }
 0x85a   : > { %v3537_v21 = vsel %vm708_vm2, %v3534_v12, %v3536_v13 }
 0x85b   : > { %v3795_v19 = vrot.slane %v3794_v18, 4 }
 0x861   : > { %4072 = vrot.lane.b32.xlu0 %v4071_v20, %s5811_s26 }
 0x8cb   : > { %v3505_v4 = vpop.permute.xlu0 %3504 }
 0x8cc   : > { %v3506_v22 = vrot.slane %v3505_v4, 4 }
 0x8ce   : > { %v3507_v25 = vsel %vm691_vm6, %v3506_v22, %v3505_v4  ;;  %3511 = vst.msk [vmem:[#allocation2 + $0x8] sm:$0xf] %vm5828_vm9, %v3506_v22  ;;  %v3873_v4 = vperm.slane %v4514_v14, 0  ;;  %v3875_v22 = vrot.slane %v3874_v17, 4  ;;  %vm5834_vm9 = vcmask 646144  }
 0x8cf   : > { %3510 = vst.msk [vmem:[#allocation2] sm:$0xff] %vm4763_vm8, %v3507_v25  ;;  %v3796_v25 = vsel %vm708_vm2, %v3793_v23, %v3795_v19  ;;  %v3954_v17 = vperm.slane %v4518_v15, 1 }
 0x8d0   : > { %v3876_v24 = vsel %vm708_vm2, %v3873_v4, %v3875_v22 }
 0x8d3   : > { %v4073_v42 = vpop.permute.xlu0 %4072 }
 0x8d4   : > { %v4074_v46 = vrot.slane %v4073_v42, 4 }
 0x8d5   : > { %v5452_v31 = vld [vmem:[#allocation2 + $0x8] sm:$0xf] }
 0x8d6   : > { %v5454_v32 = vld [vmem:[#allocation2 + $0x8] sm:$0xf]  ;;  %v5458_v35 = vld [vmem:[#allocation2] sm:$0xff]  ;;  %v4075_v62 = vsel %vm5831_vm15, %v4074_v46, %v4073_v42  ;;  %v4190_v42 = vperm.slane %v4525_v34, 1 }
 0x8d7   : > { %v5456_v33 = vld [vmem:[#allocation2 + $0x8] sm:$0xf]  ;;  %v3520_v39 = vmul.f32 %v3518_v30, %v5458_v35  ;;  %4047 = vst.msk [vmem:[#allocation2] sm:$0xff] %vm4763_vm8, %v4044_v36  ;;  %v4150_v30 = vrot.slane %v4149_v28, 4 }
 0x8d8   : > { %v5461_v37 = vld [vmem:[#allocation2 + $0x8] sm:$0xf] }
 0x8d9   : > { %v5463_v38 = vld [vmem:[#allocation2 + $0x8] sm:$0xf]  ;;  %3523 = vst [vmem:[#allocation1] ss:$2 sm:$0xff] %v3520_v39  ;;  %v4201_v39 = vsub.f32 1.0, %v4525_v34 }
 0x8da   : > { %v5468_v27 = vld [vmem:[#allocation2 + $0x8] sm:$0xf] }
 0x8db   : > { %4048 = vst.msk [vmem:[#allocation2 + $0x8] sm:$0xf] %vm5829_vm10, %v4043_v29  ;;  %v4148_v29 = vperm.slane %v4524_v26, 0  ;;  %v4202_v40 = vmul.f32 1e+30, %v4201_v39 }
 0x8dd   : > { %v4151_v36 = vsel %vm708_vm2, %v4148_v29, %v4150_v30 }
 0x8de   : > { %v4050_v49 = vld [vmem:[#allocation2] sm:$0xff] }
 0x8df   : > { %v4063_v53 = vmul.f32 %v4060_v50, %v4050_v49  ;;  %v4105_v55 = vmul.f32 %v4102_v45, %v4050_v49  ;;  %v4191_v45 = vrot.slane %v4190_v42, 4 }
 0x8e0   : > { %v3524_v0 = vld.sshfl [vmem:[#allocation1] sm:$0xff pattern:$0x75316420]  ;;  %v3525_v1 = vld.sshfl [vmem:[#allocation1 + $0x8] sm:$0xff pattern:$0x75316420] }
 0x8e1   : > { %v4078_v5 = vsub.f32 %v4063_v53, %v4075_v62  ;;  %v4120_v6 = vsub.f32 %v4105_v55, %v4117_v51  ;;  %v3528_v61 = vpack.c.bf16 %v3524_v0, %v3524_v0  ;;  %v3529_v7 = vpack.c.bf16 %v3525_v1, %v3525_v1 }
 0x8e2   : > { %v4051_v52 = vld [vmem:[#allocation2 + $0x8] sm:$0xf]  ;;  %v4160_v55 = vsub.f32 1.0, %v4524_v26 }
 0x8e3   : > { %v4064_v60 = vmul.f32 %v4059_v43, %v4051_v52  ;;  %4124 = vrot.lane.b32.xlu2 %v4120_v6, %s5787_s4  ;;  %4082 = vrot.lane.b32.xlu0 %v4078_v5, %s5784_s29  ;;  %v3612_v56 = vsel %vm639_vm0, %v3528_v61, 0  ;;  %v3615_v8 = vsel %vm639_vm0, %v3529_v7, 0  ;;  %v4106_v11 = vmul.f32 %v4101_v41, %v4051_v52 }
 0x8e4   : > { %3624 = vmatpush.bf16.msra.mxu2 %v3612_v56  ;;  %3637 = vmatpush.bf16.msra.mxu3 %v3615_v8  ;;  %v4189_v41 = vperm.slane %v4525_v34, 0  ;;  %v4204_v43 = vperm.slane %v4202_v40, 0  ;;  %v4161_v62 = vmul.f32 1e+30, %v4160_v55 }
 0x8e5   : > { %v4079_v3 = vsub.f32 %v4064_v60, %v4074_v46  ;;  %v4121_v20 = vsub.f32 %v4106_v11, %v4116_v44  ;;  %v4205_v44 = vperm.slane %v4202_v40, 1 }
 0x8e6   : > { %v4192_v47 = vsel %vm708_vm2, %v4189_v41, %v4191_v45  ;;  %v4164_v10 = vperm.slane %v4161_v62, 1 }
 0x8e7   : > { %4084 = vrot.lane.b32.xlu1 %v4079_v3, %s5784_s29  ;;  %v4206_v46 = vrot.slane %v4205_v44, 4 }
 0x8e8   : > { %v4165_v14 = vrot.slane %v4164_v10, 4 }
 0x8e9   : > { %v4207_v48 = vsel %vm708_vm2, %v4204_v43, %v4206_v46 }
 0x8eb   : > { %3651 = vrot.lane.b32.xlu2 %v3650_v16, %s5804_s7  ;;  %4126 = vrot.lane.b32.xlu0 %v4121_v20, %s5787_s4 }
 0x8ef   : > { %3538 = vrot.lane.b32.xlu1 %v3537_v21, %s5803_s9 }
 0x8f3   : > { %3877 = vrot.lane.b32.xlu2 %v3876_v24, %s5788_s24  ;;  %3797 = vrot.lane.b32.xlu0 %v3796_v25, %s5781_s27  ;;  %v3953_v24 = vperm.slane %v4518_v15, 0  ;;  %v3955_v25 = vrot.slane %v3954_v17, 4 }
 0x8f5   : > { %v3956_v28 = vsel %vm708_vm2, %v3953_v24, %v3955_v25  ;;  %v3521_v24 = vld [vmem:[%s5694_s15] sm:$0x3] }
 0x8f6   : > { %4502 = vmatmul.msk.bf16.vlgmr.msra.gmra.mxu3 %vm635_vm1, %v3521_v24  ;;  %4501 = vmatmul.msk.bf16.vlgmr.msra.gmra.mxu2 %vm635_vm1, %v3521_v24 }
 0x8fb   : > { %4152 = vrot.lane.b32.xlu0 %v4151_v36, %s5804_s7  ;;  %4193 = vrot.lane.b32.xlu2 %v4192_v47, %s5781_s27 }
 0x903   : > { %4208 = vrot.lane.b32.xlu0 %v4207_v48, %s5781_s27 }
 0x93d   : > { %v4125_v50 = vpop.permute.xlu2 %4124 }
 0x93e   : > { %v4128_v0 = vrot.slane %v4125_v50, 4 }
 0x945   : > { %v3652_v61 = vpop.permute.xlu2 %3651 }
 0x946   : > { %v3653_v13 = vrot.slane %v3652_v61, 4 }
 0x948   : > { %v3658_v21 = vmul.f32 %v3653_v13, %v5454_v32 }
 0x94d   : > { %v3878_v36 = vpop.permute.xlu2 %3877 }
 0x94e   : > { %v3879_v40 = vrot.slane %v3878_v36, 4 }
 0x955   : > { %v4083_v49 = vpop.permute.xlu0 %4082 }
 0x956   : > { %v4086_v52 = vrot.slane %v4083_v49, 4 }
 0x959   : > { %v4085_v51 = vpop.permute.xlu1 %4084 }
 0x95a   : > { %v4087_v53 = vrot.slane %v4085_v51, 4 }
 0x95c   : > { %v4088_v57 = vsel %vm708_vm2, %v4086_v52, %v4087_v53 }
 0x95d   : > { %v4090_v59 = vsel %vm5832_vm12, %v4083_v49, %v4088_v57  ;;  %v4127_v60 = vpop.permute.xlu0 %4126 }
 0x95e   : > { %v4129_v5 = vrot.slane %v4127_v60, 4  ;;  %v4092_v7 = vmax.f32 %v4711_v2, %v4090_v59  ;;  %v4163_v2 = vperm.slane %v4161_v62, 0 }
 0x960   : > { %v4130_v3 = vsel %vm708_vm2, %v4128_v0, %v4129_v5  ;;  %v4166_v16 = vsel %vm708_vm2, %v4163_v2, %v4165_v14 }
 0x961   : > { %v3539_v1 = vpop.permute.xlu1 %3538  ;;  %v4132_v9 = vsel %vm5834_vm9, %v4125_v50, %v4130_v3 }
 0x962   : > { %v3540_v6 = vrot.slane %v3539_v1, 4  ;;  %v5521_v12 = vmax.f32 %v4092_v7, %v4132_v9 }
 0x964   : > { %v3541_v56 = vsel %vm5833_vm14, %v3540_v6, %v3539_v1  ;;  %v3545_v8 = vmul.f32 %v3540_v6, %v5452_v31  ;;  %4136 = vrot.lane.b32.xlu1 %v5521_v12, %s5806_s19  ;;  %v3654_v31 = vsel %vm1431_vm5, %v3653_v13, %v3652_v61  ;;  %v4194_v61 = vpop.permute.xlu2 %4193 }
 0x965   : > { %v3544_v11 = vmul.f32 %v3541_v56, %v5458_v35  ;;  %v3657_v18 = vmul.f32 %v3654_v31, %v5458_v35  ;;  %v3798_v26 = vpop.permute.xlu0 %3797  ;;  %v4195_v9 = vrot.slane %v4194_v61, 4 }
 0x966   : > { %3552 = vst [vmem:[#allocation1 + $0x10] ss:$2 sm:$0xff] %v3545_v8  ;;  %v3799_v29 = vrot.slane %v3798_v26, 4 }
 0x967   : > { %3550 = vst [vmem:[#allocation1] ss:$2 sm:$0xff] %v3544_v11 }
 0x968   : > { %v3800_v39 = vsel %vm1580_vm3, %v3799_v29, %v3798_v26  ;;  %v3804_v43 = vmul.f32 %v3799_v29, %v5461_v37  ;;  %v3884_v37 = vmul.f32 %v3879_v40, %v5463_v38 }
 0x969   : > { %v3803_v41 = vmul.f32 %v3800_v39, %v5458_v35 }
 0x96c   : > { %4167 = vrot.lane.b32.xlu1 %v4166_v16, %s5804_s7  ;;  %v4196_v16 = vsel %vm1580_vm3, %v4195_v9, %v4194_v61 }
 0x96d   : > { %v3555_v20 = vld.sshfl [vmem:[#allocation1 + $0x10] sm:$0xff pattern:$0x75316420]  ;;  %v4153_v6 = vpop.permute.xlu0 %4152 }
 0x96e   : > { %v3553_v4 = vld.sshfl [vmem:[#allocation1] sm:$0xff pattern:$0x75316420]  ;;  %v3554_v22 = vld.sshfl [vmem:[#allocation1 + $0x8] sm:$0xff pattern:$0x75316420]  ;;  %v3561_v42 = vpack.c.bf16 %v3555_v20, %v3555_v20 }
 0x96f   : > { %v3559_v23 = vpack.c.bf16 %v3553_v4, %v3553_v4  ;;  %v3560_v19 = vpack.c.bf16 %v3554_v22, %v3554_v22  ;;  %3663 = vst [vmem:[#allocation1] ss:$2 sm:$0xff] %v3657_v18  ;;  %v4154_v11 = vrot.slane %v4153_v6, 4 }
 0x970   : > { %3665 = vst [vmem:[#allocation1 + $0x10] ss:$2 sm:$0xff] %v3658_v21 }
 0x971   : > { %3565 = vrot.lane.b32.xlu2 %v3559_v23, %s5809_s3  ;;  %3567 = vrot.lane.b32.xlu0 %v3560_v19, %s5809_s3  ;;  %v4155_v26 = vsel %vm1431_vm5, %v4154_v11, %v4153_v6 }
 0x974   : > { %3957 = vrot.lane.b32.xlu1 %v3956_v28, %s5805_s10 }
 0x975   : > { %v4209_v3 = vpop.permute.xlu0 %4208 }
 0x976   : > { %v3666_v30 = vld.sshfl [vmem:[#allocation1] sm:$0xff pattern:$0x75316420]  ;;  %v3667_v32 = vld.sshfl [vmem:[#allocation1 + $0x8] sm:$0xff pattern:$0x75316420] }
 0x977   : > { %3729 = vst [vmem:[#allocation1] ss:$2 sm:$0xff] %v5458_v35  ;;  %v3668_v34 = vld.sshfl [vmem:[#allocation1 + $0x10] sm:$0xff pattern:$0x75316420]  ;;  %v3672_v53 = vpack.c.bf16 %v3666_v30, %v3666_v30  ;;  %v3673_v55 = vpack.c.bf16 %v3667_v32, %v3667_v32  ;;  %v4210_v13 = vrot.slane %v4209_v3, 4 }
 0x978   : > { %3731 = vst [vmem:[#allocation1 + $0x10] ss:$2 sm:$0xff] %v5456_v33  ;;  %v3880_v33 = vsel %vm972_vm4, %v3879_v40, %v3878_v36  ;;  %v3674_v59 = vpack.c.bf16 %v3668_v34, %v3668_v34 }
 0x979   : > { %v3883_v49 = vmul.f32 %v3880_v33, %v5458_v35  ;;  %v4211_v54 = vsel %vm1580_vm3, %v4210_v13, %v4209_v3 }
 0x97c   : > { %3569 = vrot.lane.b32.xlu1 %v3561_v42, %s5809_s3 }
 0x97e   : > { %v3732_v44 = vld.sshfl [vmem:[#allocation1] sm:$0xff pattern:$0x75316420]  ;;  %v3733_v45 = vld.sshfl [vmem:[#allocation1 + $0x8] sm:$0xff pattern:$0x75316420] }
 0x97f   : > { %v3738_v46 = vpack.c.bf16 %v3732_v44, %v3732_v44  ;;  %v3739_v47 = vpack.c.bf16 %v3733_v45, %v3733_v45  ;;  %3809 = vst [vmem:[#allocation1] ss:$2 sm:$0xff] %v3803_v41  ;;  %v3734_v48 = vld.sshfl [vmem:[#allocation1 + $0x10] sm:$0xff pattern:$0x75316420] }
 0x980   : > { %3811 = vst [vmem:[#allocation1 + $0x10] ss:$2 sm:$0xff] %v3804_v43  ;;  %v3740_v50 = vpack.c.bf16 %v3734_v48, %v3734_v48 }
 0x981   : > { %3744 = vrot.lane.b32.xlu2 %v3738_v46, %s5788_s24  ;;  %3746 = vrot.lane.b32.xlu0 %v3739_v47, %s5788_s24 }
 0x984   : > { %3748 = vrot.lane.b32.xlu1 %v3740_v50, %s5788_s24  ;;  %s5836_s24 = sld [smem:[#allocation4_spill]] }
 0x986   : > { %v5548_v51 = vld.sshfl [vmem:[#allocation1] sm:$0xff pattern:$0x75316420]  ;;  %v5550_v52 = vld.sshfl [vmem:[#allocation1 + $0x8] sm:$0xff pattern:$0x75316420] }
 0x987   : > { %v5553_v57 = vld.sshfl [vmem:[#allocation1 + $0x10] sm:$0xff pattern:$0x75316420]  ;;  %3889 = vst [vmem:[#allocation1] ss:$2 sm:$0xff] %v3883_v49  ;;  %v3818_v41 = vpack.c.bf16 %v5548_v51, %v5548_v51  ;;  %v3819_v42 = vpack.c.bf16 %v5550_v52, %v5550_v52 }
 0x988   : > { %3891 = vst [vmem:[#allocation1 + $0x10] ss:$2 sm:$0xff] %v3884_v37  ;;  %v3820_v48 = vpack.c.bf16 %v5553_v57, %v5553_v57 }
 0x989   : > { %3678 = vrot.lane.b32.xlu2 %v3672_v53, %s5805_s10  ;;  %3680 = vrot.lane.b32.xlu0 %v3673_v55, %s5805_s10 }
 0x98c   : > { %3682 = vrot.lane.b32.xlu1 %v3674_v59, %s5805_s10 }
 0x98e   : > { %v3893_v60 = vld.sshfl [vmem:[#allocation1 + $0x8] sm:$0xff pattern:$0x75316420]  ;;  %v3892_v1 = vld.sshfl [vmem:[#allocation1] sm:$0xff pattern:$0x75316420] }
 0x98f   : > { %v3894_v38 = vld.sshfl [vmem:[#allocation1 + $0x10] sm:$0xff pattern:$0x75316420]  ;;  %v3899_v62 = vpack.c.bf16 %v3893_v60, %v3893_v60  ;;  %v3898_v5 = vpack.c.bf16 %v3892_v1, %v3892_v1  ;;  %v4237_v1 = vld [vmem:[%s5697_s18] sm:$0xf] }
 0x990   : > { %v3900_v0 = vpack.c.bf16 %v3894_v38, %v3894_v38 }
 0x991   : > { %3906 = vrot.lane.b32.xlu2 %v3899_v62, %s5806_s19 }
 0x992   : > { %3908 = vrot.lane.b32.xlu0 %v3900_v0, %s5806_s19  ;;  %v1817_v0 = vld [vmem:[%s5687_s8] sm:$0xf] }
 0x994   : > { %3904 = vrot.lane.b32.xlu1 %v3898_v5, %s5806_s19 }
 0x9cb   : > { %v3566_v14 = vpop.permute.xlu2 %3565 }
 0x9d6   : > { %v4137_v7 = vpop.permute.xlu1 %4136 }
 0x9d7   : > { %v4138_v56 = vrot.slane %v4137_v7, 4 }
 0x9d9   : > { %v4139_v8 = vsel %vm691_vm6, %v4138_v56, %v4137_v7  ;;  %4143 = vst.msk [vmem:[#allocation2 + $0x8] sm:$0xf] %vm5829_vm10, %v4138_v56 }
 0x9da   : > { %4142 = vst.msk [vmem:[#allocation2] sm:$0xff] %vm4763_vm8, %v4139_v8  ;;  %v4029_v8 = vld [vmem:[%s5695_s16] sm:$0xf] }
 0x9db   : > { %v3745_v43 = vpop.permute.xlu2 %3744 }
 0x9de   : > { %v4168_v10 = vpop.permute.xlu1 %4167 }
 0x9df   : > { %v4169_v2 = vrot.slane %v4168_v10, 4 }
 0x9e0   : > { %v4146_v15 = vld [vmem:[#allocation2 + $0x8] sm:$0xf] }
 0x9e1   : > { %v4145_v17 = vld [vmem:[#allocation2] sm:$0xff]  ;;  %v4200_v18 = vmul.f32 %v4195_v9, %v4146_v15  ;;  %v4159_v20 = vmul.f32 %v4154_v11, %v4146_v15  ;;  %v4170_v32 = vsel %vm1431_vm5, %v4169_v2, %v4168_v10  ;;  %v4504_v15 = vld [vmem:[%s5694_s15 + $0x4] sm:$0x3] }
 0x9e2   : > { %v4199_v4 = vmul.f32 %v4196_v16, %v4145_v17  ;;  %v4158_v29 = vmul.f32 %v4155_v26, %v4145_v17 }
 0x9e3   : > { %v3568_v31 = vpop.permute.xlu0 %3567  ;;  %v4215_v23 = vsub.f32 %v4200_v18, %v4210_v13  ;;  %v4174_v19 = vsub.f32 %v4159_v20, %v4169_v2  ;;  %v3679_v52 = vpop.permute.xlu2 %3678  ;;  %v4498_v2 = vld [vmem:[%s5694_s15 + $0x2] sm:$0x3] }
 0x9e4   : > { %v3571_v21 = vsel %vm1346_vm11, %v3566_v14, %v3568_v31  ;;  %v4214_v25 = vsub.f32 %v4199_v4, %v4211_v54  ;;  %v4173_v40 = vsub.f32 %v4158_v29, %v4170_v32  ;;  %v4507_v14 = vld [vmem:[%s5694_s15 + $0x6] sm:$0x3] }
 0x9e5   : > { %v3577_v22 = vsel %vm639_vm0, %v3571_v21, 0  ;;  %4179 = vrot.lane.b32.xlu0 %v4174_v19, %s5805_s10  ;;  %4220 = vrot.lane.b32.xlu2 %v4215_v23, %s5781_s27 }
 0x9e6   : > { %3589 = vmatpush.bf16.msra.mxu0 %v3577_v22  ;;  %v3958_v28 = vpop.permute.xlu1 %3957  ;;  %4218 = vrot.lane.b32.xlu1 %v4214_v25, %s5781_s27 }
 0x9e7   : > { %v3959_v30 = vrot.slane %v3958_v28, 4 }
 0x9e9   : > { %v3960_v34 = vsel %vm1462_vm7, %v3959_v30, %v3958_v28  ;;  %v3964_v36 = vmul.f32 %v3959_v30, %v5468_v27  ;;  %4499 = vmatmul.msk.bf16.vlgmr.msra.gmra.mxu0 %vm635_vm1, %v4498_v2 }
 0x9ea   : > { %v3963_v39 = vmul.f32 %v3960_v34, %v5458_v35 }
 0x9eb   : > { %3971 = vst [vmem:[#allocation1 + $0x10] ss:$2 sm:$0xff] %v3964_v36  ;;  %v3907_v7 = vpop.permute.xlu2 %3906 }
 0x9ec   : > { %3969 = vst [vmem:[#allocation1] ss:$2 sm:$0xff] %v3963_v39 }
 0x9ed   : > { %3824 = vrot.lane.b32.xlu0 %v3818_v41, %s5781_s27  ;;  %4177 = vrot.lane.b32.xlu2 %v4173_v40, %s5805_s10 }
 0x9ee   : > { %v3570_v44 = vpop.permute.xlu1 %3569  ;;  %3826 = vrot.lane.b32.xlu1 %v3819_v42, %s5781_s27 }
 0x9ef   : > { %v3572_v27 = vsel %vm1346_vm11, %v3568_v31, %v3570_v44  ;;  %v4515_v31 = vld [vmem:[%s5694_s15 + $0xa] sm:$0x3]  ;;  %v3626_v44 = vpop.f32.mrf.mxu2 }
 0x9f0   : > { %v3580_v35 = vsel %vm639_vm0, %v3572_v27, 0  ;;  %v3639_v27 = vpop.f32.mrf.mxu3 }
 0x9f1   : > { %3602 = vmatpush.bf16.msra.mxu1 %v3580_v35 }
 0x9f2   : > { %v3974_v60 = vld.sshfl [vmem:[#allocation1 + $0x10] sm:$0xff pattern:$0x75316420] }
 0x9f3   : > { %v3747_v45 = vpop.permute.xlu0 %3746  ;;  %v3972_v33 = vld.sshfl [vmem:[#allocation1] sm:$0xff pattern:$0x75316420]  ;;  %v3973_v49 = vld.sshfl [vmem:[#allocation1 + $0x8] sm:$0xff pattern:$0x75316420]  ;;  %v3980_v62 = vpack.c.bf16 %v3974_v60, %v3974_v60 }
 0x9f4   : > { %v3750_v46 = vsel %vm972_vm4, %v3745_v43, %v3747_v45  ;;  %v3978_v50 = vpack.c.bf16 %v3972_v33, %v3972_v33  ;;  %v3979_v37 = vpack.c.bf16 %v3973_v49, %v3973_v49  ;;  %4500 = vmatmul.msk.bf16.vlgmr.msra.gmra.mxu1 %vm635_vm1, %v4498_v2 }
 0x9f5   : > { %v3756_v47 = vsel %vm639_vm0, %v3750_v46, 0  ;;  %3828 = vrot.lane.b32.xlu2 %v3820_v48, %s5781_s27 }
 0x9f6   : > { %3768 = vmatpush.bf16.msrb.mxu2 %v3756_v47  ;;  %v3749_v51 = vpop.permute.xlu1 %3748  ;;  %3984 = vrot.lane.b32.xlu0 %v3978_v50, %s5804_s7 }
 0x9f7   : > { %3986 = vrot.lane.b32.xlu1 %v3979_v37, %s5804_s7  ;;  %v3751_v53 = vsel %vm972_vm4, %v3747_v45, %v3749_v51 }
 0x9f8   : > { %v3759_v55 = vsel %vm639_vm0, %v3751_v53, 0  ;;  %v3628_v53 = vpop.f32.mrf.mxu2 }
 0x9f9   : > { %3781 = vmatpush.bf16.msrb.mxu3 %v3759_v55  ;;  %4508 = vmatmul.msk.bf16.vlgmr.msrb.gmra.mxu2 %vm635_vm1, %v4507_v14  ;;  %v3641_v55 = vpop.f32.mrf.mxu3 }
 0x9fb   : > { %v3681_v59 = vpop.permute.xlu0 %3680 }
 0x9fc   : > { %v3684_v57 = vsel %vm1462_vm7, %v3679_v52, %v3681_v59  ;;  %4509 = vmatmul.msk.bf16.vlgmr.msrb.gmra.mxu3 %vm635_vm1, %v4507_v14  ;;  %v4228_v52 = vld [vmem:[%s5835_s20] sm:$0x3] }
 0x9fd   : > { %v3690_v38 = vsel %vm639_vm0, %v3684_v57, 0  ;;  %3988 = vrot.lane.b32.xlu2 %v3980_v62, %s5804_s7 }
 0x9fe   : > { %3702 = vmatpush.bf16.msrb.mxu0 %v3690_v38  ;;  %v3683_v5 = vpop.permute.xlu1 %3682  ;;  %1820 = vperm.xlu0 %4562, %v1817_v0   ;;  %v4519_v0 = vld [vmem:[%s5694_s15 + $0xc] sm:$0x3] }
 0x9ff   : > { %4240 = vperm.xlu1 %4564, %v4237_v1   ;;  %v3685_v6 = vsel %vm1462_vm7, %v3681_v59, %v3683_v5 }
 0xa00   : > { %v3693_v61 = vsel %vm639_vm0, %v3685_v6, 0 }
 0xa01   : > { %3715 = vmatpush.bf16.msrb.mxu1 %v3693_v61  ;;  %4505 = vmatmul.msk.bf16.vlgmr.msrb.gmra.mxu0 %vm635_vm1, %v4504_v15 }
 0xa04   : > { %v3909_v3 = vpop.permute.xlu0 %3908  ;;  %4506 = vmatmul.msk.bf16.vlgmr.msrb.gmra.mxu1 %vm635_vm1, %v4504_v15 }
 0xa05   : > { %v3911_v56 = vsel %vm691_vm6, %v3907_v7, %v3909_v3  ;;  %4032 = vperm.xlu2 %4563, %v4029_v8  }
 0xa06   : > { %v3919_v9 = vsel %vm639_vm0, %v3911_v56, 0  ;;  %v3905_v10 = vpop.permute.xlu1 %3904 }
 0xa07   : > { %3941 = vmatpush.bf16.msra.mxu3 %v3919_v9  ;;  %v3910_v11 = vsel %vm691_vm6, %v3905_v10, %v3907_v7 }
 0xa08   : > { %v3916_v13 = vsel %vm639_vm0, %v3910_v11, 0 }
 0xa09   : > { %3928 = vmatpush.bf16.msra.mxu2 %v3916_v13 }
 0xa0c   : > { %4516 = vmatmul.msk.bf16.vlgmr.msra.gmra.mxu2 %vm635_vm1, %v4515_v31  ;;  %4517 = vmatmul.msk.bf16.vlgmr.msra.gmra.mxu3 %vm635_vm1, %v4515_v31 }
 0xa3f   : > { %v4221_v16 = vpop.permute.xlu2 %4220 }
 0xa40   : > { %v4223_v22 = vrot.slane %v4221_v16, 4 }
 0xa47   : > { %v4178_v17 = vpop.permute.xlu2 %4177 }
 0xa48   : > { %v4181_v20 = vrot.slane %v4178_v17, 4 }
 0xa4f   : > { %v3829_v25 = vpop.permute.xlu2 %3828 }
 0xa57   : > { %v4180_v18 = vpop.permute.xlu0 %4179  ;;  %v3989_v41 = vpop.permute.xlu2 %3988 }
 0xa58   : > { %v4182_v21 = vrot.slane %v4180_v18, 4  ;;  %v4219_v4 = vpop.permute.xlu1 %4218 }
 0xa59   : > { %v4222_v54 = vrot.slane %v4219_v4, 4 }
 0xa5a   : > { %v4183_v23 = vsel %vm708_vm2, %v4181_v20, %v4182_v21 }
 0xa5b   : > { %v4184_v19 = vsel %vm1462_vm7, %v4178_v17, %v4183_v23  ;;  %v4224_v24 = vsel %vm708_vm2, %v4222_v54, %v4223_v22 }
 0xa5c   : > { %v4186_v26 = vmax.f32 %v5521_v12, %v4184_v19  ;;  %v4225_v28 = vsel %vm1580_vm3, %v4219_v4, %v4224_v24  ;;  %v4511_v12 = vld [vmem:[%s5694_s15 + $0x8] sm:$0x3] }
 0xa5e   : > { %v4227_v29 = vmax.f32 %v4186_v26, %v4225_v28 }
 0xa5f   : > { %v3825_v30 = vpop.permute.xlu0 %3824 }
 0xa60   : > { %4230 = vst [vmem:[#allocation1] ss:$2 sm:$0xff] %v4227_v29  ;;  %v3827_v32 = vpop.permute.xlu1 %3826 }
 0xa61   : > { %v3830_v34 = vsel %vm1580_vm3, %v3825_v30, %v3827_v32  ;;  %v3831_v36 = vsel %vm1580_vm3, %v3827_v32, %v3829_v25 }
 0xa62   : > { %v3836_v39 = vsel %vm639_vm0, %v3830_v34, 0  ;;  %v3839_v40 = vsel %vm639_vm0, %v3831_v36, 0 }
 0xa63   : > { %3848 = vmatpush.bf16.msra.mxu0 %v3836_v39  ;;  %3861 = vmatpush.bf16.msra.mxu1 %v3839_v40 }
 0xa66   : > { %4512 = vmatmul.msk.bf16.vlgmr.msra.gmra.mxu0 %vm635_vm1, %v4511_v12  ;;  %4513 = vmatmul.msk.bf16.vlgmr.msra.gmra.mxu1 %vm635_vm1, %v4511_v12  ;;  %v3591_v7 = vpop.f32.mrf.mxu0 }
 0xa67   : > { %v4231_v42 = vld.sshfl [vmem:[#allocation1] sm:$0xff pattern:$0x75316420]  ;;  %v4232_v43 = vld.sshfl [vmem:[#allocation1 + $0x8] sm:$0xff pattern:$0x75316420]  ;;  %v3627_v3 = vadd.f32 %v3626_v44, %v3591_v7  ;;  %v4033_v44 = vpop.permute.xlu2 %4032 }
 0xa68   : > { %v3985_v45 = vpop.permute.xlu0 %3984  ;;  %v4235_v46 = vpack.c.bf16 %v4231_v42, %v4231_v42  ;;  %v4236_v47 = vpack.c.bf16 %v4232_v43, %v4232_v43 }
 0xa69   : > { %v3987_v35 = vpop.permute.xlu1 %3986 }
 0xa6a   : > { %v3991_v48 = vsel %vm1431_vm5, %v3987_v35, %v3989_v41  ;;  %v3990_v33 = vsel %vm1431_vm5, %v3985_v45, %v3987_v35  ;;  %v4247_v37 = vsel %vm639_vm0, %v4235_v46, 0  ;;  %v4250_v51 = vsel %vm639_vm0, %v4236_v47, 0 }
 0xa6b   : > { %v3999_v49 = vsel %vm639_vm0, %v3991_v48, 0  ;;  %v3996_v50 = vsel %vm639_vm0, %v3990_v33, 0  ;;  %4259 = vmatpush.bf16.msrb.mxu2 %v4247_v37  ;;  %4272 = vmatpush.bf16.msrb.mxu3 %v4250_v51 }
 0xa6c   : > { %4008 = vmatpush.bf16.msrb.mxu0 %v3996_v50  ;;  %4021 = vmatpush.bf16.msrb.mxu1 %v3999_v49 }
 0xa6e   : > { %4526 = vmatmul.msk.bf16.vlgmr.msrb.gmra.mxu2 %vm635_vm1, %v4228_v52  ;;  %4527 = vmatmul.msk.bf16.vlgmr.msrb.gmra.mxu3 %vm635_vm1, %v4228_v52  ;;  %v3593_v56 = vpop.f32.mrf.mxu0 }
 0xa70   : > { %v1821_v59 = vpop.permute.xlu0 %1820 }
 0xa71   : > { %v1823_v60 = vadd.f32 %v1821_v59, %v5155_v63  ;;  %v1824_v57 = vadd.f32 %v1821_v59, %v5153_v58  ;;  %v3604_v63 = vpop.f32.mrf.mxu1  ;;  %v4241_v29 = vpop.permute.xlu1 %4240 }
 0xa72   : > { %v3640_v58 = vadd.f32 %v3639_v27, %v3604_v63 }
 0xa73   : > { %v1825_v38 = vmax.f32 %v1823_v60, 0.0  ;;  %v1826_v62 = vmax.f32 %v1824_v57, 0.0 }
 0xa75   : > { %v1827_v1 = vmin.f32 %v1825_v38, 6.0  ;;  %v1828_v5 = vmin.f32 %v1826_v62, 6.0 }
 0xa76   : > { %4520 = vmatmul.msk.bf16.vlgmr.msrb.gmra.mxu0 %vm635_vm1, %v4519_v0  ;;  %4521 = vmatmul.msk.bf16.vlgmr.msrb.gmra.mxu1 %vm635_vm1, %v4519_v0 }
 0xa77   : > { %v4286_v6 = vrot.slane %v1827_v1, 4  ;;  %v4287_v61 = vrot.slane %v1828_v5, 4 }
 0xa79   : > { %4290 = vst [vmem:[%s5836_s24] sm:$0xf0] %v4286_v6  ;;  %v3606_v8 = vpop.f32.mrf.mxu1 }
 0xa7a   : > { %4291 = vst [vmem:[%s5836_s24 + $0x8] sm:$0xf0] %v4287_v61 }
 0xa7c   : > { %v3770_v11 = vpop.f32.mrf.mxu2 }
 0xa7e   : > { %v3704_v9 = vpop.f32.mrf.mxu0 }
 0xa7f   : > { %v3783_v13 = vpop.f32.mrf.mxu3  ;;  %v3721_v2 = vadd.f32 %v3704_v9, %v3627_v3 }
 0xa81   : > { %v3717_v10 = vpop.f32.mrf.mxu1  ;;  %v3787_v15 = vadd.f32 %v3770_v11, %v3721_v2 }
 0xa82   : > { %v3722_v14 = vadd.f32 %v3717_v10, %v3640_v58 }
 0xa84   : > { %v3788_v31 = vadd.f32 %v3783_v13, %v3722_v14  ;;  %v3772_v18 = vpop.f32.mrf.mxu2 }
 0xa86   : > { %v3706_v16 = vpop.f32.mrf.mxu0 }
 0xa87   : > { %v3785_v20 = vpop.f32.mrf.mxu3 }
 0xa89   : > { %v3719_v17 = vpop.f32.mrf.mxu1 }
 0xa8f   : > { %v3930_v21 = vpop.f32.mrf.mxu2  ;;  %v3943_v4 = vpop.f32.mrf.mxu3 }
 0xa97   : > { %v3932_v22 = vpop.f32.mrf.mxu2  ;;  %v3945_v54 = vpop.f32.mrf.mxu3 }
 0xae3   : > { %v3850_v23 = vpop.f32.mrf.mxu0  ;;  %v3863_v19 = vpop.f32.mrf.mxu1 }
 0xae4   : > { %v3867_v26 = vadd.f32 %v3850_v23, %v3787_v15  ;;  %v3868_v28 = vadd.f32 %v3863_v19, %v3788_v31 }
 0xae6   : > { %v3947_v34 = vadd.f32 %v3930_v21, %v3867_v26  ;;  %v3948_v36 = vadd.f32 %v3943_v4, %v3868_v28 }
 0xaeb   : > { %v3852_v24 = vpop.f32.mrf.mxu0  ;;  %v3865_v25 = vpop.f32.mrf.mxu1 }
 0xaf1   : > { %v4261_v30 = vpop.f32.mrf.mxu2  ;;  %v4274_v32 = vpop.f32.mrf.mxu3 }
 0xaf2   : > { %v4262_v39 = vadd.f32 %v4261_v30, %v4241_v29  ;;  %v4275_v40 = vadd.f32 %v4274_v32, %v4241_v29 }
 0xaf3   : > { %v4010_v12 = vpop.f32.mrf.mxu0  ;;  %v4023_v41 = vpop.f32.mrf.mxu1 }
 0xaf4   : > { %v4027_v42 = vadd.f32 %v4010_v12, %v3947_v34  ;;  %v4028_v43 = vadd.f32 %v4023_v41, %v3948_v36  ;;  %v4278_v27 = vmax.f32 %v4262_v39, 0.0  ;;  %v4279_v35 = vmax.f32 %v4275_v40, 0.0 }
 0xaf6   : > { %v4035_v45 = vadd.f32 %v4033_v44, %v4027_v42  ;;  %v4036_v46 = vadd.f32 %v4033_v44, %v4028_v43  ;;  %v4280_v47 = vmin.f32 %v4278_v27, 6.0  ;;  %v4281_v48 = vmin.f32 %v4279_v35, 6.0 }
 0xaf8   : > { %v4037_v33 = vmax.f32 %v4035_v45, 0.0  ;;  %v4038_v49 = vmax.f32 %v4036_v46, 0.0  ;;  %v4296_v50 = vrot.slane %v4280_v47, 4  ;;  %v4297_v37 = vrot.slane %v4281_v48, 4 }
 0xaf9   : > { %v4263_v53 = vpop.f32.mrf.mxu2  ;;  %v4276_v55 = vpop.f32.mrf.mxu3 }
 0xafa   : > { %v4039_v51 = vmin.f32 %v4037_v33, 6.0  ;;  %v4040_v52 = vmin.f32 %v4038_v49, 6.0  ;;  %4300 = vst [vmem:[%s5836_s24 + $0x10] sm:$0xf0] %v4296_v50 }
 0xafb   : > { %v4012_v59 = vpop.f32.mrf.mxu0  ;;  %v4025_v60 = vpop.f32.mrf.mxu1  ;;  %4301 = vst [vmem:[%s5836_s24 + $0x18] sm:$0xf0] %v4297_v37 }
 0xafc   : > { %4292 = vst [vmem:[%s5836_s24 + $0x10] sm:$0xf] %v4039_v51 }
 0xafd   : > { %4293 = vst [vmem:[%s5836_s24 + $0x18] sm:$0xf] %v4040_v52 }
 0xafe PF: > { %s5837_s10 = sld [smem:[#allocation3_spill]] }
 0xb04   : > { %s29_s0 = sadd.s32 1, %s5837_s10  }
 0xb05   : > { %p26_p4 = scmp.ge.s32.totalorder %s29_s0, 4  }
 0xb07   :  { %28 = sbr.rel (!%p26_p4) target bundleno = 13 (0xd), region = 212 }

</bundles_post_ra>
